<compile_context>
chip_gen: v6e
topology: v6e:2x2x1
jax: 0.10.0
libtpu: 0.0.40
codegen_flags: <defaults>
</compile_context>

<pallas_src>
import jax
import jax.numpy as jnp
import numpy as np
from jax import lax
from jax.experimental import pallas as pl
from jax.experimental.pallas import tpu as pltpu
from jax.scipy.linalg import block_diag

EPS = 1e-5


class ModelConfig:
    cnn_input_size = 1          # forward() feeds one single-channel image per sequence step
    class_size = 5
    hidden_size = 32
    batch_size = 2
    sequence_size = 4
    kernel_size = 3
    stride_size = 1
    num_cnn_features = 4
    num_cnn_layers = 2
    fc_after_cnn_out_size = 16
    cnn_input_dimension = 8     # spatial size H == W


# --------------------------------------------------------------------------
# Fused Pallas kernel
# --------------------------------------------------------------------------

def _make_fused_kernel(cfg):
    B = cfg.batch_size
    S = cfg.sequence_size
    H = W = cfg.cnn_input_dimension
    C = cfg.num_cnn_features
    K = cfg.kernel_size
    F = cfg.fc_after_cnn_out_size
    HID = cfg.hidden_size
    LANES = S * W * C
    inv_conv_cnt = 1.0 / float(B * H * W)   # BatchNorm2d: stats over (N, H, W)
    inv_batch = 1.0 / float(B)              # BatchNorm1d: stats over the batch

    def kernel(x_ref, shift_ref, e0_ref, e1_ref, g_ref, bn0_ref, bn1_ref,
               rowsel_ref, wcat_ref, bnf_ref, dup_ref, m64_ref, fold_ref,
               wih_ref, blstm_ref, whh_ref, wlast_ref, blast_ref, out_ref):

        def mm(a, b):
            return jnp.dot(a, b, preferred_element_type=jnp.float32)

        gmat = g_ref[...]                                    # (LANES, LANES) channel grouping

        def conv_bn_relu(cur, e_ref, bn_ref):
            # conv (stride 1, 'same' padding) as row-shift selects + block-diag expansions
            acc = jnp.zeros((B * H, LANES), jnp.float32)
            for kh in range(K):
                shifted = mm(shift_ref[kh], cur)             # zero-padded h-shift, all b at once
                for kw in range(K):
                    acc = acc + mm(shifted, e_ref[kh * K + kw])
            # training-mode BatchNorm per (sequence, channel) over (batch, h, w)
            rsum = jnp.sum(acc, axis=0, keepdims=True)
            rsq = jnp.sum(acc * acc, axis=0, keepdims=True)
            mean = mm(rsum, gmat) * inv_conv_cnt
            msq = mm(rsq, gmat) * inv_conv_cnt
            var = msq - mean * mean
            bn = bn_ref[...]
            scale = bn[0:1, :] * lax.rsqrt(var + EPS)
            offs = bn[1:2, :] - mean * scale
            return jnp.maximum(acc * scale + offs, 0.0)

        y = conv_bn_relu(x_ref[...], e0_ref, bn0_ref)        # conv layer 0
        y = conv_bn_relu(y, e1_ref, bn1_ref)                 # conv layer 1

        # per-sequence fully connected (bias dropped -- cancelled by BatchNorm1d)
        fc = jnp.zeros((B, S * F), jnp.float32)
        for h in range(H):
            fc = fc + mm(mm(rowsel_ref[h], y), wcat_ref[h])  # (B,16)@(16,128) ; (B,128)@(128,64)

        # BatchNorm1d (training stats over the batch of 2) + ReLU
        mean = jnp.sum(fc, axis=0, keepdims=True) * inv_batch
        msq = jnp.sum(fc * fc, axis=0, keepdims=True) * inv_batch
        var = msq - mean * mean
        bnf = bnf_ref[...]
        scale = bnf[0:1, :] * lax.rsqrt(var + EPS)
        offs = bnf[1:2, :] - mean * scale
        cnn_out = jnp.maximum(fc * scale + offs, 0.0)        # (B, F*S), lane = f*S + s

        # PyTorch `.view(S, B, -1)` raw reinterpret (dup/mask/fold constants) followed by
        # the hoisted LSTM input projection for all timesteps at once.
        xall = mm(mm(dup_ref[...], cnn_out) * m64_ref[...], fold_ref[...])   # (S*B, F)
        gx = mm(xall, wih_ref[...]) + blstm_ref[...]                          # (S*B, 4*HID)

        h_t = jnp.zeros((B, HID), jnp.float32)
        c_t = jnp.zeros((B, HID), jnp.float32)
        for t in range(S):
            gates = gx[t * B:(t + 1) * B, :] + mm(h_t, whh_ref[...])
            sg = 1.0 / (1.0 + jnp.exp(-gates))               # full-vector EUP ops,
            tg = jnp.tanh(gates)                             # gate blocks sliced once
            c_t = sg[:, HID:2 * HID] * c_t + sg[:, 0:HID] * tg[:, 2 * HID:3 * HID]
            h_t = sg[:, 3 * HID:4 * HID] * jnp.tanh(c_t)

        logits = mm(h_t, wlast_ref[...]) + blast_ref[...]
        zmax = jnp.max(logits, axis=1, keepdims=True)
        z = logits - zmax
        lse = jnp.log(jnp.sum(jnp.exp(z), axis=1, keepdims=True))
        out_ref[...] = z - lse

    return kernel


# --------------------------------------------------------------------------
# Wrapper: trace-time packing of inputs / weights + single pallas_call
# --------------------------------------------------------------------------

def pallas_forward(params, x, cfg):
    B, S, H, W = x.shape
    C = cfg.num_cnn_features
    K = cfg.kernel_size
    F = cfg.fc_after_cnn_out_size
    HID = cfg.hidden_size
    CLS = cfg.class_size
    pad = (K - 1) // 2
    assert cfg.stride_size == 1 and cfg.num_cnn_layers == 2 and cfg.cnn_input_size == 1

    # input packed as (b*H + h, s*W + w)
    x2d = jnp.transpose(x, (0, 2, 1, 3)).reshape(B * H, S * W)

    # ---- constant 0/1 selector matrices (numpy, trace-time) ----
    shift = np.stack([np.kron(np.eye(B, dtype=np.float32),
                              np.eye(H, k=kh - pad, dtype=np.float32))
                      for kh in range(K)]).astype(np.float32)               # (K, B*H, B*H)
    gmat = np.kron(np.eye(S, dtype=np.float32),
                   np.kron(np.ones((W, W), np.float32),
                           np.eye(C, dtype=np.float32))).astype(np.float32)  # (128, 128)
    rowsel = np.zeros((H, B, B * H), np.float32)
    for h in range(H):
        for b in range(B):
            rowsel[h, b, b * H + h] = 1.0
    R = S * B
    dup = np.zeros((R, B), np.float32)
    m64 = np.zeros((R, S * F), np.float32)
    for r in range(R):
        dup[r, r // S] = 1.0
        m64[r, (r % S) * F:(r % S) * F + F] = 1.0
    fold = np.zeros((S * F, F), np.float32)
    for l in range(S * F):
        fold[l, l % F] = 1.0
    perm = np.array([(l % S) * F + l // S for l in range(S * F)])

    # ---- weight-dependent packed matrices (jnp, trace-time) ----
    e0_list, e1_list = [], []
    for kh in range(K):
        for kw in range(K):
            d = np.eye(W, k=pad - kw, dtype=np.float32)                      # w-window select
            b0, b1 = [], []
            for s in range(S):
                w0 = params['conv_w'][s][0]                                  # (C, 1, K, K)
                w1 = params['conv_w'][s][1]                                  # (C, C, K, K)
                b0.append(jnp.kron(d, w0[:, 0, kh, kw][None, :]))            # (W, W*C)
                b1.append(jnp.kron(d, w1[:, :, kh, kw].T))                   # (W*C, W*C)
            e0_list.append(block_diag(*b0))
            e1_list.append(block_diag(*b1))
    e0 = jnp.stack(e0_list)                                                  # (K*K, S*W,   S*W*C)
    e1 = jnp.stack(e1_list)                                                  # (K*K, S*W*C, S*W*C)

    def bn_conv_lanes(layer):
        g = jnp.stack([params['bn_conv'][s][layer][0] for s in range(S)])    # (S, C)
        bt = jnp.stack([params['bn_conv'][s][layer][1] for s in range(S)])
        tile = lambda v: jnp.broadcast_to(v[:, None, :], (S, W, C)).reshape(S * W * C)
        return jnp.stack([tile(g), tile(bt)])                                # (2, 128)
    bn0 = bn_conv_lanes(0)
    bn1 = bn_conv_lanes(1)

    wcat_list = []
    for h in range(H):
        blocks = []
        for s in range(S):
            wf = params['fc_w'][s].reshape(F, C, H, W)                       # (O, C, H, W)
            blocks.append(jnp.transpose(wf[:, :, h, :], (2, 1, 0)).reshape(W * C, F))
        wcat_list.append(block_diag(*blocks)[:, perm])                       # out lane = o*S + s
    wcat = jnp.stack(wcat_list)                                              # (H, 128, F*S)

    gf = jnp.stack([params['bn_fc'][s][0] for s in range(S)])                # (S, F)
    bf = jnp.stack([params['bn_fc'][s][1] for s in range(S)])
    bnf = jnp.stack([gf.T.reshape(-1), bf.T.reshape(-1)])                    # (2, F*S)

    wih = params['w_ih'].T                                                   # (F, 4*HID)
    whh = params['w_hh'].T                                                   # (HID, 4*HID)
    blstm = (params['b_ih'] + params['b_hh']).reshape(1, 4 * HID)
    wlast = params['w_last'].T                                               # (HID, CLS)
    blast = params['b_last'].reshape(1, CLS)

    vmem = lambda: pl.BlockSpec(memory_space=pltpu.MemorySpace.VMEM)
    kernel = _make_fused_kernel(cfg)
    return pl.pallas_call(
        kernel,
        out_shape=jax.ShapeDtypeStruct((B, CLS), jnp.float32),
        in_specs=[vmem() for _ in range(18)],
        out_specs=vmem(),
    )(x2d, shift, e0, e1, gmat, bn0, bn1, rowsel, wcat, bnf,
      dup, m64, fold, wih, blstm, whh, wlast, blast)


# --------------------------------------------------------------------------
# Pure-JAX reference (faithful translation of the PyTorch module, training-mode BN)
# --------------------------------------------------------------------------

def reference_forward(params, x, cfg):
    B, S, H, W = x.shape
    K = cfg.kernel_size
    HID = cfg.hidden_size
    F = cfg.fc_after_cnn_out_size
    pad = (K - 1) // 2
    hp = jax.lax.Precision.HIGHEST

    def conv_same(z, w, b):
        Bz, Cin, Hz, Wz = z.shape
        zp = jnp.pad(z, ((0, 0), (0, 0), (pad, pad), (pad, pad)))
        out = jnp.zeros((Bz, w.shape[0], Hz, Wz), jnp.float32)
        for kh in range(K):
            for kw in range(K):
                out = out + jnp.einsum('bchw,oc->bohw',
                                       zp[:, :, kh:kh + Hz, kw:kw + Wz],
                                       w[:, :, kh, kw], precision=hp)
        return out + b[None, :, None, None]

    outs = []
    for s in range(S):
        feat = x[:, s][:, None, :, :]
        for l in range(cfg.num_cnn_layers):
            w = params['conv_w'][s][l]
            b = params['conv_b'][s][l]
            g, bt = params['bn_conv'][s][l]
            feat = conv_same(feat, w, b)
            mu = jnp.mean(feat, axis=(0, 2, 3), keepdims=True)
            var = jnp.mean((feat - mu) ** 2, axis=(0, 2, 3), keepdims=True)
            feat = g[None, :, None, None] * (feat - mu) * lax.rsqrt(var + EPS) \
                + bt[None, :, None, None]
            feat = jnp.maximum(feat, 0.0)
        flat = feat.reshape(B, -1)                                    # NCHW flatten (c, h, w)
        o = jnp.dot(flat, params['fc_w'][s].T, precision=hp) + params['fc_b'][s]
        g, bt = params['bn_fc'][s]
        mu = jnp.mean(o, axis=0, keepdims=True)
        var = jnp.mean((o - mu) ** 2, axis=0, keepdims=True)
        o = g * (o - mu) * lax.rsqrt(var + EPS) + bt
        outs.append(jnp.maximum(o, 0.0))
    cnn_output = jnp.stack(outs, axis=2)                              # (B, F, S)
    lstm_in = cnn_output.reshape(S, B, F)                             # torch .view raw reinterpret

    h = jnp.zeros((B, HID), jnp.float32)
    c = jnp.zeros((B, HID), jnp.float32)
    for t in range(S):
        gates = (jnp.dot(lstm_in[t], params['w_ih'].T, precision=hp) + params['b_ih']
                 + jnp.dot(h, params['w_hh'].T, precision=hp) + params['b_hh'])
        i = jax.nn.sigmoid(gates[:, 0:HID])
        f = jax.nn.sigmoid(gates[:, HID:2 * HID])
        gg = jnp.tanh(gates[:, 2 * HID:3 * HID])
        og = jax.nn.sigmoid(gates[:, 3 * HID:4 * HID])
        c = f * c + i * gg
        h = og * jnp.tanh(c)
    logits = jnp.dot(h, params['w_last'].T, precision=hp) + params['b_last']
    return jax.nn.log_softmax(logits, axis=1)


# --------------------------------------------------------------------------
# Parameter initialization (PyTorch-like layouts and fan-in bounds)
# --------------------------------------------------------------------------

def init_params(key, cfg):
    S = cfg.sequence_size
    C = cfg.num_cnn_features
    K = cfg.kernel_size
    H = W = cfg.cnn_input_dimension
    F = cfg.fc_after_cnn_out_size
    HID = cfg.hidden_size
    CLS = cfg.class_size
    flat = C * H * W
    keys = iter(jax.random.split(key, 256))

    def u(shape, fan_in):
        b = 1.0 / float(np.sqrt(fan_in))
        return jax.random.uniform(next(keys), shape, jnp.float32, -b, b)

    def bn_pair(n):  # random affine so the BN path is genuinely exercised
        return (jax.random.uniform(next(keys), (n,), jnp.float32, 0.5, 1.5),
                jax.random.uniform(next(keys), (n,), jnp.float32, -0.5, 0.5))

    params = {'conv_w': [], 'conv_b': [], 'bn_conv': [], 'fc_w': [], 'fc_b': [], 'bn_fc': []}
    for _ in range(S):
        cw, cb, cbn = [], [], []
        for l in range(cfg.num_cnn_layers):
            cin = cfg.cnn_input_size if l == 0 else C
            cw.append(u((C, cin, K, K), cin * K * K))
            cb.append(u((C,), cin * K * K))
            cbn.append(bn_pair(C))
        params['conv_w'].append(cw)
        params['conv_b'].append(cb)
        params['bn_conv'].append(cbn)
        params['fc_w'].append(u((F, flat), flat))
        params['fc_b'].append(u((F,), flat))
        params['bn_fc'].append(bn_pair(F))
    params['w_ih'] = u((4 * HID, F), HID)
    params['w_hh'] = u((4 * HID, HID), HID)
    params['b_ih'] = u((4 * HID,), HID)
    params['b_hh'] = u((4 * HID,), HID)
    params['w_last'] = u((CLS, HID), HID)
    params['b_last'] = u((CLS,), HID)
    return params


if __name__ == "__main__":
    cfg = ModelConfig()
    key = jax.random.PRNGKey(0)
    k_param, k_x = jax.random.split(key)

    params = init_params(k_param, cfg)
    x = jax.random.normal(
        k_x,
        (cfg.batch_size, cfg.sequence_size, cfg.cnn_input_dimension, cfg.cnn_input_dimension),
        jnp.float32,
    )

    fused = jax.jit(lambda inp: pallas_forward(params, inp, cfg))
    out = jax.block_until_ready(fused(x))

    assert out.shape == (cfg.batch_size, cfg.class_size)
    # log-softmax rows must exponentiate-sum to 1
    assert bool(jnp.all(jnp.abs(jnp.sum(jnp.exp(out), axis=1) - 1.0) < 1e-4))

    # numerical check against the pure-JAX reference of the PyTorch forward
    ref = jax.block_until_ready(jax.jit(lambda inp: reference_forward(params, inp, cfg))(x))
    assert bool(jnp.max(jnp.abs(out - ref)) < 5e-2)

    print("KERNEL_OK")
</pallas_src>

<mosaic_0001>
module attributes {stable_mosaic.version = 11 : i64} {
  func.func @kernel(%arg0: memref<16x32xf32, #tpu.memory_space<vmem>>, %arg1: memref<3x16x16xf32, #tpu.memory_space<vmem>>, %arg2: memref<9x32x128xf32, #tpu.memory_space<vmem>>, %arg3: memref<9x128x128xf32, #tpu.memory_space<vmem>>, %arg4: memref<128x128xf32, #tpu.memory_space<vmem>>, %arg5: memref<2x128xf32, #tpu.memory_space<vmem>>, %arg6: memref<2x128xf32, #tpu.memory_space<vmem>>, %arg7: memref<8x2x16xf32, #tpu.memory_space<vmem>>, %arg8: memref<8x128x64xf32, #tpu.memory_space<vmem>>, %arg9: memref<2x64xf32, #tpu.memory_space<vmem>>, %arg10: memref<8x2xf32, #tpu.memory_space<vmem>>, %arg11: memref<8x64xf32, #tpu.memory_space<vmem>>, %arg12: memref<64x16xf32, #tpu.memory_space<vmem>>, %arg13: memref<16x128xf32, #tpu.memory_space<vmem>>, %arg14: memref<1x128xf32, #tpu.memory_space<vmem>>, %arg15: memref<32x128xf32, #tpu.memory_space<vmem>>, %arg16: memref<32x5xf32, #tpu.memory_space<vmem>>, %arg17: memref<1x5xf32, #tpu.memory_space<vmem>>, %arg18: memref<2x5xf32, #tpu.memory_space<vmem>>) attributes {dimension_semantics = [], scalar_prefetch = 0 : i64, scratch_operands = 0 : i64, tpu.core_type = #tpu.core_type<tc>} {
    %c0 = arith.constant 0 : index
    %c0_0 = arith.constant 0 : index
    %0 = vector.load %arg4[%c0, %c0_0] : memref<128x128xf32, #tpu.memory_space<vmem>>, vector<128x128xf32>
    %c0_1 = arith.constant 0 : index
    %c0_2 = arith.constant 0 : index
    %1 = vector.load %arg0[%c0_1, %c0_2] : memref<16x32xf32, #tpu.memory_space<vmem>>, vector<16x32xf32>
    %cst = arith.constant 0.000000e+00 : f32
    %2 = vector.broadcast %cst : f32 to vector<16x128xf32>
    %c0_3 = arith.constant 0 : index
    %c0_4 = arith.constant 0 : index
    %c0_5 = arith.constant 0 : index
    %3 = vector.load %arg1[%c0_3, %c0_4, %c0_5] : memref<3x16x16xf32, #tpu.memory_space<vmem>>, vector<1x16x16xf32>
    %4 = vector.shape_cast %3 : vector<1x16x16xf32> to vector<16x16xf32>
    %cst_6 = arith.constant dense<0.000000e+00> : vector<16x32xf32>
    %5 = tpu.matmul %4, %1, %cst_6 {dimension_numbers = #tpu.dot_dimension_numbers<[1], [0], [0], [1], [0, 0, 1, 1], [], []>} : vector<16x16xf32>, vector<16x32xf32>, vector<16x32xf32> -> vector<16x32xf32>
    %c0_7 = arith.constant 0 : index
    %c0_8 = arith.constant 0 : index
    %c0_9 = arith.constant 0 : index
    %6 = vector.load %arg2[%c0_7, %c0_8, %c0_9] : memref<9x32x128xf32, #tpu.memory_space<vmem>>, vector<1x32x128xf32>
    %7 = vector.shape_cast %6 : vector<1x32x128xf32> to vector<32x128xf32>
    %cst_10 = arith.constant dense<0.000000e+00> : vector<16x128xf32>
    %8 = tpu.matmul %5, %7, %cst_10 {dimension_numbers = #tpu.dot_dimension_numbers<[1], [0], [0], [1], [0, 0, 1, 1], [], []>} : vector<16x32xf32>, vector<32x128xf32>, vector<16x128xf32> -> vector<16x128xf32>
    %9 = arith.addf %2, %8 : vector<16x128xf32>
    %c1 = arith.constant 1 : index
    %c0_11 = arith.constant 0 : index
    %c0_12 = arith.constant 0 : index
    %10 = vector.load %arg2[%c1, %c0_11, %c0_12] : memref<9x32x128xf32, #tpu.memory_space<vmem>>, vector<1x32x128xf32>
    %11 = vector.shape_cast %10 : vector<1x32x128xf32> to vector<32x128xf32>
    %cst_13 = arith.constant dense<0.000000e+00> : vector<16x128xf32>
    %12 = tpu.matmul %5, %11, %cst_13 {dimension_numbers = #tpu.dot_dimension_numbers<[1], [0], [0], [1], [0, 0, 1, 1], [], []>} : vector<16x32xf32>, vector<32x128xf32>, vector<16x128xf32> -> vector<16x128xf32>
    %13 = arith.addf %9, %12 : vector<16x128xf32>
    %c2 = arith.constant 2 : index
    %c0_14 = arith.constant 0 : index
    %c0_15 = arith.constant 0 : index
    %14 = vector.load %arg2[%c2, %c0_14, %c0_15] : memref<9x32x128xf32, #tpu.memory_space<vmem>>, vector<1x32x128xf32>
    %15 = vector.shape_cast %14 : vector<1x32x128xf32> to vector<32x128xf32>
    %cst_16 = arith.constant dense<0.000000e+00> : vector<16x128xf32>
    %16 = tpu.matmul %5, %15, %cst_16 {dimension_numbers = #tpu.dot_dimension_numbers<[1], [0], [0], [1], [0, 0, 1, 1], [], []>} : vector<16x32xf32>, vector<32x128xf32>, vector<16x128xf32> -> vector<16x128xf32>
    %17 = arith.addf %13, %16 : vector<16x128xf32>
    %c1_17 = arith.constant 1 : index
    %c0_18 = arith.constant 0 : index
    %c0_19 = arith.constant 0 : index
    %18 = vector.load %arg1[%c1_17, %c0_18, %c0_19] : memref<3x16x16xf32, #tpu.memory_space<vmem>>, vector<1x16x16xf32>
    %19 = vector.shape_cast %18 : vector<1x16x16xf32> to vector<16x16xf32>
    %cst_20 = arith.constant dense<0.000000e+00> : vector<16x32xf32>
    %20 = tpu.matmul %19, %1, %cst_20 {dimension_numbers = #tpu.dot_dimension_numbers<[1], [0], [0], [1], [0, 0, 1, 1], [], []>} : vector<16x16xf32>, vector<16x32xf32>, vector<16x32xf32> -> vector<16x32xf32>
    %c3 = arith.constant 3 : index
    %c0_21 = arith.constant 0 : index
    %c0_22 = arith.constant 0 : index
    %21 = vector.load %arg2[%c3, %c0_21, %c0_22] : memref<9x32x128xf32, #tpu.memory_space<vmem>>, vector<1x32x128xf32>
    %22 = vector.shape_cast %21 : vector<1x32x128xf32> to vector<32x128xf32>
    %cst_23 = arith.constant dense<0.000000e+00> : vector<16x128xf32>
    %23 = tpu.matmul %20, %22, %cst_23 {dimension_numbers = #tpu.dot_dimension_numbers<[1], [0], [0], [1], [0, 0, 1, 1], [], []>} : vector<16x32xf32>, vector<32x128xf32>, vector<16x128xf32> -> vector<16x128xf32>
    %24 = arith.addf %17, %23 : vector<16x128xf32>
    %c4 = arith.constant 4 : index
    %c0_24 = arith.constant 0 : index
    %c0_25 = arith.constant 0 : index
    %25 = vector.load %arg2[%c4, %c0_24, %c0_25] : memref<9x32x128xf32, #tpu.memory_space<vmem>>, vector<1x32x128xf32>
    %26 = vector.shape_cast %25 : vector<1x32x128xf32> to vector<32x128xf32>
    %cst_26 = arith.constant dense<0.000000e+00> : vector<16x128xf32>
    %27 = tpu.matmul %20, %26, %cst_26 {dimension_numbers = #tpu.dot_dimension_numbers<[1], [0], [0], [1], [0, 0, 1, 1], [], []>} : vector<16x32xf32>, vector<32x128xf32>, vector<16x128xf32> -> vector<16x128xf32>
    %28 = arith.addf %24, %27 : vector<16x128xf32>
    %c5 = arith.constant 5 : index
    %c0_27 = arith.constant 0 : index
    %c0_28 = arith.constant 0 : index
    %29 = vector.load %arg2[%c5, %c0_27, %c0_28] : memref<9x32x128xf32, #tpu.memory_space<vmem>>, vector<1x32x128xf32>
    %30 = vector.shape_cast %29 : vector<1x32x128xf32> to vector<32x128xf32>
    %cst_29 = arith.constant dense<0.000000e+00> : vector<16x128xf32>
    %31 = tpu.matmul %20, %30, %cst_29 {dimension_numbers = #tpu.dot_dimension_numbers<[1], [0], [0], [1], [0, 0, 1, 1], [], []>} : vector<16x32xf32>, vector<32x128xf32>, vector<16x128xf32> -> vector<16x128xf32>
    %32 = arith.addf %28, %31 : vector<16x128xf32>
    %c2_30 = arith.constant 2 : index
    %c0_31 = arith.constant 0 : index
    %c0_32 = arith.constant 0 : index
    %33 = vector.load %arg1[%c2_30, %c0_31, %c0_32] : memref<3x16x16xf32, #tpu.memory_space<vmem>>, vector<1x16x16xf32>
    %34 = vector.shape_cast %33 : vector<1x16x16xf32> to vector<16x16xf32>
    %cst_33 = arith.constant dense<0.000000e+00> : vector<16x32xf32>
    %35 = tpu.matmul %34, %1, %cst_33 {dimension_numbers = #tpu.dot_dimension_numbers<[1], [0], [0], [1], [0, 0, 1, 1], [], []>} : vector<16x16xf32>, vector<16x32xf32>, vector<16x32xf32> -> vector<16x32xf32>
    %c6 = arith.constant 6 : index
    %c0_34 = arith.constant 0 : index
    %c0_35 = arith.constant 0 : index
    %36 = vector.load %arg2[%c6, %c0_34, %c0_35] : memref<9x32x128xf32, #tpu.memory_space<vmem>>, vector<1x32x128xf32>
    %37 = vector.shape_cast %36 : vector<1x32x128xf32> to vector<32x128xf32>
    %cst_36 = arith.constant dense<0.000000e+00> : vector<16x128xf32>
    %38 = tpu.matmul %35, %37, %cst_36 {dimension_numbers = #tpu.dot_dimension_numbers<[1], [0], [0], [1], [0, 0, 1, 1], [], []>} : vector<16x32xf32>, vector<32x128xf32>, vector<16x128xf32> -> vector<16x128xf32>
    %39 = arith.addf %32, %38 : vector<16x128xf32>
    %c7 = arith.constant 7 : index
    %c0_37 = arith.constant 0 : index
    %c0_38 = arith.constant 0 : index
    %40 = vector.load %arg2[%c7, %c0_37, %c0_38] : memref<9x32x128xf32, #tpu.memory_space<vmem>>, vector<1x32x128xf32>
    %41 = vector.shape_cast %40 : vector<1x32x128xf32> to vector<32x128xf32>
    %cst_39 = arith.constant dense<0.000000e+00> : vector<16x128xf32>
    %42 = tpu.matmul %35, %41, %cst_39 {dimension_numbers = #tpu.dot_dimension_numbers<[1], [0], [0], [1], [0, 0, 1, 1], [], []>} : vector<16x32xf32>, vector<32x128xf32>, vector<16x128xf32> -> vector<16x128xf32>
    %43 = arith.addf %39, %42 : vector<16x128xf32>
    %c8 = arith.constant 8 : index
    %c0_40 = arith.constant 0 : index
    %c0_41 = arith.constant 0 : index
    %44 = vector.load %arg2[%c8, %c0_40, %c0_41] : memref<9x32x128xf32, #tpu.memory_space<vmem>>, vector<1x32x128xf32>
    %45 = vector.shape_cast %44 : vector<1x32x128xf32> to vector<32x128xf32>
    %cst_42 = arith.constant dense<0.000000e+00> : vector<16x128xf32>
    %46 = tpu.matmul %35, %45, %cst_42 {dimension_numbers = #tpu.dot_dimension_numbers<[1], [0], [0], [1], [0, 0, 1, 1], [], []>} : vector<16x32xf32>, vector<32x128xf32>, vector<16x128xf32> -> vector<16x128xf32>
    %47 = arith.addf %43, %46 : vector<16x128xf32>
    %cst_43 = arith.constant dense<0.000000e+00> : vector<128xf32>
    %48 = vector.multi_reduction <add>, %47, %cst_43 [0] : vector<16x128xf32> to vector<128xf32>
    %49 = vector.shape_cast %48 : vector<128xf32> to vector<1x128xf32>
    %50 = arith.mulf %47, %47 : vector<16x128xf32>
    %cst_44 = arith.constant dense<0.000000e+00> : vector<128xf32>
    %51 = vector.multi_reduction <add>, %50, %cst_44 [0] : vector<16x128xf32> to vector<128xf32>
    %52 = vector.shape_cast %51 : vector<128xf32> to vector<1x128xf32>
    %cst_45 = arith.constant dense<0.000000e+00> : vector<1x128xf32>
    %53 = tpu.matmul %49, %0, %cst_45 {dimension_numbers = #tpu.dot_dimension_numbers<[1], [0], [0], [1], [0, 0, 1, 1], [], []>} : vector<1x128xf32>, vector<128x128xf32>, vector<1x128xf32> -> vector<1x128xf32>
    %cst_46 = arith.constant 7.812500e-03 : f32
    %54 = vector.broadcast %cst_46 : f32 to vector<1x128xf32>
    %55 = arith.mulf %53, %54 : vector<1x128xf32>
    %cst_47 = arith.constant dense<0.000000e+00> : vector<1x128xf32>
    %56 = tpu.matmul %52, %0, %cst_47 {dimension_numbers = #tpu.dot_dimension_numbers<[1], [0], [0], [1], [0, 0, 1, 1], [], []>} : vector<1x128xf32>, vector<128x128xf32>, vector<1x128xf32> -> vector<1x128xf32>
    %cst_48 = arith.constant 7.812500e-03 : f32
    %57 = vector.broadcast %cst_48 : f32 to vector<1x128xf32>
    %58 = arith.mulf %56, %57 : vector<1x128xf32>
    %59 = arith.mulf %55, %55 : vector<1x128xf32>
    %60 = arith.subf %58, %59 : vector<1x128xf32>
    %c0_49 = arith.constant 0 : index
    %c0_50 = arith.constant 0 : index
    %61 = vector.load %arg5[%c0_49, %c0_50] : memref<2x128xf32, #tpu.memory_space<vmem>>, vector<2x128xf32>
    %62 = vector.extract_strided_slice %61 {offsets = [0, 0], sizes = [1, 128], strides = [1, 1]} : vector<2x128xf32> to vector<1x128xf32>
    %cst_51 = arith.constant 9.99999974E-6 : f32
    %63 = vector.broadcast %cst_51 : f32 to vector<1x128xf32>
    %64 = arith.addf %60, %63 : vector<1x128xf32>
    %65 = math.rsqrt %64 : vector<1x128xf32>
    %66 = arith.mulf %62, %65 : vector<1x128xf32>
    %67 = vector.extract_strided_slice %61 {offsets = [1, 0], sizes = [1, 128], strides = [1, 1]} : vector<2x128xf32> to vector<1x128xf32>
    %68 = arith.mulf %55, %66 : vector<1x128xf32>
    %69 = arith.subf %67, %68 : vector<1x128xf32>
    %70 = vector.broadcast %66 : vector<1x128xf32> to vector<16x128xf32>
    %71 = arith.mulf %47, %70 : vector<16x128xf32>
    %72 = vector.broadcast %69 : vector<1x128xf32> to vector<16x128xf32>
    %73 = arith.addf %71, %72 : vector<16x128xf32>
    %cst_52 = arith.constant 0.000000e+00 : f32
    %74 = vector.broadcast %cst_52 : f32 to vector<16x128xf32>
    %75 = arith.maximumf %73, %74 : vector<16x128xf32>
    %cst_53 = arith.constant 0.000000e+00 : f32
    %76 = vector.broadcast %cst_53 : f32 to vector<16x128xf32>
    %c0_54 = arith.constant 0 : index
    %c0_55 = arith.constant 0 : index
    %c0_56 = arith.constant 0 : index
    %77 = vector.load %arg1[%c0_54, %c0_55, %c0_56] : memref<3x16x16xf32, #tpu.memory_space<vmem>>, vector<1x16x16xf32>
    %78 = vector.shape_cast %77 : vector<1x16x16xf32> to vector<16x16xf32>
    %cst_57 = arith.constant dense<0.000000e+00> : vector<16x128xf32>
    %79 = tpu.matmul %78, %75, %cst_57 {dimension_numbers = #tpu.dot_dimension_numbers<[1], [0], [0], [1], [0, 0, 1, 1], [], []>} : vector<16x16xf32>, vector<16x128xf32>, vector<16x128xf32> -> vector<16x128xf32>
    %c0_58 = arith.constant 0 : index
    %c0_59 = arith.constant 0 : index
    %c0_60 = arith.constant 0 : index
    %80 = vector.load %arg3[%c0_58, %c0_59, %c0_60] : memref<9x128x128xf32, #tpu.memory_space<vmem>>, vector<1x128x128xf32>
    %81 = vector.shape_cast %80 : vector<1x128x128xf32> to vector<128x128xf32>
    %cst_61 = arith.constant dense<0.000000e+00> : vector<16x128xf32>
    %82 = tpu.matmul %79, %81, %cst_61 {dimension_numbers = #tpu.dot_dimension_numbers<[1], [0], [0], [1], [0, 0, 1, 1], [], []>} : vector<16x128xf32>, vector<128x128xf32>, vector<16x128xf32> -> vector<16x128xf32>
    %83 = arith.addf %76, %82 : vector<16x128xf32>
    %c1_62 = arith.constant 1 : index
    %c0_63 = arith.constant 0 : index
    %c0_64 = arith.constant 0 : index
    %84 = vector.load %arg3[%c1_62, %c0_63, %c0_64] : memref<9x128x128xf32, #tpu.memory_space<vmem>>, vector<1x128x128xf32>
    %85 = vector.shape_cast %84 : vector<1x128x128xf32> to vector<128x128xf32>
    %cst_65 = arith.constant dense<0.000000e+00> : vector<16x128xf32>
    %86 = tpu.matmul %79, %85, %cst_65 {dimension_numbers = #tpu.dot_dimension_numbers<[1], [0], [0], [1], [0, 0, 1, 1], [], []>} : vector<16x128xf32>, vector<128x128xf32>, vector<16x128xf32> -> vector<16x128xf32>
    %87 = arith.addf %83, %86 : vector<16x128xf32>
    %c2_66 = arith.constant 2 : index
    %c0_67 = arith.constant 0 : index
    %c0_68 = arith.constant 0 : index
    %88 = vector.load %arg3[%c2_66, %c0_67, %c0_68] : memref<9x128x128xf32, #tpu.memory_space<vmem>>, vector<1x128x128xf32>
    %89 = vector.shape_cast %88 : vector<1x128x128xf32> to vector<128x128xf32>
    %cst_69 = arith.constant dense<0.000000e+00> : vector<16x128xf32>
    %90 = tpu.matmul %79, %89, %cst_69 {dimension_numbers = #tpu.dot_dimension_numbers<[1], [0], [0], [1], [0, 0, 1, 1], [], []>} : vector<16x128xf32>, vector<128x128xf32>, vector<16x128xf32> -> vector<16x128xf32>
    %91 = arith.addf %87, %90 : vector<16x128xf32>
    %c1_70 = arith.constant 1 : index
    %c0_71 = arith.constant 0 : index
    %c0_72 = arith.constant 0 : index
    %92 = vector.load %arg1[%c1_70, %c0_71, %c0_72] : memref<3x16x16xf32, #tpu.memory_space<vmem>>, vector<1x16x16xf32>
    %93 = vector.shape_cast %92 : vector<1x16x16xf32> to vector<16x16xf32>
    %cst_73 = arith.constant dense<0.000000e+00> : vector<16x128xf32>
    %94 = tpu.matmul %93, %75, %cst_73 {dimension_numbers = #tpu.dot_dimension_numbers<[1], [0], [0], [1], [0, 0, 1, 1], [], []>} : vector<16x16xf32>, vector<16x128xf32>, vector<16x128xf32> -> vector<16x128xf32>
    %c3_74 = arith.constant 3 : index
    %c0_75 = arith.constant 0 : index
    %c0_76 = arith.constant 0 : index
    %95 = vector.load %arg3[%c3_74, %c0_75, %c0_76] : memref<9x128x128xf32, #tpu.memory_space<vmem>>, vector<1x128x128xf32>
    %96 = vector.shape_cast %95 : vector<1x128x128xf32> to vector<128x128xf32>
    %cst_77 = arith.constant dense<0.000000e+00> : vector<16x128xf32>
    %97 = tpu.matmul %94, %96, %cst_77 {dimension_numbers = #tpu.dot_dimension_numbers<[1], [0], [0], [1], [0, 0, 1, 1], [], []>} : vector<16x128xf32>, vector<128x128xf32>, vector<16x128xf32> -> vector<16x128xf32>
    %98 = arith.addf %91, %97 : vector<16x128xf32>
    %c4_78 = arith.constant 4 : index
    %c0_79 = arith.constant 0 : index
    %c0_80 = arith.constant 0 : index
    %99 = vector.load %arg3[%c4_78, %c0_79, %c0_80] : memref<9x128x128xf32, #tpu.memory_space<vmem>>, vector<1x128x128xf32>
    %100 = vector.shape_cast %99 : vector<1x128x128xf32> to vector<128x128xf32>
    %cst_81 = arith.constant dense<0.000000e+00> : vector<16x128xf32>
    %101 = tpu.matmul %94, %100, %cst_81 {dimension_numbers = #tpu.dot_dimension_numbers<[1], [0], [0], [1], [0, 0, 1, 1], [], []>} : vector<16x128xf32>, vector<128x128xf32>, vector<16x128xf32> -> vector<16x128xf32>
    %102 = arith.addf %98, %101 : vector<16x128xf32>
    %c5_82 = arith.constant 5 : index
    %c0_83 = arith.constant 0 : index
    %c0_84 = arith.constant 0 : index
    %103 = vector.load %arg3[%c5_82, %c0_83, %c0_84] : memref<9x128x128xf32, #tpu.memory_space<vmem>>, vector<1x128x128xf32>
    %104 = vector.shape_cast %103 : vector<1x128x128xf32> to vector<128x128xf32>
    %cst_85 = arith.constant dense<0.000000e+00> : vector<16x128xf32>
    %105 = tpu.matmul %94, %104, %cst_85 {dimension_numbers = #tpu.dot_dimension_numbers<[1], [0], [0], [1], [0, 0, 1, 1], [], []>} : vector<16x128xf32>, vector<128x128xf32>, vector<16x128xf32> -> vector<16x128xf32>
    %106 = arith.addf %102, %105 : vector<16x128xf32>
    %c2_86 = arith.constant 2 : index
    %c0_87 = arith.constant 0 : index
    %c0_88 = arith.constant 0 : index
    %107 = vector.load %arg1[%c2_86, %c0_87, %c0_88] : memref<3x16x16xf32, #tpu.memory_space<vmem>>, vector<1x16x16xf32>
    %108 = vector.shape_cast %107 : vector<1x16x16xf32> to vector<16x16xf32>
    %cst_89 = arith.constant dense<0.000000e+00> : vector<16x128xf32>
    %109 = tpu.matmul %108, %75, %cst_89 {dimension_numbers = #tpu.dot_dimension_numbers<[1], [0], [0], [1], [0, 0, 1, 1], [], []>} : vector<16x16xf32>, vector<16x128xf32>, vector<16x128xf32> -> vector<16x128xf32>
    %c6_90 = arith.constant 6 : index
    %c0_91 = arith.constant 0 : index
    %c0_92 = arith.constant 0 : index
    %110 = vector.load %arg3[%c6_90, %c0_91, %c0_92] : memref<9x128x128xf32, #tpu.memory_space<vmem>>, vector<1x128x128xf32>
    %111 = vector.shape_cast %110 : vector<1x128x128xf32> to vector<128x128xf32>
    %cst_93 = arith.constant dense<0.000000e+00> : vector<16x128xf32>
    %112 = tpu.matmul %109, %111, %cst_93 {dimension_numbers = #tpu.dot_dimension_numbers<[1], [0], [0], [1], [0, 0, 1, 1], [], []>} : vector<16x128xf32>, vector<128x128xf32>, vector<16x128xf32> -> vector<16x128xf32>
    %113 = arith.addf %106, %112 : vector<16x128xf32>
    %c7_94 = arith.constant 7 : index
    %c0_95 = arith.constant 0 : index
    %c0_96 = arith.constant 0 : index
    %114 = vector.load %arg3[%c7_94, %c0_95, %c0_96] : memref<9x128x128xf32, #tpu.memory_space<vmem>>, vector<1x128x128xf32>
    %115 = vector.shape_cast %114 : vector<1x128x128xf32> to vector<128x128xf32>
    %cst_97 = arith.constant dense<0.000000e+00> : vector<16x128xf32>
    %116 = tpu.matmul %109, %115, %cst_97 {dimension_numbers = #tpu.dot_dimension_numbers<[1], [0], [0], [1], [0, 0, 1, 1], [], []>} : vector<16x128xf32>, vector<128x128xf32>, vector<16x128xf32> -> vector<16x128xf32>
    %117 = arith.addf %113, %116 : vector<16x128xf32>
    %c8_98 = arith.constant 8 : index
    %c0_99 = arith.constant 0 : index
    %c0_100 = arith.constant 0 : index
    %118 = vector.load %arg3[%c8_98, %c0_99, %c0_100] : memref<9x128x128xf32, #tpu.memory_space<vmem>>, vector<1x128x128xf32>
    %119 = vector.shape_cast %118 : vector<1x128x128xf32> to vector<128x128xf32>
    %cst_101 = arith.constant dense<0.000000e+00> : vector<16x128xf32>
    %120 = tpu.matmul %109, %119, %cst_101 {dimension_numbers = #tpu.dot_dimension_numbers<[1], [0], [0], [1], [0, 0, 1, 1], [], []>} : vector<16x128xf32>, vector<128x128xf32>, vector<16x128xf32> -> vector<16x128xf32>
    %121 = arith.addf %117, %120 : vector<16x128xf32>
    %cst_102 = arith.constant dense<0.000000e+00> : vector<128xf32>
    %122 = vector.multi_reduction <add>, %121, %cst_102 [0] : vector<16x128xf32> to vector<128xf32>
    %123 = vector.shape_cast %122 : vector<128xf32> to vector<1x128xf32>
    %124 = arith.mulf %121, %121 : vector<16x128xf32>
    %cst_103 = arith.constant dense<0.000000e+00> : vector<128xf32>
    %125 = vector.multi_reduction <add>, %124, %cst_103 [0] : vector<16x128xf32> to vector<128xf32>
    %126 = vector.shape_cast %125 : vector<128xf32> to vector<1x128xf32>
    %cst_104 = arith.constant dense<0.000000e+00> : vector<1x128xf32>
    %127 = tpu.matmul %123, %0, %cst_104 {dimension_numbers = #tpu.dot_dimension_numbers<[1], [0], [0], [1], [0, 0, 1, 1], [], []>} : vector<1x128xf32>, vector<128x128xf32>, vector<1x128xf32> -> vector<1x128xf32>
    %cst_105 = arith.constant 7.812500e-03 : f32
    %128 = vector.broadcast %cst_105 : f32 to vector<1x128xf32>
    %129 = arith.mulf %127, %128 : vector<1x128xf32>
    %cst_106 = arith.constant dense<0.000000e+00> : vector<1x128xf32>
    %130 = tpu.matmul %126, %0, %cst_106 {dimension_numbers = #tpu.dot_dimension_numbers<[1], [0], [0], [1], [0, 0, 1, 1], [], []>} : vector<1x128xf32>, vector<128x128xf32>, vector<1x128xf32> -> vector<1x128xf32>
    %cst_107 = arith.constant 7.812500e-03 : f32
    %131 = vector.broadcast %cst_107 : f32 to vector<1x128xf32>
    %132 = arith.mulf %130, %131 : vector<1x128xf32>
    %133 = arith.mulf %129, %129 : vector<1x128xf32>
    %134 = arith.subf %132, %133 : vector<1x128xf32>
    %c0_108 = arith.constant 0 : index
    %c0_109 = arith.constant 0 : index
    %135 = vector.load %arg6[%c0_108, %c0_109] : memref<2x128xf32, #tpu.memory_space<vmem>>, vector<2x128xf32>
    %136 = vector.extract_strided_slice %135 {offsets = [0, 0], sizes = [1, 128], strides = [1, 1]} : vector<2x128xf32> to vector<1x128xf32>
    %cst_110 = arith.constant 9.99999974E-6 : f32
    %137 = vector.broadcast %cst_110 : f32 to vector<1x128xf32>
    %138 = arith.addf %134, %137 : vector<1x128xf32>
    %139 = math.rsqrt %138 : vector<1x128xf32>
    %140 = arith.mulf %136, %139 : vector<1x128xf32>
    %141 = vector.extract_strided_slice %135 {offsets = [1, 0], sizes = [1, 128], strides = [1, 1]} : vector<2x128xf32> to vector<1x128xf32>
    %142 = arith.mulf %129, %140 : vector<1x128xf32>
    %143 = arith.subf %141, %142 : vector<1x128xf32>
    %144 = vector.broadcast %140 : vector<1x128xf32> to vector<16x128xf32>
    %145 = arith.mulf %121, %144 : vector<16x128xf32>
    %146 = vector.broadcast %143 : vector<1x128xf32> to vector<16x128xf32>
    %147 = arith.addf %145, %146 : vector<16x128xf32>
    %cst_111 = arith.constant 0.000000e+00 : f32
    %148 = vector.broadcast %cst_111 : f32 to vector<16x128xf32>
    %149 = arith.maximumf %147, %148 : vector<16x128xf32>
    %cst_112 = arith.constant 0.000000e+00 : f32
    %150 = vector.broadcast %cst_112 : f32 to vector<2x64xf32>
    %c0_113 = arith.constant 0 : index
    %c0_114 = arith.constant 0 : index
    %c0_115 = arith.constant 0 : index
    %151 = vector.load %arg7[%c0_113, %c0_114, %c0_115] : memref<8x2x16xf32, #tpu.memory_space<vmem>>, vector<1x2x16xf32>
    %152 = vector.shape_cast %151 : vector<1x2x16xf32> to vector<2x16xf32>
    %cst_116 = arith.constant dense<0.000000e+00> : vector<2x128xf32>
    %153 = tpu.matmul %152, %149, %cst_116 {dimension_numbers = #tpu.dot_dimension_numbers<[1], [0], [0], [1], [0, 0, 1, 1], [], []>} : vector<2x16xf32>, vector<16x128xf32>, vector<2x128xf32> -> vector<2x128xf32>
    %c0_117 = arith.constant 0 : index
    %c0_118 = arith.constant 0 : index
    %c0_119 = arith.constant 0 : index
    %154 = vector.load %arg8[%c0_117, %c0_118, %c0_119] : memref<8x128x64xf32, #tpu.memory_space<vmem>>, vector<1x128x64xf32>
    %155 = vector.shape_cast %154 : vector<1x128x64xf32> to vector<128x64xf32>
    %cst_120 = arith.constant dense<0.000000e+00> : vector<2x64xf32>
    %156 = tpu.matmul %153, %155, %cst_120 {dimension_numbers = #tpu.dot_dimension_numbers<[1], [0], [0], [1], [0, 0, 1, 1], [], []>} : vector<2x128xf32>, vector<128x64xf32>, vector<2x64xf32> -> vector<2x64xf32>
    %157 = arith.addf %150, %156 : vector<2x64xf32>
    %c1_121 = arith.constant 1 : index
    %c0_122 = arith.constant 0 : index
    %c0_123 = arith.constant 0 : index
    %158 = vector.load %arg7[%c1_121, %c0_122, %c0_123] : memref<8x2x16xf32, #tpu.memory_space<vmem>>, vector<1x2x16xf32>
    %159 = vector.shape_cast %158 : vector<1x2x16xf32> to vector<2x16xf32>
    %cst_124 = arith.constant dense<0.000000e+00> : vector<2x128xf32>
    %160 = tpu.matmul %159, %149, %cst_124 {dimension_numbers = #tpu.dot_dimension_numbers<[1], [0], [0], [1], [0, 0, 1, 1], [], []>} : vector<2x16xf32>, vector<16x128xf32>, vector<2x128xf32> -> vector<2x128xf32>
    %c1_125 = arith.constant 1 : index
    %c0_126 = arith.constant 0 : index
    %c0_127 = arith.constant 0 : index
    %161 = vector.load %arg8[%c1_125, %c0_126, %c0_127] : memref<8x128x64xf32, #tpu.memory_space<vmem>>, vector<1x128x64xf32>
    %162 = vector.shape_cast %161 : vector<1x128x64xf32> to vector<128x64xf32>
    %cst_128 = arith.constant dense<0.000000e+00> : vector<2x64xf32>
    %163 = tpu.matmul %160, %162, %cst_128 {dimension_numbers = #tpu.dot_dimension_numbers<[1], [0], [0], [1], [0, 0, 1, 1], [], []>} : vector<2x128xf32>, vector<128x64xf32>, vector<2x64xf32> -> vector<2x64xf32>
    %164 = arith.addf %157, %163 : vector<2x64xf32>
    %c2_129 = arith.constant 2 : index
    %c0_130 = arith.constant 0 : index
    %c0_131 = arith.constant 0 : index
    %165 = vector.load %arg7[%c2_129, %c0_130, %c0_131] : memref<8x2x16xf32, #tpu.memory_space<vmem>>, vector<1x2x16xf32>
    %166 = vector.shape_cast %165 : vector<1x2x16xf32> to vector<2x16xf32>
    %cst_132 = arith.constant dense<0.000000e+00> : vector<2x128xf32>
    %167 = tpu.matmul %166, %149, %cst_132 {dimension_numbers = #tpu.dot_dimension_numbers<[1], [0], [0], [1], [0, 0, 1, 1], [], []>} : vector<2x16xf32>, vector<16x128xf32>, vector<2x128xf32> -> vector<2x128xf32>
    %c2_133 = arith.constant 2 : index
    %c0_134 = arith.constant 0 : index
    %c0_135 = arith.constant 0 : index
    %168 = vector.load %arg8[%c2_133, %c0_134, %c0_135] : memref<8x128x64xf32, #tpu.memory_space<vmem>>, vector<1x128x64xf32>
    %169 = vector.shape_cast %168 : vector<1x128x64xf32> to vector<128x64xf32>
    %cst_136 = arith.constant dense<0.000000e+00> : vector<2x64xf32>
    %170 = tpu.matmul %167, %169, %cst_136 {dimension_numbers = #tpu.dot_dimension_numbers<[1], [0], [0], [1], [0, 0, 1, 1], [], []>} : vector<2x128xf32>, vector<128x64xf32>, vector<2x64xf32> -> vector<2x64xf32>
    %171 = arith.addf %164, %170 : vector<2x64xf32>
    %c3_137 = arith.constant 3 : index
    %c0_138 = arith.constant 0 : index
    %c0_139 = arith.constant 0 : index
    %172 = vector.load %arg7[%c3_137, %c0_138, %c0_139] : memref<8x2x16xf32, #tpu.memory_space<vmem>>, vector<1x2x16xf32>
    %173 = vector.shape_cast %172 : vector<1x2x16xf32> to vector<2x16xf32>
    %cst_140 = arith.constant dense<0.000000e+00> : vector<2x128xf32>
    %174 = tpu.matmul %173, %149, %cst_140 {dimension_numbers = #tpu.dot_dimension_numbers<[1], [0], [0], [1], [0, 0, 1, 1], [], []>} : vector<2x16xf32>, vector<16x128xf32>, vector<2x128xf32> -> vector<2x128xf32>
    %c3_141 = arith.constant 3 : index
    %c0_142 = arith.constant 0 : index
    %c0_143 = arith.constant 0 : index
    %175 = vector.load %arg8[%c3_141, %c0_142, %c0_143] : memref<8x128x64xf32, #tpu.memory_space<vmem>>, vector<1x128x64xf32>
    %176 = vector.shape_cast %175 : vector<1x128x64xf32> to vector<128x64xf32>
    %cst_144 = arith.constant dense<0.000000e+00> : vector<2x64xf32>
    %177 = tpu.matmul %174, %176, %cst_144 {dimension_numbers = #tpu.dot_dimension_numbers<[1], [0], [0], [1], [0, 0, 1, 1], [], []>} : vector<2x128xf32>, vector<128x64xf32>, vector<2x64xf32> -> vector<2x64xf32>
    %178 = arith.addf %171, %177 : vector<2x64xf32>
    %c4_145 = arith.constant 4 : index
    %c0_146 = arith.constant 0 : index
    %c0_147 = arith.constant 0 : index
    %179 = vector.load %arg7[%c4_145, %c0_146, %c0_147] : memref<8x2x16xf32, #tpu.memory_space<vmem>>, vector<1x2x16xf32>
    %180 = vector.shape_cast %179 : vector<1x2x16xf32> to vector<2x16xf32>
    %cst_148 = arith.constant dense<0.000000e+00> : vector<2x128xf32>
    %181 = tpu.matmul %180, %149, %cst_148 {dimension_numbers = #tpu.dot_dimension_numbers<[1], [0], [0], [1], [0, 0, 1, 1], [], []>} : vector<2x16xf32>, vector<16x128xf32>, vector<2x128xf32> -> vector<2x128xf32>
    %c4_149 = arith.constant 4 : index
    %c0_150 = arith.constant 0 : index
    %c0_151 = arith.constant 0 : index
    %182 = vector.load %arg8[%c4_149, %c0_150, %c0_151] : memref<8x128x64xf32, #tpu.memory_space<vmem>>, vector<1x128x64xf32>
    %183 = vector.shape_cast %182 : vector<1x128x64xf32> to vector<128x64xf32>
    %cst_152 = arith.constant dense<0.000000e+00> : vector<2x64xf32>
    %184 = tpu.matmul %181, %183, %cst_152 {dimension_numbers = #tpu.dot_dimension_numbers<[1], [0], [0], [1], [0, 0, 1, 1], [], []>} : vector<2x128xf32>, vector<128x64xf32>, vector<2x64xf32> -> vector<2x64xf32>
    %185 = arith.addf %178, %184 : vector<2x64xf32>
    %c5_153 = arith.constant 5 : index
    %c0_154 = arith.constant 0 : index
    %c0_155 = arith.constant 0 : index
    %186 = vector.load %arg7[%c5_153, %c0_154, %c0_155] : memref<8x2x16xf32, #tpu.memory_space<vmem>>, vector<1x2x16xf32>
    %187 = vector.shape_cast %186 : vector<1x2x16xf32> to vector<2x16xf32>
    %cst_156 = arith.constant dense<0.000000e+00> : vector<2x128xf32>
    %188 = tpu.matmul %187, %149, %cst_156 {dimension_numbers = #tpu.dot_dimension_numbers<[1], [0], [0], [1], [0, 0, 1, 1], [], []>} : vector<2x16xf32>, vector<16x128xf32>, vector<2x128xf32> -> vector<2x128xf32>
    %c5_157 = arith.constant 5 : index
    %c0_158 = arith.constant 0 : index
    %c0_159 = arith.constant 0 : index
    %189 = vector.load %arg8[%c5_157, %c0_158, %c0_159] : memref<8x128x64xf32, #tpu.memory_space<vmem>>, vector<1x128x64xf32>
    %190 = vector.shape_cast %189 : vector<1x128x64xf32> to vector<128x64xf32>
    %cst_160 = arith.constant dense<0.000000e+00> : vector<2x64xf32>
    %191 = tpu.matmul %188, %190, %cst_160 {dimension_numbers = #tpu.dot_dimension_numbers<[1], [0], [0], [1], [0, 0, 1, 1], [], []>} : vector<2x128xf32>, vector<128x64xf32>, vector<2x64xf32> -> vector<2x64xf32>
    %192 = arith.addf %185, %191 : vector<2x64xf32>
    %c6_161 = arith.constant 6 : index
    %c0_162 = arith.constant 0 : index
    %c0_163 = arith.constant 0 : index
    %193 = vector.load %arg7[%c6_161, %c0_162, %c0_163] : memref<8x2x16xf32, #tpu.memory_space<vmem>>, vector<1x2x16xf32>
    %194 = vector.shape_cast %193 : vector<1x2x16xf32> to vector<2x16xf32>
    %cst_164 = arith.constant dense<0.000000e+00> : vector<2x128xf32>
    %195 = tpu.matmul %194, %149, %cst_164 {dimension_numbers = #tpu.dot_dimension_numbers<[1], [0], [0], [1], [0, 0, 1, 1], [], []>} : vector<2x16xf32>, vector<16x128xf32>, vector<2x128xf32> -> vector<2x128xf32>
    %c6_165 = arith.constant 6 : index
    %c0_166 = arith.constant 0 : index
    %c0_167 = arith.constant 0 : index
    %196 = vector.load %arg8[%c6_165, %c0_166, %c0_167] : memref<8x128x64xf32, #tpu.memory_space<vmem>>, vector<1x128x64xf32>
    %197 = vector.shape_cast %196 : vector<1x128x64xf32> to vector<128x64xf32>
    %cst_168 = arith.constant dense<0.000000e+00> : vector<2x64xf32>
    %198 = tpu.matmul %195, %197, %cst_168 {dimension_numbers = #tpu.dot_dimension_numbers<[1], [0], [0], [1], [0, 0, 1, 1], [], []>} : vector<2x128xf32>, vector<128x64xf32>, vector<2x64xf32> -> vector<2x64xf32>
    %199 = arith.addf %192, %198 : vector<2x64xf32>
    %c7_169 = arith.constant 7 : index
    %c0_170 = arith.constant 0 : index
    %c0_171 = arith.constant 0 : index
    %200 = vector.load %arg7[%c7_169, %c0_170, %c0_171] : memref<8x2x16xf32, #tpu.memory_space<vmem>>, vector<1x2x16xf32>
    %201 = vector.shape_cast %200 : vector<1x2x16xf32> to vector<2x16xf32>
    %cst_172 = arith.constant dense<0.000000e+00> : vector<2x128xf32>
    %202 = tpu.matmul %201, %149, %cst_172 {dimension_numbers = #tpu.dot_dimension_numbers<[1], [0], [0], [1], [0, 0, 1, 1], [], []>} : vector<2x16xf32>, vector<16x128xf32>, vector<2x128xf32> -> vector<2x128xf32>
    %c7_173 = arith.constant 7 : index
    %c0_174 = arith.constant 0 : index
    %c0_175 = arith.constant 0 : index
    %203 = vector.load %arg8[%c7_173, %c0_174, %c0_175] : memref<8x128x64xf32, #tpu.memory_space<vmem>>, vector<1x128x64xf32>
    %204 = vector.shape_cast %203 : vector<1x128x64xf32> to vector<128x64xf32>
    %cst_176 = arith.constant dense<0.000000e+00> : vector<2x64xf32>
    %205 = tpu.matmul %202, %204, %cst_176 {dimension_numbers = #tpu.dot_dimension_numbers<[1], [0], [0], [1], [0, 0, 1, 1], [], []>} : vector<2x128xf32>, vector<128x64xf32>, vector<2x64xf32> -> vector<2x64xf32>
    %206 = arith.addf %199, %205 : vector<2x64xf32>
    %cst_177 = arith.constant dense<0.000000e+00> : vector<64xf32>
    %207 = vector.multi_reduction <add>, %206, %cst_177 [0] : vector<2x64xf32> to vector<64xf32>
    %208 = vector.shape_cast %207 : vector<64xf32> to vector<1x64xf32>
    %cst_178 = arith.constant 5.000000e-01 : f32
    %209 = vector.broadcast %cst_178 : f32 to vector<1x64xf32>
    %210 = arith.mulf %208, %209 : vector<1x64xf32>
    %211 = arith.mulf %206, %206 : vector<2x64xf32>
    %cst_179 = arith.constant dense<0.000000e+00> : vector<64xf32>
    %212 = vector.multi_reduction <add>, %211, %cst_179 [0] : vector<2x64xf32> to vector<64xf32>
    %213 = vector.shape_cast %212 : vector<64xf32> to vector<1x64xf32>
    %cst_180 = arith.constant 5.000000e-01 : f32
    %214 = vector.broadcast %cst_180 : f32 to vector<1x64xf32>
    %215 = arith.mulf %213, %214 : vector<1x64xf32>
    %216 = arith.mulf %210, %210 : vector<1x64xf32>
    %217 = arith.subf %215, %216 : vector<1x64xf32>
    %c0_181 = arith.constant 0 : index
    %c0_182 = arith.constant 0 : index
    %218 = vector.load %arg9[%c0_181, %c0_182] : memref<2x64xf32, #tpu.memory_space<vmem>>, vector<2x64xf32>
    %219 = vector.extract_strided_slice %218 {offsets = [0, 0], sizes = [1, 64], strides = [1, 1]} : vector<2x64xf32> to vector<1x64xf32>
    %cst_183 = arith.constant 9.99999974E-6 : f32
    %220 = vector.broadcast %cst_183 : f32 to vector<1x64xf32>
    %221 = arith.addf %217, %220 : vector<1x64xf32>
    %222 = math.rsqrt %221 : vector<1x64xf32>
    %223 = arith.mulf %219, %222 : vector<1x64xf32>
    %224 = vector.extract_strided_slice %218 {offsets = [1, 0], sizes = [1, 64], strides = [1, 1]} : vector<2x64xf32> to vector<1x64xf32>
    %225 = arith.mulf %210, %223 : vector<1x64xf32>
    %226 = arith.subf %224, %225 : vector<1x64xf32>
    %227 = vector.broadcast %223 : vector<1x64xf32> to vector<2x64xf32>
    %228 = arith.mulf %206, %227 : vector<2x64xf32>
    %229 = vector.broadcast %226 : vector<1x64xf32> to vector<2x64xf32>
    %230 = arith.addf %228, %229 : vector<2x64xf32>
    %cst_184 = arith.constant 0.000000e+00 : f32
    %231 = vector.broadcast %cst_184 : f32 to vector<2x64xf32>
    %232 = arith.maximumf %230, %231 : vector<2x64xf32>
    %c0_185 = arith.constant 0 : index
    %c0_186 = arith.constant 0 : index
    %233 = vector.load %arg10[%c0_185, %c0_186] : memref<8x2xf32, #tpu.memory_space<vmem>>, vector<8x2xf32>
    %cst_187 = arith.constant dense<0.000000e+00> : vector<8x64xf32>
    %234 = tpu.matmul %233, %232, %cst_187 {dimension_numbers = #tpu.dot_dimension_numbers<[1], [0], [0], [1], [0, 0, 1, 1], [], []>} : vector<8x2xf32>, vector<2x64xf32>, vector<8x64xf32> -> vector<8x64xf32>
    %c0_188 = arith.constant 0 : index
    %c0_189 = arith.constant 0 : index
    %235 = vector.load %arg11[%c0_188, %c0_189] : memref<8x64xf32, #tpu.memory_space<vmem>>, vector<8x64xf32>
    %236 = arith.mulf %234, %235 : vector<8x64xf32>
    %c0_190 = arith.constant 0 : index
    %c0_191 = arith.constant 0 : index
    %237 = vector.load %arg12[%c0_190, %c0_191] : memref<64x16xf32, #tpu.memory_space<vmem>>, vector<64x16xf32>
    %cst_192 = arith.constant dense<0.000000e+00> : vector<8x16xf32>
    %238 = tpu.matmul %236, %237, %cst_192 {dimension_numbers = #tpu.dot_dimension_numbers<[1], [0], [0], [1], [0, 0, 1, 1], [], []>} : vector<8x64xf32>, vector<64x16xf32>, vector<8x16xf32> -> vector<8x16xf32>
    %c0_193 = arith.constant 0 : index
    %c0_194 = arith.constant 0 : index
    %239 = vector.load %arg13[%c0_193, %c0_194] : memref<16x128xf32, #tpu.memory_space<vmem>>, vector<16x128xf32>
    %cst_195 = arith.constant dense<0.000000e+00> : vector<8x128xf32>
    %240 = tpu.matmul %238, %239, %cst_195 {dimension_numbers = #tpu.dot_dimension_numbers<[1], [0], [0], [1], [0, 0, 1, 1], [], []>} : vector<8x16xf32>, vector<16x128xf32>, vector<8x128xf32> -> vector<8x128xf32>
    %c0_196 = arith.constant 0 : index
    %c0_197 = arith.constant 0 : index
    %241 = vector.load %arg14[%c0_196, %c0_197] : memref<1x128xf32, #tpu.memory_space<vmem>>, vector<1x128xf32>
    %242 = vector.broadcast %241 : vector<1x128xf32> to vector<8x128xf32>
    %243 = arith.addf %240, %242 : vector<8x128xf32>
    %cst_198 = arith.constant 0.000000e+00 : f32
    %244 = vector.broadcast %cst_198 : f32 to vector<2x32xf32>
    %cst_199 = arith.constant 0.000000e+00 : f32
    %245 = vector.broadcast %cst_199 : f32 to vector<2x32xf32>
    %246 = vector.extract_strided_slice %243 {offsets = [0, 0], sizes = [2, 128], strides = [1, 1]} : vector<8x128xf32> to vector<2x128xf32>
    %c0_200 = arith.constant 0 : index
    %c0_201 = arith.constant 0 : index
    %247 = vector.load %arg15[%c0_200, %c0_201] : memref<32x128xf32, #tpu.memory_space<vmem>>, vector<32x128xf32>
    %cst_202 = arith.constant dense<0.000000e+00> : vector<2x128xf32>
    %248 = tpu.matmul %244, %247, %cst_202 {dimension_numbers = #tpu.dot_dimension_numbers<[1], [0], [0], [1], [0, 0, 1, 1], [], []>} : vector<2x32xf32>, vector<32x128xf32>, vector<2x128xf32> -> vector<2x128xf32>
    %249 = arith.addf %246, %248 : vector<2x128xf32>
    %cst_203 = arith.constant 0.000000e+00 : f32
    %250 = vector.broadcast %cst_203 : f32 to vector<2x128xf32>
    %251 = arith.subf %250, %249 : vector<2x128xf32>
    %252 = math.exp %251 : vector<2x128xf32>
    %cst_204 = arith.constant 1.000000e+00 : f32
    %253 = vector.broadcast %cst_204 : f32 to vector<2x128xf32>
    %254 = arith.addf %253, %252 : vector<2x128xf32>
    %cst_205 = arith.constant 1.000000e+00 : f32
    %255 = vector.broadcast %cst_205 : f32 to vector<2x128xf32>
    %256 = arith.divf %255, %254 : vector<2x128xf32>
    %257 = math.tanh %249 : vector<2x128xf32>
    %258 = vector.extract_strided_slice %256 {offsets = [0, 32], sizes = [2, 32], strides = [1, 1]} : vector<2x128xf32> to vector<2x32xf32>
    %259 = arith.mulf %258, %245 : vector<2x32xf32>
    %260 = vector.extract_strided_slice %256 {offsets = [0, 0], sizes = [2, 32], strides = [1, 1]} : vector<2x128xf32> to vector<2x32xf32>
    %261 = vector.extract_strided_slice %257 {offsets = [0, 64], sizes = [2, 32], strides = [1, 1]} : vector<2x128xf32> to vector<2x32xf32>
    %262 = arith.mulf %260, %261 : vector<2x32xf32>
    %263 = arith.addf %259, %262 : vector<2x32xf32>
    %264 = vector.extract_strided_slice %256 {offsets = [0, 96], sizes = [2, 32], strides = [1, 1]} : vector<2x128xf32> to vector<2x32xf32>
    %265 = math.tanh %263 : vector<2x32xf32>
    %266 = arith.mulf %264, %265 : vector<2x32xf32>
    %267 = vector.extract_strided_slice %243 {offsets = [2, 0], sizes = [2, 128], strides = [1, 1]} : vector<8x128xf32> to vector<2x128xf32>
    %c0_206 = arith.constant 0 : index
    %c0_207 = arith.constant 0 : index
    %268 = vector.load %arg15[%c0_206, %c0_207] : memref<32x128xf32, #tpu.memory_space<vmem>>, vector<32x128xf32>
    %cst_208 = arith.constant dense<0.000000e+00> : vector<2x128xf32>
    %269 = tpu.matmul %266, %268, %cst_208 {dimension_numbers = #tpu.dot_dimension_numbers<[1], [0], [0], [1], [0, 0, 1, 1], [], []>} : vector<2x32xf32>, vector<32x128xf32>, vector<2x128xf32> -> vector<2x128xf32>
    %270 = arith.addf %267, %269 : vector<2x128xf32>
    %cst_209 = arith.constant 0.000000e+00 : f32
    %271 = vector.broadcast %cst_209 : f32 to vector<2x128xf32>
    %272 = arith.subf %271, %270 : vector<2x128xf32>
    %273 = math.exp %272 : vector<2x128xf32>
    %cst_210 = arith.constant 1.000000e+00 : f32
    %274 = vector.broadcast %cst_210 : f32 to vector<2x128xf32>
    %275 = arith.addf %274, %273 : vector<2x128xf32>
    %cst_211 = arith.constant 1.000000e+00 : f32
    %276 = vector.broadcast %cst_211 : f32 to vector<2x128xf32>
    %277 = arith.divf %276, %275 : vector<2x128xf32>
    %278 = math.tanh %270 : vector<2x128xf32>
    %279 = vector.extract_strided_slice %277 {offsets = [0, 32], sizes = [2, 32], strides = [1, 1]} : vector<2x128xf32> to vector<2x32xf32>
    %280 = arith.mulf %279, %263 : vector<2x32xf32>
    %281 = vector.extract_strided_slice %277 {offsets = [0, 0], sizes = [2, 32], strides = [1, 1]} : vector<2x128xf32> to vector<2x32xf32>
    %282 = vector.extract_strided_slice %278 {offsets = [0, 64], sizes = [2, 32], strides = [1, 1]} : vector<2x128xf32> to vector<2x32xf32>
    %283 = arith.mulf %281, %282 : vector<2x32xf32>
    %284 = arith.addf %280, %283 : vector<2x32xf32>
    %285 = vector.extract_strided_slice %277 {offsets = [0, 96], sizes = [2, 32], strides = [1, 1]} : vector<2x128xf32> to vector<2x32xf32>
    %286 = math.tanh %284 : vector<2x32xf32>
    %287 = arith.mulf %285, %286 : vector<2x32xf32>
    %288 = vector.extract_strided_slice %243 {offsets = [4, 0], sizes = [2, 128], strides = [1, 1]} : vector<8x128xf32> to vector<2x128xf32>
    %c0_212 = arith.constant 0 : index
    %c0_213 = arith.constant 0 : index
    %289 = vector.load %arg15[%c0_212, %c0_213] : memref<32x128xf32, #tpu.memory_space<vmem>>, vector<32x128xf32>
    %cst_214 = arith.constant dense<0.000000e+00> : vector<2x128xf32>
    %290 = tpu.matmul %287, %289, %cst_214 {dimension_numbers = #tpu.dot_dimension_numbers<[1], [0], [0], [1], [0, 0, 1, 1], [], []>} : vector<2x32xf32>, vector<32x128xf32>, vector<2x128xf32> -> vector<2x128xf32>
    %291 = arith.addf %288, %290 : vector<2x128xf32>
    %cst_215 = arith.constant 0.000000e+00 : f32
    %292 = vector.broadcast %cst_215 : f32 to vector<2x128xf32>
    %293 = arith.subf %292, %291 : vector<2x128xf32>
    %294 = math.exp %293 : vector<2x128xf32>
    %cst_216 = arith.constant 1.000000e+00 : f32
    %295 = vector.broadcast %cst_216 : f32 to vector<2x128xf32>
    %296 = arith.addf %295, %294 : vector<2x128xf32>
    %cst_217 = arith.constant 1.000000e+00 : f32
    %297 = vector.broadcast %cst_217 : f32 to vector<2x128xf32>
    %298 = arith.divf %297, %296 : vector<2x128xf32>
    %299 = math.tanh %291 : vector<2x128xf32>
    %300 = vector.extract_strided_slice %298 {offsets = [0, 32], sizes = [2, 32], strides = [1, 1]} : vector<2x128xf32> to vector<2x32xf32>
    %301 = arith.mulf %300, %284 : vector<2x32xf32>
    %302 = vector.extract_strided_slice %298 {offsets = [0, 0], sizes = [2, 32], strides = [1, 1]} : vector<2x128xf32> to vector<2x32xf32>
    %303 = vector.extract_strided_slice %299 {offsets = [0, 64], sizes = [2, 32], strides = [1, 1]} : vector<2x128xf32> to vector<2x32xf32>
    %304 = arith.mulf %302, %303 : vector<2x32xf32>
    %305 = arith.addf %301, %304 : vector<2x32xf32>
    %306 = vector.extract_strided_slice %298 {offsets = [0, 96], sizes = [2, 32], strides = [1, 1]} : vector<2x128xf32> to vector<2x32xf32>
    %307 = math.tanh %305 : vector<2x32xf32>
    %308 = arith.mulf %306, %307 : vector<2x32xf32>
    %309 = vector.extract_strided_slice %243 {offsets = [6, 0], sizes = [2, 128], strides = [1, 1]} : vector<8x128xf32> to vector<2x128xf32>
    %c0_218 = arith.constant 0 : index
    %c0_219 = arith.constant 0 : index
    %310 = vector.load %arg15[%c0_218, %c0_219] : memref<32x128xf32, #tpu.memory_space<vmem>>, vector<32x128xf32>
    %cst_220 = arith.constant dense<0.000000e+00> : vector<2x128xf32>
    %311 = tpu.matmul %308, %310, %cst_220 {dimension_numbers = #tpu.dot_dimension_numbers<[1], [0], [0], [1], [0, 0, 1, 1], [], []>} : vector<2x32xf32>, vector<32x128xf32>, vector<2x128xf32> -> vector<2x128xf32>
    %312 = arith.addf %309, %311 : vector<2x128xf32>
    %cst_221 = arith.constant 0.000000e+00 : f32
    %313 = vector.broadcast %cst_221 : f32 to vector<2x128xf32>
    %314 = arith.subf %313, %312 : vector<2x128xf32>
    %315 = math.exp %314 : vector<2x128xf32>
    %cst_222 = arith.constant 1.000000e+00 : f32
    %316 = vector.broadcast %cst_222 : f32 to vector<2x128xf32>
    %317 = arith.addf %316, %315 : vector<2x128xf32>
    %cst_223 = arith.constant 1.000000e+00 : f32
    %318 = vector.broadcast %cst_223 : f32 to vector<2x128xf32>
    %319 = arith.divf %318, %317 : vector<2x128xf32>
    %320 = math.tanh %312 : vector<2x128xf32>
    %321 = vector.extract_strided_slice %319 {offsets = [0, 32], sizes = [2, 32], strides = [1, 1]} : vector<2x128xf32> to vector<2x32xf32>
    %322 = arith.mulf %321, %305 : vector<2x32xf32>
    %323 = vector.extract_strided_slice %319 {offsets = [0, 0], sizes = [2, 32], strides = [1, 1]} : vector<2x128xf32> to vector<2x32xf32>
    %324 = vector.extract_strided_slice %320 {offsets = [0, 64], sizes = [2, 32], strides = [1, 1]} : vector<2x128xf32> to vector<2x32xf32>
    %325 = arith.mulf %323, %324 : vector<2x32xf32>
    %326 = arith.addf %322, %325 : vector<2x32xf32>
    %327 = vector.extract_strided_slice %319 {offsets = [0, 96], sizes = [2, 32], strides = [1, 1]} : vector<2x128xf32> to vector<2x32xf32>
    %328 = math.tanh %326 : vector<2x32xf32>
    %329 = arith.mulf %327, %328 : vector<2x32xf32>
    %c0_224 = arith.constant 0 : index
    %c0_225 = arith.constant 0 : index
    %330 = vector.load %arg16[%c0_224, %c0_225] : memref<32x5xf32, #tpu.memory_space<vmem>>, vector<32x5xf32>
    %cst_226 = arith.constant dense<0.000000e+00> : vector<2x5xf32>
    %331 = tpu.matmul %329, %330, %cst_226 {dimension_numbers = #tpu.dot_dimension_numbers<[1], [0], [0], [1], [0, 0, 1, 1], [], []>} : vector<2x32xf32>, vector<32x5xf32>, vector<2x5xf32> -> vector<2x5xf32>
    %c0_227 = arith.constant 0 : index
    %c0_228 = arith.constant 0 : index
    %332 = vector.load %arg17[%c0_227, %c0_228] : memref<1x5xf32, #tpu.memory_space<vmem>>, vector<1x5xf32>
    %333 = vector.broadcast %332 : vector<1x5xf32> to vector<2x5xf32>
    %334 = arith.addf %331, %333 : vector<2x5xf32>
    %cst_229 = arith.constant dense<0xFF800000> : vector<2xf32>
    %335 = vector.multi_reduction <maximumf>, %334, %cst_229 [1] : vector<2x5xf32> to vector<2xf32>
    %336 = vector.shape_cast %335 : vector<2xf32> to vector<2x1xf32>
    %337 = vector.broadcast %336 : vector<2x1xf32> to vector<2x5xf32>
    %338 = arith.subf %334, %337 : vector<2x5xf32>
    %339 = math.exp %338 : vector<2x5xf32>
    %cst_230 = arith.constant dense<0.000000e+00> : vector<2xf32>
    %340 = vector.multi_reduction <add>, %339, %cst_230 [1] : vector<2x5xf32> to vector<2xf32>
    %341 = vector.shape_cast %340 : vector<2xf32> to vector<2x1xf32>
    %342 = math.log %341 : vector<2x1xf32>
    %343 = vector.broadcast %342 : vector<2x1xf32> to vector<2x5xf32>
    %344 = arith.subf %338, %343 : vector<2x5xf32>
    %c0_231 = arith.constant 0 : index
    %c0_232 = arith.constant 0 : index
    %345 = vector.load %arg18[%c0_231, %c0_232] : memref<2x5xf32, #tpu.memory_space<vmem>>, vector<2x5xf32>
    tpu.vector_store %arg18[%c0_231, %c0_232], %344 {strides = array<i32>} : memref<2x5xf32, #tpu.memory_space<vmem>>, vector<2x5xf32>,
    return
  }
}

</mosaic_0001>

<bundles_post_ra>
// kernel: _lambda_.1
= control target key start
LH: loop header
LB: loop body
LE: loop exit
PB: predicated region body
PF: predicated region fallthrough
CT: control target
= control target key end

     0   :  { %s8395_s0 = inlined_call_operand.vmem [shape: f32[16,32], index: 0, kind: input, shape index: {}]   ;;  %s8396_s1 = inlined_call_operand.vmem [shape: f32[3,16,16], index: 1, kind: input, shape index: {}]   ;;  %s8397_s2 = inlined_call_operand.vmem [shape: f32[9,32,128], index: 2, kind: input, shape index: {}]   ;;  %s8398_s3 = inlined_call_operand.vmem [shape: f32[9,128,128], index: 3, kind: input, shape index: {}]   ;;  %s8399_s4 = inlined_call_operand.vmem [shape: f32[128,128], index: 4, kind: input, shape index: {}]   ;;  %s8400_s5 = inlined_call_operand.vmem [shape: f32[2,128], index: 5, kind: input, shape index: {}]   ;;  %s8401_s6 = inlined_call_operand.vmem [shape: f32[2,128], index: 6, kind: input, shape index: {}]   ;;  %s8402_s7 = inlined_call_operand.vmem [shape: f32[8,2,16], index: 7, kind: input, shape index: {}]   ;;  %s8403_s8 = inlined_call_operand.vmem [shape: f32[8,128,64], index: 8, kind: input, shape index: {}]   ;;  %s8404_s9 = inlined_call_operand.vmem [shape: f32[2,64], index: 9, kind: input, shape index: {}]   ;;  %s8405_s10 = inlined_call_operand.vmem [shape: f32[8,2], index: 10, kind: input, shape index: {}]   ;;  %s8406_s11 = inlined_call_operand.vmem [shape: f32[8,64], index: 11, kind: input, shape index: {}]   ;;  %s8407_s12 = inlined_call_operand.vmem [shape: f32[64,16], index: 12, kind: input, shape index: {}]   ;;  %s8408_s13 = inlined_call_operand.vmem [shape: f32[16,128], index: 13, kind: input, shape index: {}]   ;;  %s8409_s14 = inlined_call_operand.vmem [shape: f32[1,128], index: 14, kind: input, shape index: {}]   ;;  %s8410_s15 = inlined_call_operand.vmem [shape: f32[32,128], index: 15, kind: input, shape index: {}]   ;;  %s8411_s16 = inlined_call_operand.vmem [shape: f32[32,5], index: 16, kind: input, shape index: {}]   ;;  %s8412_s17 = inlined_call_operand.vmem [shape: f32[1,5], index: 17, kind: input, shape index: {}]   ;;  %s8413_s18 = inlined_call_operand.hbm [shape: f32[2,5], index: 18, kind: output, shape index: {}]  }
   0x1   :  { %8417 = sst [smem:[#allocation5_spill]] %s8395_s0 }
   0x2   :  { %8418 = sst [smem:[#allocation6_spill]] %s8396_s1 }
   0x3   :  { %8419 = sst [smem:[#allocation7_spill]] %s8397_s2 }
   0x4   :  { %s8420_s29 = sld [smem:[#allocation5_spill]]  ;;  %vm80_vm0 = vcmask 130048  }
   0x5   :  { %s8421_s20 = sld [smem:[#allocation6_spill]] }
   0x6   :  { %s8422_s2 = sld [smem:[#allocation7_spill]] }
   0xa   :  { %v6680_v0 = vld [vmem:[%s8420_s29 + $0x8] sm:$0xff]  ;;  %v6685_v1 = vld [vmem:[%s8420_s29] sm:$0xff] }
   0xb   :  { %v6690_v2 = vld [vmem:[%s8421_s20] sm:$0xff]  ;;  %5474 = vmatprep.subr.mxu1 %v6680_v0  ;;  %v6702_v4 = vld [vmem:[%s8421_s20 + $0x8] sm:$0xff] }
   0xc   :  { %5478 = vmatprep.mubr.msk.f32.mxu1 %vm80_vm0, %v6690_v2  ;;  %v165_v3 = vld [vmem:[%s8422_s2 + $0x18] sm:$0xff]  ;;  %5475 = vmatpush3.msra.mxu1 %v6680_v0  ;;  %v164_v6 = vld [vmem:[%s8422_s2 + $0x10] sm:$0xff] }
   0xd   :  { %v4641_v5 = vld [vmem:[%s8422_s2 + $0x38] sm:$0xff]  ;;  %5492 = vmatprep.subr.mxu0 %v165_v3  ;;  %5476 = vmatprep.subr.mxu1 %v6685_v1 }
   0xe   :  { %5493 = vmatpush3.msra.mxu0 %v165_v3 }
   0xf   :  { %23 = vsyncpa [#allocation3], 0  ;;  %5477 = vmatpush3.msra.mxu1 %v6685_v1  ;;  %v4640_v7 = vld [vmem:[%s8422_s2 + $0x30] sm:$0xff]  ;;  %5494 = vmatprep.subr.mxu0 %v164_v6  ;;  %v4639_v8 = vld [vmem:[%s8422_s2 + $0x28] sm:$0xff]  ;;  %vm171_vm1 = vcmask 261120   ;;  %v6577_v53 = vmov 0.0  }
  0x10   :  { %5479 = vmatmul.mubr.msk.f32.vlgmr.msra.gmra.mxu1 %vm80_vm0, %v6702_v4  ;;  %5481 = vmatprep.subr.mxu1 %v4641_v5  ;;  %v163_v9 = vld [vmem:[%s8422_s2 + $0x8] sm:$0xff]  ;;  %v4638_v10 = vld [vmem:[%s8422_s2 + $0x20] sm:$0xff]  ;;  %v4649_v12 = vld [vmem:[%s8422_s2 + $0x58] sm:$0xff]  ;;  %vm6578_vm2 = vmmov 0   ;;  %vm3814_vm3 = vcmask 517120   ;;  %vm3859_vm4 = vcmask 1041408  }
  0x11   :  { %5482 = vmatpush3.msra.mxu1 %v4641_v5  ;;  %5495 = vmatpush3.msra.mxu0 %v164_v6  ;;  %v162_v11 = vld [vmem:[%s8422_s2] sm:$0xff]  ;;  %v4648_v15 = vld [vmem:[%s8422_s2 + $0x50] sm:$0xff]  ;;  %v4647_v16 = vld [vmem:[%s8422_s2 + $0x48] sm:$0xff]  ;;  %vm3855_vm5 = vcmask 15360   ;;  %vm3943_vm6 = vcmask 523264   ;;  %s6579_s22 = smov 64  }
  0x12   :  { %5483 = vmatprep.subr.mxu1 %v4640_v7  ;;  %5496 = vmatprep.subr.mxu0 %v163_v9  ;;  %v6748_v17 = vld [vmem:[%s8421_s20 + $0x10] sm:$0xff]  ;;  %v6754_v18 = vld [vmem:[%s8421_s20 + $0x18] sm:$0xff]  ;;  %v4646_v19 = vld [vmem:[%s8422_s2 + $0x40] sm:$0xff]  ;;  %vm4608_vm7 = vcmask 33792  }
  0x13   :  { %5484 = vmatpush3.msra.mxu1 %v4640_v7  ;;  %5497 = vmatpush3.msra.mxu0 %v163_v9  ;;  %v4659_v20 = vld [vmem:[%s8422_s2 + $0x78] sm:$0xff]  ;;  %v4658_v22 = vld [vmem:[%s8422_s2 + $0x70] sm:$0xff]  ;;  %v4657_v24 = vld [vmem:[%s8422_s2 + $0x68] sm:$0xff] }
  0x14   :  { %5485 = vmatprep.subr.mxu1 %v4639_v8  ;;  %5498 = vmatprep.subr.mxu0 %v162_v11  ;;  %v4665_v21 = vld [vmem:[%s8422_s2 + $0x98] sm:$0xff]  ;;  %v4664_v23 = vld [vmem:[%s8422_s2 + $0x90] sm:$0xff]  ;;  %v4663_v25 = vld [vmem:[%s8422_s2 + $0x88] sm:$0xff] }
  0x15   :  { %5486 = vmatpush3.msra.mxu1 %v4639_v8  ;;  %5499 = vmatpush3.msra.mxu0 %v162_v11  ;;  %v4656_v26 = vld [vmem:[%s8422_s2 + $0x60] sm:$0xff]  ;;  %v4671_v28 = vld [vmem:[%s8422_s2 + $0xb8] sm:$0xff]  ;;  %v4670_v39 = vld [vmem:[%s8422_s2 + $0xb0] sm:$0xff] }
  0x16   :  { %5487 = vmatprep.subr.mxu1 %v4638_v10  ;;  %5514 = vmatprep.subr.mxu0 %v6680_v0  ;;  %v4662_v27 = vld [vmem:[%s8422_s2 + $0x80] sm:$0xff]  ;;  %v4669_v40 = vld [vmem:[%s8422_s2 + $0xa8] sm:$0xff]  ;;  %v4681_v44 = vld [vmem:[%s8422_s2 + $0xd8] sm:$0xff] }
  0x17   :  { %5488 = vmatpush3.msra.mxu1 %v4638_v10  ;;  %v6808_v41 = vld [vmem:[%s8421_s20 + $0x20] sm:$0xff]  ;;  %v6814_v42 = vld [vmem:[%s8421_s20 + $0x28] sm:$0xff]  ;;  %v4687_v45 = vld [vmem:[%s8422_s2 + $0xf8] sm:$0xff] }
  0x18   :  { %5503 = vmatprep.subr.mxu1 %v4649_v12  ;;  %v4668_v43 = vld [vmem:[%s8422_s2 + $0xa0] sm:$0xff]  ;;  %v4680_v46 = vld [vmem:[%s8422_s2 + $0xd0] sm:$0xff]  ;;  %v4679_v48 = vld [vmem:[%s8422_s2 + $0xc8] sm:$0xff] }
  0x19   :  { %v4686_v47 = vld [vmem:[%s8422_s2 + $0xf0] sm:$0xff]  ;;  %v4685_v49 = vld [vmem:[%s8422_s2 + $0xe8] sm:$0xff]  ;;  %v4678_v50 = vld [vmem:[%s8422_s2 + $0xc0] sm:$0xff] }
  0x1a   :  { %v4684_v51 = vld [vmem:[%s8422_s2 + $0xe0] sm:$0xff]  ;;  %v4693_v52 = vld [vmem:[%s8422_s2 + $0x118] sm:$0xff]  ;;  %v4692_v3 = vld [vmem:[%s8422_s2 + $0x110] sm:$0xff] }
  0x1b   :  { %v75_v5 = vld [vmem:[%s8399_s4 + $0x78] sm:$0xff]  ;;  %v4691_v6 = vld [vmem:[%s8422_s2 + $0x108] sm:$0xff]  ;;  %v74_v7 = vld [vmem:[%s8399_s4 + $0x70] sm:$0xff] }
  0x1c   :  { %v4690_v8 = vld [vmem:[%s8422_s2 + $0x100] sm:$0xff]  ;;  %v73_v9 = vld [vmem:[%s8399_s4 + $0x68] sm:$0xff]  ;;  %v71_v11 = vld [vmem:[%s8399_s4 + $0x58] sm:$0xff] }
  0x1d   :  { %v72_v10 = vld [vmem:[%s8399_s4 + $0x60] sm:$0xff] }
  0xd0   :  { %v5480_v13 = vpop.f32.mrf.mxu1 }
  0xd2   :  { %v153_v14 = vpop.f32.mrf.mxu1 }
  0xd3   :  { %5489 = vmatprep.mubr.msk.f32.mxu1 %vm171_vm1, %v153_v14  ;;  %5500 = vmatprep.mubr.msk.f32.mxu0 %vm171_vm1, %v153_v14 }
  0xd4   :  { %5490 = vmatmul.mubr.msk.f32.vlgmr.msra.gmra.mxu1 %vm171_vm1, %v5480_v13  ;;  %5501 = vmatmul.mubr.msk.f32.vlgmr.msra.gmra.mxu0 %vm171_vm1, %v5480_v13 }
  0xd5   :  { %5504 = vmatpush3.msra.mxu1 %v4649_v12  ;;  %5511 = vmatprep.mubr.msk.f32.mxu1 %vm171_vm1, %v153_v14  ;;  %v70_v12 = vld [vmem:[%s8399_s4 + $0x50] sm:$0xff]  ;;  %v68_v14 = vld [vmem:[%s8399_s4 + $0x40] sm:$0xff] }
  0xd6   :  { %5505 = vmatprep.subr.mxu1 %v4648_v15  ;;  %5515 = vmatpush3.msra.mxu0 %v6680_v0 }
  0xd7   :  { %5506 = vmatpush3.msra.mxu1 %v4648_v15  ;;  %5516 = vmatprep.subr.mxu0 %v6685_v1  ;;  %v67_v15 = vld [vmem:[%s8399_s4 + $0x38] sm:$0xff] }
  0xd8   :  { %5507 = vmatprep.subr.mxu1 %v4647_v16  ;;  %5517 = vmatpush3.msra.mxu0 %v6685_v1 }
  0xd9   :  { %5518 = vmatprep.mubr.msk.f32.mxu0 %vm80_vm0, %v6748_v17  ;;  %5508 = vmatpush3.msra.mxu1 %v4647_v16  ;;  %v66_v16 = vld [vmem:[%s8399_s4 + $0x30] sm:$0xff] }
  0xda   :  { %5519 = vmatmul.mubr.msk.f32.vlgmr.msra.gmra.mxu0 %vm80_vm0, %v6754_v18  ;;  %5509 = vmatprep.subr.mxu1 %v4646_v19 }
  0xdb   :  { %5510 = vmatpush3.msra.mxu1 %v4646_v19  ;;  %5521 = vmatprep.subr.mxu0 %v4659_v20  ;;  %v65_v19 = vld [vmem:[%s8399_s4 + $0x28] sm:$0xff] }
  0xdc   :  { %5512 = vmatmul.mubr.msk.f32.vlgmr.msra.gmra.mxu1 %vm171_vm1, %v5480_v13  ;;  %5522 = vmatpush3.msra.mxu0 %v4659_v20  ;;  %v69_v13 = vld [vmem:[%s8399_s4 + $0x48] sm:$0xff]  ;;  %v64_v20 = vld [vmem:[%s8399_s4 + $0x20] sm:$0xff] }
  0xdd   :  { %5532 = vmatprep.subr.mxu1 %v4665_v21  ;;  %5523 = vmatprep.subr.mxu0 %v4658_v22 }
  0xde   :  { %5533 = vmatpush3.msra.mxu1 %v4665_v21  ;;  %5524 = vmatpush3.msra.mxu0 %v4658_v22  ;;  %v63_v21 = vld [vmem:[%s8399_s4 + $0x18] sm:$0xff]  ;;  %v62_v22 = vld [vmem:[%s8399_s4 + $0x10] sm:$0xff] }
  0xdf   :  { %5534 = vmatprep.subr.mxu1 %v4664_v23  ;;  %5525 = vmatprep.subr.mxu0 %v4657_v24 }
  0xe0   :  { %5535 = vmatpush3.msra.mxu1 %v4664_v23  ;;  %5526 = vmatpush3.msra.mxu0 %v4657_v24  ;;  %v61_v23 = vld [vmem:[%s8399_s4 + $0x8] sm:$0xff]  ;;  %v60_v24 = vld [vmem:[%s8399_s4] sm:$0xff] }
  0xe1   :  { %5536 = vmatprep.subr.mxu1 %v4663_v25  ;;  %5527 = vmatprep.subr.mxu0 %v4656_v26 }
  0xe2   :  { %5537 = vmatpush3.msra.mxu1 %v4663_v25  ;;  %5528 = vmatpush3.msra.mxu0 %v4656_v26 }
  0xe3   :  { %5538 = vmatprep.subr.mxu1 %v4662_v27  ;;  %5543 = vmatprep.subr.mxu0 %v4671_v28 }
  0xe4   :  { %5539 = vmatpush3.msra.mxu1 %v4662_v27 }
  0xe5   :  { %5554 = vmatprep.subr.mxu1 %v6680_v0 }
 0x194   :  { %v5491_v29 = vpop.f32.mrf.mxu1  ;;  %v5502_v30 = vpop.f32.mrf.mxu0 }
 0x195   :  { %v325_v31 = vadd.f32 %v5502_v30, %v5491_v29 }
 0x196   :  { %v244_v32 = vpop.f32.mrf.mxu1  ;;  %v319_v33 = vpop.f32.mrf.mxu0 }
 0x197   :  { %v320_v34 = vadd.f32 %v319_v33, %v244_v32 }
 0x19a   :  { %v5520_v35 = vpop.f32.mrf.mxu0 }
 0x19c   :  { %v485_v36 = vpop.f32.mrf.mxu0  ;;  %v5513_v37 = vpop.f32.mrf.mxu1 }
 0x19d   :  { %v409_v38 = vadd.f32 %v5513_v37, %v325_v31  ;;  %5529 = vmatprep.mubr.msk.f32.mxu0 %vm171_vm1, %v485_v36  ;;  %5540 = vmatprep.mubr.msk.f32.mxu1 %vm171_vm1, %v485_v36 }
 0x19e   :  { %5530 = vmatmul.mubr.msk.f32.vlgmr.msra.gmra.mxu0 %vm171_vm1, %v5520_v35  ;;  %5541 = vmatmul.mubr.msk.f32.vlgmr.msra.gmra.mxu1 %vm171_vm1, %v5520_v35  ;;  %v399_v54 = vpop.f32.mrf.mxu1 }
 0x19f   :  { %5544 = vmatpush3.msra.mxu0 %v4671_v28  ;;  %5551 = vmatprep.mubr.msk.f32.mxu0 %vm171_vm1, %v485_v36  ;;  %v408_v57 = vadd.f32 %v399_v54, %v320_v34 }
 0x1a0   :  { %5545 = vmatprep.subr.mxu0 %v4670_v39  ;;  %5555 = vmatpush3.msra.mxu1 %v6680_v0 }
 0x1a1   :  { %5546 = vmatpush3.msra.mxu0 %v4670_v39  ;;  %5556 = vmatprep.subr.mxu1 %v6685_v1 }
 0x1a2   :  { %5547 = vmatprep.subr.mxu0 %v4669_v40  ;;  %5557 = vmatpush3.msra.mxu1 %v6685_v1 }
 0x1a3   :  { %5558 = vmatprep.mubr.msk.f32.mxu1 %vm80_vm0, %v6808_v41  ;;  %5548 = vmatpush3.msra.mxu0 %v4669_v40 }
 0x1a4   :  { %5559 = vmatmul.mubr.msk.f32.vlgmr.msra.gmra.mxu1 %vm80_vm0, %v6814_v42  ;;  %5549 = vmatprep.subr.mxu0 %v4668_v43 }
 0x1a5   :  { %5550 = vmatpush3.msra.mxu0 %v4668_v43  ;;  %5561 = vmatprep.subr.mxu1 %v4681_v44 }
 0x1a6   :  { %5552 = vmatmul.mubr.msk.f32.vlgmr.msra.gmra.mxu0 %vm171_vm1, %v5520_v35  ;;  %5562 = vmatpush3.msra.mxu1 %v4681_v44 }
 0x1a7   :  { %5572 = vmatprep.subr.mxu0 %v4687_v45  ;;  %5563 = vmatprep.subr.mxu1 %v4680_v46 }
 0x1a8   :  { %5573 = vmatpush3.msra.mxu0 %v4687_v45  ;;  %5564 = vmatpush3.msra.mxu1 %v4680_v46 }
 0x1a9   :  { %5574 = vmatprep.subr.mxu0 %v4686_v47  ;;  %5565 = vmatprep.subr.mxu1 %v4679_v48 }
 0x1aa   :  { %5575 = vmatpush3.msra.mxu0 %v4686_v47  ;;  %5566 = vmatpush3.msra.mxu1 %v4679_v48 }
 0x1ab   :  { %5576 = vmatprep.subr.mxu0 %v4685_v49  ;;  %5567 = vmatprep.subr.mxu1 %v4678_v50 }
 0x1ac   :  { %5577 = vmatpush3.msra.mxu0 %v4685_v49  ;;  %5568 = vmatpush3.msra.mxu1 %v4678_v50 }
 0x1ad   :  { %5578 = vmatprep.subr.mxu0 %v4684_v51  ;;  %5583 = vmatprep.subr.mxu1 %v4693_v52 }
 0x1ae   :  { %5579 = vmatpush3.msra.mxu0 %v4684_v51 }
 0x1af   :  { %5594 = vmatprep.subr.mxu0 %v6577_v53 }
 0x25e   :  { %v5531_v55 = vpop.f32.mrf.mxu0  ;;  %v5542_v56 = vpop.f32.mrf.mxu1 }
 0x25f   :  { %v581_v58 = vadd.f32 %v5531_v55, %v409_v38 }
 0x260   :  { %v571_v59 = vpop.f32.mrf.mxu0  ;;  %v653_v60 = vpop.f32.mrf.mxu1 }
 0x261   :  { %v6853_v61 = vadd.f32 %v5542_v56, %v581_v58  ;;  %v580_v62 = vadd.f32 %v571_v59, %v408_v57 }
 0x263   :  { %v6855_v63 = vadd.f32 %v653_v60, %v580_v62  ;;  %v1355_v60 = vld [vmem:[%s8398_s3 + $0x78] sm:$0xff]  ;;  %v1353_v62 = vld [vmem:[%s8398_s3 + $0x68] sm:$0xff] }
 0x264   :  { %v5560_v0 = vpop.f32.mrf.mxu1 }
 0x266   :  { %v821_v1 = vpop.f32.mrf.mxu1  ;;  %v5553_v25 = vpop.f32.mrf.mxu0 }
 0x267   :  { %5569 = vmatprep.mubr.msk.f32.mxu1 %vm171_vm1, %v821_v1  ;;  %5580 = vmatprep.mubr.msk.f32.mxu0 %vm171_vm1, %v821_v1  ;;  %v745_v28 = vadd.f32 %v5553_v25, %v6853_v61  ;;  %v1354_v61 = vld [vmem:[%s8398_s3 + $0x70] sm:$0xff] }
 0x268   :  { %5570 = vmatmul.mubr.msk.f32.vlgmr.msra.gmra.mxu1 %vm171_vm1, %v5560_v0  ;;  %5581 = vmatmul.mubr.msk.f32.vlgmr.msra.gmra.mxu0 %vm171_vm1, %v5560_v0  ;;  %v735_v26 = vpop.f32.mrf.mxu0 }
 0x269   :  { %5584 = vmatpush3.msra.mxu1 %v4693_v52  ;;  %5591 = vmatprep.mubr.msk.f32.mxu1 %vm171_vm1, %v821_v1  ;;  %v744_v30 = vadd.f32 %v735_v26, %v6855_v63  ;;  %v1351_v63 = vld [vmem:[%s8398_s3 + $0x58] sm:$0xff]  ;;  %v1349_v1 = vld [vmem:[%s8398_s3 + $0x48] sm:$0xff]  ;;  %v1242_v26 = vld [vmem:[%s8400_s5] sm:$0x3] }
 0x26a   :  { %5585 = vmatprep.subr.mxu1 %v4692_v3  ;;  %5595 = vmatpush3.msra.mxu0 %v75_v5 }
 0x26b   :  { %5586 = vmatpush3.msra.mxu1 %v4692_v3  ;;  %5596 = vmatprep.subr.mxu0 %v6577_v53  ;;  %v1348_v3 = vld [vmem:[%s8398_s3 + $0x40] sm:$0xff] }
 0x26c   :  { %5587 = vmatprep.subr.mxu1 %v4691_v6  ;;  %5597 = vmatpush3.msra.mxu0 %v74_v7 }
 0x26d   :  { %5588 = vmatpush3.msra.mxu1 %v4691_v6  ;;  %5598 = vmatprep.subr.mxu0 %v6577_v53  ;;  %v1346_v6 = vld [vmem:[%s8398_s3 + $0x30] sm:$0xff] }
 0x26e   :  { %5589 = vmatprep.subr.mxu1 %v4690_v8  ;;  %5599 = vmatpush3.msra.mxu0 %v73_v9 }
 0x26f   :  { %5590 = vmatpush3.msra.mxu1 %v4690_v8  ;;  %5600 = vmatprep.subr.mxu0 %v6577_v53  ;;  %v1344_v8 = vld [vmem:[%s8398_s3 + $0x20] sm:$0xff] }
 0x270   :  { %5592 = vmatmul.mubr.msk.f32.vlgmr.msra.gmra.mxu1 %vm171_vm1, %v5560_v0  ;;  %5629 = vmatprep.subr.mxu1 %v6577_v53  ;;  %v1350_v0 = vld [vmem:[%s8398_s3 + $0x50] sm:$0xff] }
 0x271   :  { %5630 = vmatpush3.msra.mxu1 %v75_v5  ;;  %5601 = vmatpush3.msra.mxu0 %v72_v10  ;;  %v1347_v5 = vld [vmem:[%s8398_s3 + $0x38] sm:$0xff] }
 0x272   :  { %5631 = vmatprep.subr.mxu1 %v6577_v53  ;;  %5602 = vmatprep.subr.mxu0 %v6577_v53 }
 0x273   :  { %5632 = vmatpush3.msra.mxu1 %v74_v7  ;;  %5603 = vmatpush3.msra.mxu0 %v71_v11  ;;  %v1345_v7 = vld [vmem:[%s8398_s3 + $0x28] sm:$0xff] }
 0x274   :  { %5633 = vmatprep.subr.mxu1 %v6577_v53  ;;  %5604 = vmatprep.subr.mxu0 %v6577_v53 }
 0x275   :  { %5634 = vmatpush3.msra.mxu1 %v73_v9  ;;  %5605 = vmatpush3.msra.mxu0 %v70_v12  ;;  %v1343_v9 = vld [vmem:[%s8398_s3 + $0x18] sm:$0xff] }
 0x276   :  { %5635 = vmatprep.subr.mxu1 %v6577_v53  ;;  %5606 = vmatprep.subr.mxu0 %v6577_v53 }
 0x277   :  { %5636 = vmatpush3.msra.mxu1 %v72_v10  ;;  %5607 = vmatpush3.msra.mxu0 %v69_v13  ;;  %v1342_v10 = vld [vmem:[%s8398_s3 + $0x10] sm:$0xff] }
 0x278   :  { %5637 = vmatprep.subr.mxu1 %v6577_v53  ;;  %5608 = vmatprep.subr.mxu0 %v6577_v53 }
 0x279   :  { %5638 = vmatpush3.msra.mxu1 %v71_v11  ;;  %5609 = vmatpush3.msra.mxu0 %v68_v14  ;;  %v1341_v11 = vld [vmem:[%s8398_s3 + $0x8] sm:$0xff] }
 0x27a   :  { %5639 = vmatprep.subr.mxu1 %v6577_v53  ;;  %5610 = vmatprep.subr.mxu0 %v6577_v53 }
 0x27b   :  { %5640 = vmatpush3.msra.mxu1 %v70_v12  ;;  %5611 = vmatpush3.msra.mxu0 %v67_v15  ;;  %v1340_v12 = vld [vmem:[%s8398_s3] sm:$0xff] }
 0x27c   :  { %5641 = vmatprep.subr.mxu1 %v6577_v53  ;;  %5612 = vmatprep.subr.mxu0 %v6577_v53 }
 0x27d   :  { %5642 = vmatpush3.msra.mxu1 %v69_v13  ;;  %5613 = vmatpush3.msra.mxu0 %v66_v16 }
 0x27e   :  { %5643 = vmatprep.subr.mxu1 %v6577_v53  ;;  %5614 = vmatprep.subr.mxu0 %v6577_v53 }
 0x27f   :  { %5644 = vmatpush3.msra.mxu1 %v68_v14  ;;  %5615 = vmatpush3.msra.mxu0 %v65_v19 }
 0x280   :  { %5645 = vmatprep.subr.mxu1 %v6577_v53  ;;  %5616 = vmatprep.subr.mxu0 %v6577_v53 }
 0x281   :  { %5646 = vmatpush3.msra.mxu1 %v67_v15  ;;  %5617 = vmatpush3.msra.mxu0 %v64_v20 }
 0x282   :  { %5647 = vmatprep.subr.mxu1 %v6577_v53  ;;  %5618 = vmatprep.subr.mxu0 %v6577_v53 }
 0x283   :  { %5648 = vmatpush3.msra.mxu1 %v66_v16  ;;  %5619 = vmatpush3.msra.mxu0 %v63_v21 }
 0x284   :  { %5649 = vmatprep.subr.mxu1 %v6577_v53  ;;  %5620 = vmatprep.subr.mxu0 %v6577_v53 }
 0x285   :  { %5650 = vmatpush3.msra.mxu1 %v65_v19  ;;  %5621 = vmatpush3.msra.mxu0 %v62_v22 }
 0x286   :  { %5651 = vmatprep.subr.mxu1 %v6577_v53  ;;  %5622 = vmatprep.subr.mxu0 %v6577_v53 }
 0x287   :  { %5652 = vmatpush3.msra.mxu1 %v64_v20  ;;  %5623 = vmatpush3.msra.mxu0 %v61_v23 }
 0x288   :  { %5653 = vmatprep.subr.mxu1 %v6577_v53  ;;  %5626 = vmatprep.mubr.msk.f32.mxu0 %vm6578_vm2, %v6577_v53 }
 0x289   :  { %5654 = vmatpush3.msra.mxu1 %v63_v21  ;;  %5624 = vmatprep.subr.mxu0 %v6577_v53 }
 0x28a   :  { %5655 = vmatprep.subr.mxu1 %v6577_v53  ;;  %5625 = vmatpush3.msra.mxu0 %v60_v24 }
 0x28b   :  { %5656 = vmatpush3.msra.mxu1 %v62_v22  ;;  %5661 = vmatprep.mubr.msk.f32.mxu1 %vm6578_vm2, %v6577_v53 }
 0x28c   :  { %5657 = vmatprep.subr.mxu1 %v6577_v53 }
 0x28d   :  { %5658 = vmatpush3.msra.mxu1 %v61_v23 }
 0x28e   :  { %5659 = vmatprep.subr.mxu1 %v6577_v53 }
 0x28f   :  { %5660 = vmatpush3.msra.mxu1 %v60_v24  ;;  %v1251_v24 = vlaneseq }
 0x290   :  { %5706 = vmatprep.subr.mxu1 %v1355_v60 }
 0x291   :  { %v1252_v25 = vshrl.u32 %v1251_v24, 7  ;;  %v4715_v24 = vld [vmem:[%s8398_s3 + $0x108] sm:$0xff] }
 0x328   :  { %v5571_v27 = vpop.f32.mrf.mxu1  ;;  %v5582_v32 = vpop.f32.mrf.mxu0 }
 0x329   :  { %v917_v31 = vadd.f32 %v5571_v27, %v745_v28 }
 0x32a   :  { %v907_v29 = vpop.f32.mrf.mxu1  ;;  %v989_v35 = vpop.f32.mrf.mxu0 }
 0x32b   :  { %v916_v33 = vadd.f32 %v907_v29, %v744_v30  ;;  %v999_v34 = vadd.f32 %v5582_v32, %v917_v31  ;;  %v7020_v29 = vsub.s32 0, %v1252_v25 }
 0x32d   :  { %v998_v37 = vadd.f32 %v989_v35, %v916_v33  ;;  %v7023_v33 = vsub.s32 1, %v1252_v25  ;;  %v4736_v25 = vld [vmem:[%s8398_s3 + $0x1a0] sm:$0xff] }
 0x330   :  { %v5593_v36 = vpop.f32.mrf.mxu1 }
 0x331   :  { %v6957_v38 = vadd.f32 %v5593_v36, %v999_v34 }
 0x332   :  { %v1071_v39 = vpop.f32.mrf.mxu1 }
 0x333   :  { %v6959_v40 = vadd.f32 %v1071_v39, %v998_v37  ;;  %v1090_v43 = vmul.f32 %v6957_v38, %v6957_v38 }
 0x335   :  { %v1082_v44 = vadd.f32 %v6957_v38, %v6959_v40  ;;  %v1089_v45 = vmul.f32 %v6959_v40, %v6959_v40 }
 0x337   :  { %v1083_v46 = vrot.slane %v1082_v44, 4  ;;  %v1091_v47 = vadd.f32 %v1090_v43, %v1089_v45 }
 0x339   :  { %v1084_v48 = vadd.f32 %v1083_v46, %v1082_v44  ;;  %v1092_v49 = vrot.slane %v1091_v47, 4  ;;  %v4711_v46 = vld [vmem:[%s8398_s3 + $0xe8] sm:$0xff] }
 0x33b   :  { %v1085_v50 = vrot.slane %v1084_v48, 2  ;;  %v1093_v51 = vadd.f32 %v1092_v49, %v1091_v47  ;;  %v4710_v47 = vld [vmem:[%s8398_s3 + $0xe0] sm:$0xff]  ;;  %v4707_v49 = vld [vmem:[%s8398_s3 + $0xc8] sm:$0xff] }
 0x33d   :  { %v1086_v52 = vadd.f32 %v1085_v50, %v1084_v48  ;;  %v1094_v54 = vrot.slane %v1093_v51, 2  ;;  %v4709_v48 = vld [vmem:[%s8398_s3 + $0xd8] sm:$0xff]  ;;  %v4706_v50 = vld [vmem:[%s8398_s3 + $0xc0] sm:$0xff] }
 0x33f   :  { %v1087_v55 = vrot.slane %v1086_v52, 1  ;;  %v1095_v56 = vadd.f32 %v1094_v54, %v1093_v51  ;;  %v4705_v51 = vld [vmem:[%s8398_s3 + $0xb8] sm:$0xff]  ;;  %v4703_v54 = vld [vmem:[%s8398_s3 + $0xa8] sm:$0xff] }
 0x341   :  { %v1088_v57 = vadd.f32 %v1087_v55, %v1086_v52  ;;  %v1096_v58 = vrot.slane %v1095_v56, 1  ;;  %v4704_v52 = vld [vmem:[%s8398_s3 + $0xb0] sm:$0xff]  ;;  %v4702_v55 = vld [vmem:[%s8398_s3 + $0xa0] sm:$0xff] }
 0x343   :  { %5627 = vmatmul.mubr.f32.vlgmr.msra.gmra.mxu0 %v1088_v57  ;;  %v1097_v59 = vadd.f32 %v1096_v58, %v1095_v56  ;;  %v4701_v56 = vld [vmem:[%s8398_s3 + $0x98] sm:$0xff]  ;;  %v4700_v57 = vld [vmem:[%s8398_s3 + $0x90] sm:$0xff]  ;;  %v4699_v58 = vld [vmem:[%s8398_s3 + $0x88] sm:$0xff] }
 0x344   :  { %5668 = vmatprep.mubr.msk.f32.mxu0 %vm80_vm0, %v6690_v2  ;;  %v1352_v2 = vld [vmem:[%s8398_s3 + $0x60] sm:$0xff] }
 0x345   :  { %5662 = vmatmul.mubr.f32.vlgmr.msra.gmra.mxu1 %v1097_v59  ;;  %v4698_v59 = vld [vmem:[%s8398_s3 + $0x80] sm:$0xff] }
 0x346   :  { %5707 = vmatpush3.msra.mxu1 %v1355_v60  ;;  %v4729_v60 = vld [vmem:[%s8398_s3 + $0x178] sm:$0xff] }
 0x347   :  { %5708 = vmatprep.subr.mxu1 %v1354_v61 }
 0x348   :  { %5709 = vmatpush3.msra.mxu1 %v1354_v61 }
 0x349   :  { %5710 = vmatprep.subr.mxu1 %v1353_v62 }
 0x34a   :  { %5711 = vmatpush3.msra.mxu1 %v1353_v62 }
 0x34b   :  { %5712 = vmatprep.subr.mxu1 %v1352_v2 }
 0x34c   :  { %5713 = vmatpush3.msra.mxu1 %v1352_v2  ;;  %v4728_v2 = vld [vmem:[%s8398_s3 + $0x170] sm:$0xff] }
 0x34d   :  { %5714 = vmatprep.subr.mxu1 %v1351_v63 }
 0x34e   :  { %5715 = vmatpush3.msra.mxu1 %v1351_v63  ;;  %v4727_v63 = vld [vmem:[%s8398_s3 + $0x168] sm:$0xff] }
 0x34f   :  { %5716 = vmatprep.subr.mxu1 %v1350_v0 }
 0x350   :  { %5717 = vmatpush3.msra.mxu1 %v1350_v0  ;;  %v4726_v0 = vld [vmem:[%s8398_s3 + $0x160] sm:$0xff] }
 0x351   :  { %5718 = vmatprep.subr.mxu1 %v1349_v1 }
 0x352   :  { %5719 = vmatpush3.msra.mxu1 %v1349_v1  ;;  %v4747_v1 = vld [vmem:[%s8398_s3 + $0x1f8] sm:$0xff] }
 0x353   :  { %5720 = vmatprep.subr.mxu1 %v1348_v3 }
 0x354   :  { %5721 = vmatpush3.msra.mxu1 %v1348_v3  ;;  %v4725_v3 = vld [vmem:[%s8398_s3 + $0x158] sm:$0xff] }
 0x355   :  { %5722 = vmatprep.subr.mxu1 %v1347_v5 }
 0x356   :  { %5723 = vmatpush3.msra.mxu1 %v1347_v5  ;;  %v4746_v5 = vld [vmem:[%s8398_s3 + $0x1f0] sm:$0xff] }
 0x357   :  { %5724 = vmatprep.subr.mxu1 %v1346_v6 }
 0x358   :  { %5725 = vmatpush3.msra.mxu1 %v1346_v6  ;;  %v4724_v6 = vld [vmem:[%s8398_s3 + $0x150] sm:$0xff] }
 0x359   :  { %5726 = vmatprep.subr.mxu1 %v1345_v7 }
 0x35a   :  { %5727 = vmatpush3.msra.mxu1 %v1345_v7  ;;  %v4744_v7 = vld [vmem:[%s8398_s3 + $0x1e0] sm:$0xff] }
 0x35b   :  { %5728 = vmatprep.subr.mxu1 %v1344_v8 }
 0x35c   :  { %5729 = vmatpush3.msra.mxu1 %v1344_v8  ;;  %v4722_v8 = vld [vmem:[%s8398_s3 + $0x140] sm:$0xff] }
 0x35d   :  { %5730 = vmatprep.subr.mxu1 %v1343_v9 }
 0x35e   :  { %5731 = vmatpush3.msra.mxu1 %v1343_v9  ;;  %v4743_v9 = vld [vmem:[%s8398_s3 + $0x1d8] sm:$0xff] }
 0x35f   :  { %5732 = vmatprep.subr.mxu1 %v1342_v10 }
 0x360   :  { %5733 = vmatpush3.msra.mxu1 %v1342_v10  ;;  %v4721_v10 = vld [vmem:[%s8398_s3 + $0x138] sm:$0xff] }
 0x361   :  { %5734 = vmatprep.subr.mxu1 %v1341_v11 }
 0x362   :  { %5735 = vmatpush3.msra.mxu1 %v1341_v11  ;;  %v4742_v11 = vld [vmem:[%s8398_s3 + $0x1d0] sm:$0xff] }
 0x363   :  { %5736 = vmatprep.subr.mxu1 %v1340_v12 }
 0x364   :  { %5737 = vmatpush3.msra.mxu1 %v1340_v12  ;;  %v4720_v12 = vld [vmem:[%s8398_s3 + $0x130] sm:$0xff] }
 0x403   :  { %v1164_v13 = vpop.f32.mrf.mxu0 }
 0x404   :  { %v1168_v14 = vmul.f32 0.0078125, %v1164_v13  ;;  %v4741_v13 = vld [vmem:[%s8398_s3 + $0x1c8] sm:$0xff] }
 0x405   :  { %v5628_v15 = vpop.f32.mrf.mxu0  ;;  %v1235_v16 = vpop.f32.mrf.mxu1 }
 0x406   :  { %v1240_v19 = vmul.f32 %v1168_v14, %v1168_v14  ;;  %v1239_v20 = vmul.f32 0.0078125, %v1235_v16  ;;  %v4740_v15 = vld [vmem:[%s8398_s3 + $0x1c0] sm:$0xff] }
 0x407   :  { %v5663_v21 = vpop.f32.mrf.mxu1  ;;  %v4718_v16 = vld [vmem:[%s8398_s3 + $0x120] sm:$0xff] }
 0x408   :  { %v1241_v22 = vsub.f32 %v1239_v20, %v1240_v19  ;;  %v4739_v19 = vld [vmem:[%s8398_s3 + $0x1b8] sm:$0xff]  ;;  %v4738_v21 = vld [vmem:[%s8398_s3 + $0x1b0] sm:$0xff] }
 0x409   :  { %v4717_v20 = vld [vmem:[%s8398_s3 + $0x118] sm:$0xff] }
 0x40a   :  { %v1243_v23 = vadd.f32 1e-05, %v1241_v22  ;;  %v4716_v22 = vld [vmem:[%s8398_s3 + $0x110] sm:$0xff] }
 0x40c   :  { %6497 = vrsqrt.f32 %v1243_v23  ;;  %v4737_v23 = vld [vmem:[%s8398_s3 + $0x1a8] sm:$0xff] }
 0x419   :  { %v6498_v27 = vpop.eup %6497 }
 0x41a   :  { %v1245_v28 = vmul.f32 %v6498_v27, %v1242_v26  ;;  %v4735_v27 = vld [vmem:[%s8398_s3 + $0x198] sm:$0xff] }
 0x41c   :  { %v1246_v30 = vmul.f32 %v1245_v28, %v1168_v14  ;;  %v1254_v32 = vrot.slane %v1245_v28, %v7020_v29  ;;  %v4719_v14 = vld [vmem:[%s8398_s3 + $0x128] sm:$0xff]  ;;  %v4763_v28 = vld [vmem:[%s8398_s3 + $0x278] sm:$0xff] }
 0x41e   :  { %v1248_v31 = vrot.slane %v1246_v30, 7  ;;  %v1256_v35 = vmul.f32 %v1254_v32, %v6957_v38  ;;  %v1255_v37 = vmul.f32 %v1254_v32, %v6959_v40  ;;  %v4713_v38 = vld [vmem:[%s8398_s3 + $0xf8] sm:$0xff]  ;;  %v4712_v40 = vld [vmem:[%s8398_s3 + $0xf0] sm:$0xff]  ;;  %v4760_v32 = vld [vmem:[%s8398_s3 + $0x260] sm:$0xff] }
 0x41f   :  { %v4762_v30 = vld [vmem:[%s8398_s3 + $0x270] sm:$0xff] }
 0x420   :  { %v1250_v34 = vsub.f32 %v1242_v26, %v1248_v31  ;;  %v4714_v26 = vld [vmem:[%s8398_s3 + $0x100] sm:$0xff]  ;;  %v4761_v31 = vld [vmem:[%s8398_s3 + $0x268] sm:$0xff] }
 0x422   :  { %v1260_v36 = vrot.slane %v1250_v34, %v7023_v33  ;;  %v4759_v34 = vld [vmem:[%s8398_s3 + $0x258] sm:$0xff] }
 0x424   :  { %v1262_v39 = vadd.f32 %v1260_v36, %v1256_v35  ;;  %v1261_v43 = vadd.f32 %v1260_v36, %v1255_v37  ;;  %v4758_v35 = vld [vmem:[%s8398_s3 + $0x250] sm:$0xff]  ;;  %v4757_v36 = vld [vmem:[%s8398_s3 + $0x248] sm:$0xff]  ;;  %v4756_v37 = vld [vmem:[%s8398_s3 + $0x240] sm:$0xff] }
 0x426   :  { %v7028_v44 = vmax.f32 %v1262_v39, 0.0  ;;  %v7032_v45 = vmax.f32 %v1261_v43, 0.0  ;;  %v4755_v39 = vld [vmem:[%s8398_s3 + $0x238] sm:$0xff]  ;;  %v4754_v43 = vld [vmem:[%s8398_s3 + $0x230] sm:$0xff] }
 0x428   :  { %5664 = vmatprep.subr.mxu0 %v7028_v44  ;;  %5776 = vmatprep.subr.mxu1 %v7028_v44 }
 0x429   :  { %5665 = vmatpush3.msra.mxu0 %v7028_v44 }
 0x42a   :  { %5666 = vmatprep.subr.mxu0 %v7032_v45 }
 0x42b   :  { %5667 = vmatpush3.msra.mxu0 %v7032_v45 }
 0x42c   :  { %5669 = vmatmul.mubr.msk.f32.vlgmr.msra.gmra.mxu0 %vm80_vm0, %v6702_v4  ;;  %5671 = vmatprep.subr.mxu0 %v4713_v38  ;;  %v4708_v4 = vld [vmem:[%s8398_s3 + $0xd0] sm:$0xff] }
 0x42d   :  { %5672 = vmatpush3.msra.mxu0 %v4713_v38  ;;  %v4753_v38 = vld [vmem:[%s8398_s3 + $0x228] sm:$0xff] }
 0x42e   :  { %5673 = vmatprep.subr.mxu0 %v4712_v40 }
 0x42f   :  { %5674 = vmatpush3.msra.mxu0 %v4712_v40  ;;  %v4752_v40 = vld [vmem:[%s8398_s3 + $0x220] sm:$0xff] }
 0x430   :  { %5675 = vmatprep.subr.mxu0 %v4711_v46 }
 0x431   :  { %5676 = vmatpush3.msra.mxu0 %v4711_v46  ;;  %v4751_v46 = vld [vmem:[%s8398_s3 + $0x218] sm:$0xff] }
 0x432   :  { %5677 = vmatprep.subr.mxu0 %v4710_v47 }
 0x433   :  { %5678 = vmatpush3.msra.mxu0 %v4710_v47  ;;  %v4750_v47 = vld [vmem:[%s8398_s3 + $0x210] sm:$0xff] }
 0x434   :  { %5679 = vmatprep.subr.mxu0 %v4709_v48 }
 0x435   :  { %5680 = vmatpush3.msra.mxu0 %v4709_v48  ;;  %v4749_v48 = vld [vmem:[%s8398_s3 + $0x208] sm:$0xff] }
 0x436   :  { %5681 = vmatprep.subr.mxu0 %v4708_v4 }
 0x437   :  { %5682 = vmatpush3.msra.mxu0 %v4708_v4  ;;  %v4748_v4 = vld [vmem:[%s8398_s3 + $0x200] sm:$0xff] }
 0x438   :  { %5683 = vmatprep.subr.mxu0 %v4707_v49 }
 0x439   :  { %5684 = vmatpush3.msra.mxu0 %v4707_v49  ;;  %v4734_v49 = vld [vmem:[%s8398_s3 + $0x190] sm:$0xff] }
 0x43a   :  { %5685 = vmatprep.subr.mxu0 %v4706_v50 }
 0x43b   :  { %5686 = vmatpush3.msra.mxu0 %v4706_v50  ;;  %v4733_v50 = vld [vmem:[%s8398_s3 + $0x188] sm:$0xff] }
 0x43c   :  { %5687 = vmatprep.subr.mxu0 %v4705_v51 }
 0x43d   :  { %5688 = vmatpush3.msra.mxu0 %v4705_v51  ;;  %v4732_v51 = vld [vmem:[%s8398_s3 + $0x180] sm:$0xff] }
 0x43e   :  { %5689 = vmatprep.subr.mxu0 %v4704_v52 }
 0x43f   :  { %5690 = vmatpush3.msra.mxu0 %v4704_v52  ;;  %v4779_v52 = vld [vmem:[%s8398_s3 + $0x2f8] sm:$0xff] }
 0x440   :  { %5691 = vmatprep.subr.mxu0 %v4703_v54 }
 0x441   :  { %5692 = vmatpush3.msra.mxu0 %v4703_v54 }
 0x442   :  { %5693 = vmatprep.subr.mxu0 %v4702_v55 }
 0x443   :  { %5694 = vmatpush3.msra.mxu0 %v4702_v55 }
 0x444   :  { %5695 = vmatprep.subr.mxu0 %v4701_v56 }
 0x445   :  { %5696 = vmatpush3.msra.mxu0 %v4701_v56 }
 0x446   :  { %5697 = vmatprep.subr.mxu0 %v4700_v57 }
 0x447   :  { %5698 = vmatpush3.msra.mxu0 %v4700_v57 }
 0x448   :  { %5699 = vmatprep.subr.mxu0 %v4699_v58 }
 0x449   :  { %5700 = vmatpush3.msra.mxu0 %v4699_v58 }
 0x44a   :  { %5701 = vmatprep.subr.mxu0 %v4698_v59 }
 0x44b   :  { %5702 = vmatpush3.msra.mxu0 %v4698_v59 }
 0x44c   :  { %5741 = vmatprep.subr.mxu0 %v4729_v60 }
 0x4ec   :  { %v7090_v61 = vpop.f32.mrf.mxu0 }
 0x4ee   :  { %v1331_v62 = vpop.f32.mrf.mxu0 }
 0x4ef   :  { %5703 = vmatprep.mubr.f32.mxu0 %v1331_v62  ;;  %5738 = vmatprep.mubr.f32.mxu1 %v1331_v62 }
 0x4f0   :  { %5704 = vmatmul.mubr.f32.vlgmr.msra.gmra.mxu0 %v7090_v61  ;;  %5739 = vmatmul.mubr.f32.vlgmr.msra.gmra.mxu1 %v7090_v61 }
 0x4f1   :  { %5742 = vmatpush3.msra.mxu0 %v4729_v60  ;;  %5777 = vmatpush3.msra.mxu1 %v7028_v44 }
 0x4f2   :  { %5743 = vmatprep.subr.mxu0 %v4728_v2  ;;  %5773 = vmatprep.mubr.f32.mxu0 %v1331_v62  ;;  %v4778_v62 = vld [vmem:[%s8398_s3 + $0x2f0] sm:$0xff] }
 0x4f3   :  { %5778 = vmatprep.subr.mxu1 %v7032_v45  ;;  %5744 = vmatpush3.msra.mxu0 %v4728_v2  ;;  %v4777_v2 = vld [vmem:[%s8398_s3 + $0x2e8] sm:$0xff] }
 0x4f4   :  { %5779 = vmatpush3.msra.mxu1 %v7032_v45  ;;  %5745 = vmatprep.subr.mxu0 %v4727_v63 }
 0x4f5   :  { %5780 = vmatprep.mubr.msk.f32.mxu1 %vm80_vm0, %v6748_v17  ;;  %5746 = vmatpush3.msra.mxu0 %v4727_v63  ;;  %v4745_v17 = vld [vmem:[%s8398_s3 + $0x1e8] sm:$0xff]  ;;  %v4776_v63 = vld [vmem:[%s8398_s3 + $0x2e0] sm:$0xff] }
 0x4f6   :  { %5781 = vmatmul.mubr.msk.f32.vlgmr.msra.gmra.mxu1 %vm80_vm0, %v6754_v18  ;;  %5747 = vmatprep.subr.mxu0 %v4726_v0  ;;  %v4723_v18 = vld [vmem:[%s8398_s3 + $0x148] sm:$0xff] }
 0x4f7   :  { %5748 = vmatpush3.msra.mxu0 %v4726_v0  ;;  %5783 = vmatprep.subr.mxu1 %v4747_v1  ;;  %v4775_v0 = vld [vmem:[%s8398_s3 + $0x2d8] sm:$0xff] }
 0x4f8   :  { %5749 = vmatprep.subr.mxu0 %v4725_v3  ;;  %5784 = vmatpush3.msra.mxu1 %v4747_v1  ;;  %v4774_v1 = vld [vmem:[%s8398_s3 + $0x2d0] sm:$0xff] }
 0x4f9   :  { %5750 = vmatpush3.msra.mxu0 %v4725_v3  ;;  %5785 = vmatprep.subr.mxu1 %v4746_v5  ;;  %v4794_v3 = vld [vmem:[%s8398_s3 + $0x360] sm:$0xff] }
 0x4fa   :  { %5751 = vmatprep.subr.mxu0 %v4724_v6  ;;  %5786 = vmatpush3.msra.mxu1 %v4746_v5  ;;  %v4772_v5 = vld [vmem:[%s8398_s3 + $0x2c0] sm:$0xff] }
 0x4fb   :  { %5752 = vmatpush3.msra.mxu0 %v4724_v6  ;;  %5787 = vmatprep.subr.mxu1 %v4745_v17  ;;  %v4793_v6 = vld [vmem:[%s8398_s3 + $0x358] sm:$0xff] }
 0x4fc   :  { %5753 = vmatprep.subr.mxu0 %v4723_v18  ;;  %5788 = vmatpush3.msra.mxu1 %v4745_v17  ;;  %v4771_v17 = vld [vmem:[%s8398_s3 + $0x2b8] sm:$0xff] }
 0x4fd   :  { %5754 = vmatpush3.msra.mxu0 %v4723_v18  ;;  %5789 = vmatprep.subr.mxu1 %v4744_v7  ;;  %v4792_v18 = vld [vmem:[%s8398_s3 + $0x350] sm:$0xff] }
 0x4fe   :  { %5755 = vmatprep.subr.mxu0 %v4722_v8  ;;  %5790 = vmatpush3.msra.mxu1 %v4744_v7  ;;  %v4770_v7 = vld [vmem:[%s8398_s3 + $0x2b0] sm:$0xff] }
 0x4ff   :  { %5756 = vmatpush3.msra.mxu0 %v4722_v8  ;;  %5791 = vmatprep.subr.mxu1 %v4743_v9  ;;  %v4791_v8 = vld [vmem:[%s8398_s3 + $0x348] sm:$0xff] }
 0x500   :  { %5757 = vmatprep.subr.mxu0 %v4721_v10  ;;  %5792 = vmatpush3.msra.mxu1 %v4743_v9  ;;  %v4769_v9 = vld [vmem:[%s8398_s3 + $0x2a8] sm:$0xff] }
 0x501   :  { %5758 = vmatpush3.msra.mxu0 %v4721_v10  ;;  %5793 = vmatprep.subr.mxu1 %v4742_v11  ;;  %v4790_v10 = vld [vmem:[%s8398_s3 + $0x340] sm:$0xff] }
 0x502   :  { %5759 = vmatprep.subr.mxu0 %v4720_v12  ;;  %5794 = vmatpush3.msra.mxu1 %v4742_v11  ;;  %v4768_v11 = vld [vmem:[%s8398_s3 + $0x2a0] sm:$0xff] }
 0x503   :  { %5760 = vmatpush3.msra.mxu0 %v4720_v12  ;;  %5795 = vmatprep.subr.mxu1 %v4741_v13  ;;  %v4789_v12 = vld [vmem:[%s8398_s3 + $0x338] sm:$0xff] }
 0x504   :  { %5761 = vmatprep.subr.mxu0 %v4719_v14  ;;  %5796 = vmatpush3.msra.mxu1 %v4741_v13  ;;  %v4767_v13 = vld [vmem:[%s8398_s3 + $0x298] sm:$0xff] }
 0x505   :  { %5762 = vmatpush3.msra.mxu0 %v4719_v14  ;;  %5797 = vmatprep.subr.mxu1 %v4740_v15 }
 0x506   :  { %5763 = vmatprep.subr.mxu0 %v4718_v16  ;;  %5798 = vmatpush3.msra.mxu1 %v4740_v15  ;;  %v4788_v15 = vld [vmem:[%s8398_s3 + $0x330] sm:$0xff] }
 0x507   :  { %5764 = vmatpush3.msra.mxu0 %v4718_v16  ;;  %5799 = vmatprep.subr.mxu1 %v4739_v19 }
 0x508   :  { %5765 = vmatprep.subr.mxu0 %v4717_v20  ;;  %5800 = vmatpush3.msra.mxu1 %v4739_v19  ;;  %v4766_v19 = vld [vmem:[%s8398_s3 + $0x290] sm:$0xff] }
 0x509   :  { %5766 = vmatpush3.msra.mxu0 %v4717_v20  ;;  %5801 = vmatprep.subr.mxu1 %v4738_v21  ;;  %v4787_v20 = vld [vmem:[%s8398_s3 + $0x328] sm:$0xff] }
 0x50a   :  { %5767 = vmatprep.subr.mxu0 %v4716_v22  ;;  %5802 = vmatpush3.msra.mxu1 %v4738_v21  ;;  %v4765_v21 = vld [vmem:[%s8398_s3 + $0x288] sm:$0xff] }
 0x50b   :  { %5768 = vmatpush3.msra.mxu0 %v4716_v22  ;;  %5803 = vmatprep.subr.mxu1 %v4737_v23  ;;  %v4786_v22 = vld [vmem:[%s8398_s3 + $0x320] sm:$0xff] }
 0x50c   :  { %5769 = vmatprep.subr.mxu0 %v4715_v24  ;;  %5804 = vmatpush3.msra.mxu1 %v4737_v23  ;;  %v4764_v23 = vld [vmem:[%s8398_s3 + $0x280] sm:$0xff] }
 0x50d   :  { %5770 = vmatpush3.msra.mxu0 %v4715_v24  ;;  %5805 = vmatprep.subr.mxu1 %v4736_v25  ;;  %v4785_v24 = vld [vmem:[%s8398_s3 + $0x318] sm:$0xff] }
 0x50e   :  { %5771 = vmatprep.subr.mxu0 %v4714_v26  ;;  %5806 = vmatpush3.msra.mxu1 %v4736_v25  ;;  %v4813_v25 = vld [vmem:[%s8398_s3 + $0x3f8] sm:$0xff] }
 0x50f   :  { %5772 = vmatpush3.msra.mxu0 %v4714_v26  ;;  %5807 = vmatprep.subr.mxu1 %v4735_v27  ;;  %v4812_v26 = vld [vmem:[%s8398_s3 + $0x3f0] sm:$0xff] }
 0x510   :  { %5774 = vmatmul.mubr.f32.vlgmr.msra.gmra.mxu0 %v7090_v61  ;;  %5818 = vmatprep.subr.mxu0 %v4763_v28 }
 0x511   :  { %5819 = vmatpush3.msra.mxu0 %v4763_v28  ;;  %5808 = vmatpush3.msra.mxu1 %v4735_v27  ;;  %v4811_v27 = vld [vmem:[%s8398_s3 + $0x3e8] sm:$0xff]  ;;  %v4810_v28 = vld [vmem:[%s8398_s3 + $0x3e0] sm:$0xff] }
 0x512   :  { %5820 = vmatprep.subr.mxu0 %v4762_v30  ;;  %5809 = vmatprep.subr.mxu1 %v4734_v49 }
 0x513   :  { %5821 = vmatpush3.msra.mxu0 %v4762_v30  ;;  %5810 = vmatpush3.msra.mxu1 %v4734_v49  ;;  %v4809_v30 = vld [vmem:[%s8398_s3 + $0x3d8] sm:$0xff] }
 0x514   :  { %5822 = vmatprep.subr.mxu0 %v4761_v31  ;;  %5811 = vmatprep.subr.mxu1 %v4733_v50  ;;  %v4829_v49 = vld [vmem:[%s8398_s3 + $0x478] sm:$0xff] }
 0x515   :  { %5823 = vmatpush3.msra.mxu0 %v4761_v31  ;;  %5812 = vmatpush3.msra.mxu1 %v4733_v50  ;;  %v4808_v31 = vld [vmem:[%s8398_s3 + $0x3d0] sm:$0xff] }
 0x516   :  { %5824 = vmatprep.subr.mxu0 %v4760_v32  ;;  %5813 = vmatprep.subr.mxu1 %v4732_v51 }
 0x517   :  { %5825 = vmatpush3.msra.mxu0 %v4760_v32  ;;  %5814 = vmatpush3.msra.mxu1 %v4732_v51  ;;  %v4807_v32 = vld [vmem:[%s8398_s3 + $0x3c8] sm:$0xff] }
 0x518   :  { %5826 = vmatprep.subr.mxu0 %v4759_v34  ;;  %5853 = vmatprep.subr.mxu1 %v4779_v52 }
 0x519   :  { %5827 = vmatpush3.msra.mxu0 %v4759_v34  ;;  %v4806_v34 = vld [vmem:[%s8398_s3 + $0x3c0] sm:$0xff] }
 0x51a   :  { %5828 = vmatprep.subr.mxu0 %v4758_v35 }
 0x51b   :  { %5829 = vmatpush3.msra.mxu0 %v4758_v35  ;;  %v4805_v35 = vld [vmem:[%s8398_s3 + $0x3b8] sm:$0xff] }
 0x51c   :  { %5830 = vmatprep.subr.mxu0 %v4757_v36 }
 0x51d   :  { %5831 = vmatpush3.msra.mxu0 %v4757_v36  ;;  %v4804_v36 = vld [vmem:[%s8398_s3 + $0x3b0] sm:$0xff] }
 0x51e   :  { %5832 = vmatprep.subr.mxu0 %v4756_v37 }
 0x51f   :  { %5833 = vmatpush3.msra.mxu0 %v4756_v37  ;;  %v4803_v37 = vld [vmem:[%s8398_s3 + $0x3a8] sm:$0xff] }
 0x520   :  { %5834 = vmatprep.subr.mxu0 %v4755_v39 }
 0x521   :  { %5835 = vmatpush3.msra.mxu0 %v4755_v39  ;;  %v4802_v39 = vld [vmem:[%s8398_s3 + $0x3a0] sm:$0xff] }
 0x522   :  { %5836 = vmatprep.subr.mxu0 %v4754_v43 }
 0x523   :  { %5837 = vmatpush3.msra.mxu0 %v4754_v43  ;;  %v4801_v43 = vld [vmem:[%s8398_s3 + $0x398] sm:$0xff] }
 0x524   :  { %5838 = vmatprep.subr.mxu0 %v4753_v38 }
 0x525   :  { %5839 = vmatpush3.msra.mxu0 %v4753_v38  ;;  %v4784_v38 = vld [vmem:[%s8398_s3 + $0x310] sm:$0xff] }
 0x526   :  { %5840 = vmatprep.subr.mxu0 %v4752_v40 }
 0x527   :  { %5841 = vmatpush3.msra.mxu0 %v4752_v40  ;;  %v4800_v40 = vld [vmem:[%s8398_s3 + $0x390] sm:$0xff] }
 0x528   :  { %5842 = vmatprep.subr.mxu0 %v4751_v46 }
 0x529   :  { %5843 = vmatpush3.msra.mxu0 %v4751_v46  ;;  %v4783_v46 = vld [vmem:[%s8398_s3 + $0x308] sm:$0xff] }
 0x52a   :  { %5844 = vmatprep.subr.mxu0 %v4750_v47 }
 0x52b   :  { %5845 = vmatpush3.msra.mxu0 %v4750_v47  ;;  %v4799_v47 = vld [vmem:[%s8398_s3 + $0x388] sm:$0xff] }
 0x52c   :  { %5846 = vmatprep.subr.mxu0 %v4749_v48 }
 0x52d   :  { %5847 = vmatpush3.msra.mxu0 %v4749_v48  ;;  %v4782_v48 = vld [vmem:[%s8398_s3 + $0x300] sm:$0xff] }
 0x52e   :  { %5848 = vmatprep.subr.mxu0 %v4748_v4 }
 0x52f   :  { %5849 = vmatpush3.msra.mxu0 %v4748_v4  ;;  %v4798_v4 = vld [vmem:[%s8398_s3 + $0x380] sm:$0xff] }
 0x530   :  { %5888 = vmatprep.subr.mxu0 %v7028_v44 }
 0x5b0   :  { %v5705_v54 = vpop.f32.mrf.mxu0  ;;  %v5740_v55 = vpop.f32.mrf.mxu1 }
 0x5b1   :  { %v7247_v56 = vadd.f32 %v5740_v55, %v5705_v54 }
 0x5b2   :  { %v1439_v57 = vpop.f32.mrf.mxu0  ;;  %v1514_v58 = vpop.f32.mrf.mxu1 }
 0x5b3   :  { %v7249_v59 = vadd.f32 %v1514_v58, %v1439_v57 }
 0x5b6   :  { %v7251_v60 = vpop.f32.mrf.mxu1 }
 0x5b8   :  { %v1683_v61 = vpop.f32.mrf.mxu1 }
 0x5b9   :  { %5815 = vmatprep.mubr.f32.mxu1 %v1683_v61  ;;  %5850 = vmatprep.mubr.f32.mxu0 %v1683_v61 }
 0x5ba   :  { %5816 = vmatmul.mubr.f32.vlgmr.msra.gmra.mxu1 %v7251_v60  ;;  %5851 = vmatmul.mubr.f32.vlgmr.msra.gmra.mxu0 %v7251_v60 }
 0x5bb   :  { %5854 = vmatpush3.msra.mxu1 %v4779_v52  ;;  %5889 = vmatpush3.msra.mxu0 %v7028_v44  ;;  %v4797_v44 = vld [vmem:[%s8398_s3 + $0x378] sm:$0xff] }
 0x5bc   :  { %5855 = vmatprep.subr.mxu1 %v4778_v62  ;;  %5885 = vmatprep.mubr.f32.mxu1 %v1683_v61 }
 0x5bd   :  { %5890 = vmatprep.subr.mxu0 %v7032_v45  ;;  %5856 = vmatpush3.msra.mxu1 %v4778_v62 }
 0x5be   :  { %5891 = vmatpush3.msra.mxu0 %v7032_v45  ;;  %5857 = vmatprep.subr.mxu1 %v4777_v2  ;;  %v4796_v45 = vld [vmem:[%s8398_s3 + $0x370] sm:$0xff] }
 0x5bf   :  { %5892 = vmatprep.mubr.msk.f32.mxu0 %vm80_vm0, %v6808_v41  ;;  %5858 = vmatpush3.msra.mxu1 %v4777_v2  ;;  %v4795_v41 = vld [vmem:[%s8398_s3 + $0x368] sm:$0xff] }
 0x5c0   :  { %5893 = vmatmul.mubr.msk.f32.vlgmr.msra.gmra.mxu0 %vm80_vm0, %v6814_v42  ;;  %5859 = vmatprep.subr.mxu1 %v4776_v63  ;;  %v4773_v42 = vld [vmem:[%s8398_s3 + $0x2c8] sm:$0xff] }
 0x5c1   :  { %5860 = vmatpush3.msra.mxu1 %v4776_v63  ;;  %5895 = vmatprep.subr.mxu0 %v4797_v44  ;;  %v4828_v63 = vld [vmem:[%s8398_s3 + $0x470] sm:$0xff] }
 0x5c2   :  { %5861 = vmatprep.subr.mxu1 %v4775_v0  ;;  %5896 = vmatpush3.msra.mxu0 %v4797_v44  ;;  %v7430_v44 = vld [vmem:[%s8399_s4 + $0x78] sm:$0xff] }
 0x5c3   :  { %5862 = vmatpush3.msra.mxu1 %v4775_v0  ;;  %5897 = vmatprep.subr.mxu0 %v4796_v45  ;;  %v4826_v0 = vld [vmem:[%s8398_s3 + $0x460] sm:$0xff] }
 0x5c4   :  { %5863 = vmatprep.subr.mxu1 %v4774_v1  ;;  %5898 = vmatpush3.msra.mxu0 %v4796_v45  ;;  %v7440_v45 = vld [vmem:[%s8399_s4 + $0x70] sm:$0xff] }
 0x5c5   :  { %5864 = vmatpush3.msra.mxu1 %v4774_v1  ;;  %5899 = vmatprep.subr.mxu0 %v4795_v41  ;;  %v4825_v1 = vld [vmem:[%s8398_s3 + $0x458] sm:$0xff] }
 0x5c6   :  { %5865 = vmatprep.subr.mxu1 %v4773_v42  ;;  %5900 = vmatpush3.msra.mxu0 %v4795_v41  ;;  %v7450_v41 = vld [vmem:[%s8399_s4 + $0x68] sm:$0xff] }
 0x5c7   :  { %5866 = vmatpush3.msra.mxu1 %v4773_v42  ;;  %5901 = vmatprep.subr.mxu0 %v4794_v3  ;;  %v4824_v42 = vld [vmem:[%s8398_s3 + $0x450] sm:$0xff] }
 0x5c8   :  { %5867 = vmatprep.subr.mxu1 %v4772_v5  ;;  %5902 = vmatpush3.msra.mxu0 %v4794_v3  ;;  %v7460_v3 = vld [vmem:[%s8399_s4 + $0x60] sm:$0xff] }
 0x5c9   :  { %5868 = vmatpush3.msra.mxu1 %v4772_v5  ;;  %5903 = vmatprep.subr.mxu0 %v4793_v6  ;;  %v4823_v5 = vld [vmem:[%s8398_s3 + $0x448] sm:$0xff] }
 0x5ca   :  { %5869 = vmatprep.subr.mxu1 %v4771_v17  ;;  %5904 = vmatpush3.msra.mxu0 %v4793_v6  ;;  %v7470_v6 = vld [vmem:[%s8399_s4 + $0x58] sm:$0xff] }
 0x5cb   :  { %5870 = vmatpush3.msra.mxu1 %v4771_v17  ;;  %5905 = vmatprep.subr.mxu0 %v4792_v18  ;;  %v4822_v17 = vld [vmem:[%s8398_s3 + $0x440] sm:$0xff] }
 0x5cc   :  { %5871 = vmatprep.subr.mxu1 %v4770_v7  ;;  %5906 = vmatpush3.msra.mxu0 %v4792_v18  ;;  %v7480_v18 = vld [vmem:[%s8399_s4 + $0x50] sm:$0xff] }
 0x5cd   :  { %5872 = vmatpush3.msra.mxu1 %v4770_v7  ;;  %5907 = vmatprep.subr.mxu0 %v4791_v8  ;;  %v4821_v7 = vld [vmem:[%s8398_s3 + $0x438] sm:$0xff] }
 0x5ce   :  { %5873 = vmatprep.subr.mxu1 %v4769_v9  ;;  %5908 = vmatpush3.msra.mxu0 %v4791_v8  ;;  %v7490_v8 = vld [vmem:[%s8399_s4 + $0x48] sm:$0xff] }
 0x5cf   :  { %5874 = vmatpush3.msra.mxu1 %v4769_v9  ;;  %5909 = vmatprep.subr.mxu0 %v4790_v10  ;;  %v4820_v9 = vld [vmem:[%s8398_s3 + $0x430] sm:$0xff] }
 0x5d0   :  { %5875 = vmatprep.subr.mxu1 %v4768_v11  ;;  %v5775_v14 = vpop.f32.mrf.mxu0  ;;  %5910 = vmatpush3.msra.mxu0 %v4790_v10  ;;  %v7500_v10 = vld [vmem:[%s8399_s4 + $0x40] sm:$0xff] }
 0x5d1   :  { %5876 = vmatpush3.msra.mxu1 %v4768_v11  ;;  %v7329_v16 = vadd.f32 %v5775_v14, %v7247_v56  ;;  %5911 = vmatprep.subr.mxu0 %v4789_v12  ;;  %v4819_v11 = vld [vmem:[%s8398_s3 + $0x428] sm:$0xff]  ;;  %v6548_v14 = vld [vmem:[%s8399_s4 + $0x30] sm:$0xff] }
 0x5d2   :  { %5877 = vmatprep.subr.mxu1 %v4767_v13  ;;  %5912 = vmatpush3.msra.mxu0 %v4789_v12  ;;  %v1606_v50 = vpop.f32.mrf.mxu0  ;;  %v6547_v12 = vld [vmem:[%s8399_s4 + $0x38] sm:$0xff] }
 0x5d3   :  { %5878 = vmatpush3.msra.mxu1 %v4767_v13  ;;  %5913 = vmatprep.subr.mxu0 %v4788_v15  ;;  %v1615_v54 = vadd.f32 %v1606_v50, %v7249_v59  ;;  %v4827_v59 = vld [vmem:[%s8398_s3 + $0x468] sm:$0xff]  ;;  %v4818_v13 = vld [vmem:[%s8398_s3 + $0x420] sm:$0xff] }
 0x5d4   :  { %5879 = vmatprep.subr.mxu1 %v4766_v19  ;;  %5914 = vmatpush3.msra.mxu0 %v4788_v15  ;;  %v4817_v15 = vld [vmem:[%s8398_s3 + $0x418] sm:$0xff] }
 0x5d5   :  { %5880 = vmatpush3.msra.mxu1 %v4766_v19  ;;  %5915 = vmatprep.subr.mxu0 %v4787_v20  ;;  %v4816_v19 = vld [vmem:[%s8398_s3 + $0x410] sm:$0xff] }
 0x5d6   :  { %5881 = vmatprep.subr.mxu1 %v4765_v21  ;;  %5916 = vmatpush3.msra.mxu0 %v4787_v20  ;;  %v6550_v20 = vld [vmem:[%s8399_s4 + $0x20] sm:$0xff] }
 0x5d7   :  { %5882 = vmatpush3.msra.mxu1 %v4765_v21  ;;  %5917 = vmatprep.subr.mxu0 %v4786_v22  ;;  %v4815_v21 = vld [vmem:[%s8398_s3 + $0x408] sm:$0xff] }
 0x5d8   :  { %5883 = vmatprep.subr.mxu1 %v4764_v23  ;;  %5918 = vmatpush3.msra.mxu0 %v4786_v22  ;;  %v6551_v22 = vld [vmem:[%s8399_s4 + $0x18] sm:$0xff] }
 0x5d9   :  { %5884 = vmatpush3.msra.mxu1 %v4764_v23  ;;  %5919 = vmatprep.subr.mxu0 %v4785_v24  ;;  %v4814_v23 = vld [vmem:[%s8398_s3 + $0x400] sm:$0xff] }
 0x5da   :  { %5886 = vmatmul.mubr.f32.vlgmr.msra.gmra.mxu1 %v7251_v60  ;;  %5930 = vmatprep.subr.mxu1 %v4813_v25 }
 0x5db   :  { %5931 = vmatpush3.msra.mxu1 %v4813_v25  ;;  %5920 = vmatpush3.msra.mxu0 %v4785_v24  ;;  %v6552_v24 = vld [vmem:[%s8399_s4 + $0x10] sm:$0xff]  ;;  %v6553_v25 = vld [vmem:[%s8399_s4 + $0x8] sm:$0xff] }
 0x5dc   :  { %5932 = vmatprep.subr.mxu1 %v4812_v26  ;;  %5921 = vmatprep.subr.mxu0 %v4784_v38 }
 0x5dd   :  { %5933 = vmatpush3.msra.mxu1 %v4812_v26  ;;  %5922 = vmatpush3.msra.mxu0 %v4784_v38  ;;  %v6554_v26 = vld [vmem:[%s8399_s4] sm:$0xff] }
 0x5de   :  { %5934 = vmatprep.subr.mxu1 %v4811_v27  ;;  %5923 = vmatprep.subr.mxu0 %v4783_v46 }
 0x5df   :  { %5935 = vmatpush3.msra.mxu1 %v4811_v27  ;;  %5924 = vmatpush3.msra.mxu0 %v4783_v46 }
 0x5e0   :  { %5936 = vmatprep.subr.mxu1 %v4810_v28  ;;  %5925 = vmatprep.subr.mxu0 %v4782_v48 }
 0x5e1   :  { %5937 = vmatpush3.msra.mxu1 %v4810_v28  ;;  %5926 = vmatpush3.msra.mxu0 %v4782_v48 }
 0x5e2   :  { %5938 = vmatprep.subr.mxu1 %v4809_v30  ;;  %5965 = vmatprep.subr.mxu0 %v4829_v49 }
 0x5e3   :  { %5939 = vmatpush3.msra.mxu1 %v4809_v30 }
 0x5e4   :  { %5940 = vmatprep.subr.mxu1 %v4808_v31 }
 0x5e5   :  { %5941 = vmatpush3.msra.mxu1 %v4808_v31 }
 0x5e6   :  { %5942 = vmatprep.subr.mxu1 %v4807_v32 }
 0x5e7   :  { %5943 = vmatpush3.msra.mxu1 %v4807_v32 }
 0x5e8   :  { %5944 = vmatprep.subr.mxu1 %v4806_v34 }
 0x5e9   :  { %5945 = vmatpush3.msra.mxu1 %v4806_v34 }
 0x5ea   :  { %5946 = vmatprep.subr.mxu1 %v4805_v35 }
 0x5eb   :  { %5947 = vmatpush3.msra.mxu1 %v4805_v35 }
 0x5ec   :  { %5948 = vmatprep.subr.mxu1 %v4804_v36 }
 0x5ed   :  { %5949 = vmatpush3.msra.mxu1 %v4804_v36 }
 0x5ee   :  { %5950 = vmatprep.subr.mxu1 %v4803_v37 }
 0x5ef   :  { %5951 = vmatpush3.msra.mxu1 %v4803_v37 }
 0x5f0   :  { %5952 = vmatprep.subr.mxu1 %v4802_v39 }
 0x5f1   :  { %5953 = vmatpush3.msra.mxu1 %v4802_v39 }
 0x5f2   :  { %5954 = vmatprep.subr.mxu1 %v4801_v43 }
 0x5f3   :  { %5955 = vmatpush3.msra.mxu1 %v4801_v43 }
 0x5f4   :  { %5956 = vmatprep.subr.mxu1 %v4800_v40 }
 0x5f5   :  { %5957 = vmatpush3.msra.mxu1 %v4800_v40 }
 0x5f6   :  { %5958 = vmatprep.subr.mxu1 %v4799_v47 }
 0x5f7   :  { %5959 = vmatpush3.msra.mxu1 %v4799_v47 }
 0x5f8   :  { %5960 = vmatprep.subr.mxu1 %v4798_v4 }
 0x5f9   :  { %5961 = vmatpush3.msra.mxu1 %v4798_v4 }
 0x5fa   :  { %6000 = vmatprep.subr.mxu1 %v6577_v53 }
 0x67a   :  { %v5817_v51 = vpop.f32.mrf.mxu1  ;;  %v5852_v52 = vpop.f32.mrf.mxu0 }
 0x67b   :  { %v1785_v55 = vadd.f32 %v5817_v51, %v7329_v16  ;;  %v6549_v16 = vld [vmem:[%s8399_s4 + $0x28] sm:$0xff] }
 0x67c   :  { %v1775_v56 = vpop.f32.mrf.mxu1  ;;  %v1869_v57 = vpop.f32.mrf.mxu0 }
 0x67d   :  { %v7413_v58 = vadd.f32 %v5852_v52, %v1785_v55  ;;  %v1784_v60 = vadd.f32 %v1775_v56, %v1615_v54 }
 0x67f   :  { %v7415_v61 = vadd.f32 %v1869_v57, %v1784_v60 }
 0x680   :  { %v7417_v62 = vpop.f32.mrf.mxu0 }
 0x682   :  { %v2040_v2 = vpop.f32.mrf.mxu0 }
 0x683   :  { %5927 = vmatprep.mubr.f32.mxu0 %v2040_v2  ;;  %5962 = vmatprep.mubr.f32.mxu1 %v2040_v2 }
 0x684   :  { %5928 = vmatmul.mubr.f32.vlgmr.msra.gmra.mxu0 %v7417_v62  ;;  %5963 = vmatmul.mubr.f32.vlgmr.msra.gmra.mxu1 %v7417_v62 }
 0x685   :  { %5966 = vmatpush3.msra.mxu0 %v4829_v49  ;;  %5997 = vmatprep.mubr.f32.mxu0 %v2040_v2 }
 0x686   :  { %5967 = vmatprep.subr.mxu0 %v4828_v63  ;;  %6001 = vmatpush3.msra.mxu1 %v7430_v44 }
 0x687   :  { %5968 = vmatpush3.msra.mxu0 %v4828_v63  ;;  %6002 = vmatprep.subr.mxu1 %v6577_v53 }
 0x688   :  { %5969 = vmatprep.subr.mxu0 %v4827_v59  ;;  %6003 = vmatpush3.msra.mxu1 %v7440_v45 }
 0x689   :  { %5970 = vmatpush3.msra.mxu0 %v4827_v59  ;;  %6004 = vmatprep.subr.mxu1 %v6577_v53 }
 0x68a   :  { %5971 = vmatprep.subr.mxu0 %v4826_v0  ;;  %6005 = vmatpush3.msra.mxu1 %v7450_v41 }
 0x68b   :  { %5972 = vmatpush3.msra.mxu0 %v4826_v0  ;;  %6006 = vmatprep.subr.mxu1 %v6577_v53  ;;  %v2602_v0 = vld [vmem:[%s8403_s8 + $0x70] sm:$0xff] }
 0x68c   :  { %5973 = vmatprep.subr.mxu0 %v4825_v1  ;;  %6007 = vmatpush3.msra.mxu1 %v7460_v3 }
 0x68d   :  { %5974 = vmatpush3.msra.mxu0 %v4825_v1  ;;  %6008 = vmatprep.subr.mxu1 %v6577_v53  ;;  %v2600_v1 = vld [vmem:[%s8403_s8 + $0x60] sm:$0xff] }
 0x68e   :  { %5975 = vmatprep.subr.mxu0 %v4824_v42  ;;  %6009 = vmatpush3.msra.mxu1 %v7470_v6 }
 0x68f   :  { %5976 = vmatpush3.msra.mxu0 %v4824_v42  ;;  %6010 = vmatprep.subr.mxu1 %v6577_v53  ;;  %v2598_v42 = vld [vmem:[%s8403_s8 + $0x50] sm:$0xff] }
 0x690   :  { %5977 = vmatprep.subr.mxu0 %v4823_v5  ;;  %6011 = vmatpush3.msra.mxu1 %v7480_v18 }
 0x691   :  { %5978 = vmatpush3.msra.mxu0 %v4823_v5  ;;  %6012 = vmatprep.subr.mxu1 %v6577_v53  ;;  %v2596_v5 = vld [vmem:[%s8403_s8 + $0x40] sm:$0xff] }
 0x692   :  { %5979 = vmatprep.subr.mxu0 %v4822_v17  ;;  %6013 = vmatpush3.msra.mxu1 %v7490_v8 }
 0x693   :  { %5980 = vmatpush3.msra.mxu0 %v4822_v17  ;;  %6014 = vmatprep.subr.mxu1 %v6577_v53  ;;  %v2594_v17 = vld [vmem:[%s8403_s8 + $0x30] sm:$0xff] }
 0x694   :  { %5981 = vmatprep.subr.mxu0 %v4821_v7  ;;  %6015 = vmatpush3.msra.mxu1 %v7500_v10 }
 0x695   :  { %5982 = vmatpush3.msra.mxu0 %v4821_v7  ;;  %6016 = vmatprep.subr.mxu1 %v6577_v53  ;;  %v2592_v7 = vld [vmem:[%s8403_s8 + $0x20] sm:$0xff] }
 0x696   :  { %5983 = vmatprep.subr.mxu0 %v4820_v9  ;;  %6017 = vmatpush3.msra.mxu1 %v6547_v12 }
 0x697   :  { %5984 = vmatpush3.msra.mxu0 %v4820_v9  ;;  %6018 = vmatprep.subr.mxu1 %v6577_v53  ;;  %v2590_v9 = vld [vmem:[%s8403_s8 + $0x10] sm:$0xff] }
 0x698   :  { %5985 = vmatprep.subr.mxu0 %v4819_v11  ;;  %6019 = vmatpush3.msra.mxu1 %v6548_v14 }
 0x699   :  { %5986 = vmatpush3.msra.mxu0 %v4819_v11  ;;  %6020 = vmatprep.subr.mxu1 %v6577_v53  ;;  %v2588_v11 = vld [vmem:[%s8403_s8] sm:$0xff] }
 0x69a   :  { %5987 = vmatprep.subr.mxu0 %v4818_v13  ;;  %6021 = vmatpush3.msra.mxu1 %v6549_v16  ;;  %v5887_v27 = vpop.f32.mrf.mxu1 }
 0x69b   :  { %5988 = vmatpush3.msra.mxu0 %v4818_v13  ;;  %6022 = vmatprep.subr.mxu1 %v6577_v53  ;;  %v1973_v31 = vadd.f32 %v5887_v27, %v7413_v58 }
 0x69c   :  { %5989 = vmatprep.subr.mxu0 %v4817_v15  ;;  %6023 = vmatpush3.msra.mxu1 %v6550_v20  ;;  %v1963_v30 = vpop.f32.mrf.mxu1 }
 0x69d   :  { %5990 = vmatpush3.msra.mxu0 %v4817_v15  ;;  %6024 = vmatprep.subr.mxu1 %v6577_v53  ;;  %v1972_v34 = vadd.f32 %v1963_v30, %v7415_v61 }
 0x69e   :  { %5991 = vmatprep.subr.mxu0 %v4816_v19  ;;  %6025 = vmatpush3.msra.mxu1 %v6551_v22 }
 0x69f   :  { %5992 = vmatpush3.msra.mxu0 %v4816_v19  ;;  %6026 = vmatprep.subr.mxu1 %v6577_v53 }
 0x6a0   :  { %5993 = vmatprep.subr.mxu0 %v4815_v21  ;;  %6027 = vmatpush3.msra.mxu1 %v6552_v24 }
 0x6a1   :  { %5994 = vmatpush3.msra.mxu0 %v4815_v21  ;;  %6028 = vmatprep.subr.mxu1 %v6577_v53 }
 0x6a2   :  { %5995 = vmatprep.subr.mxu0 %v4814_v23  ;;  %6029 = vmatpush3.msra.mxu1 %v6553_v25 }
 0x6a3   :  { %5996 = vmatpush3.msra.mxu0 %v4814_v23  ;;  %6030 = vmatprep.subr.mxu1 %v6577_v53  ;;  %v2491_v23 = vld [vmem:[%s8401_s6] sm:$0x3] }
 0x6a4   :  { %5998 = vmatmul.mubr.f32.vlgmr.msra.gmra.mxu0 %v7417_v62  ;;  %6035 = vmatprep.subr.mxu0 %v6577_v53 }
 0x6a5   :  { %6036 = vmatpush3.msra.mxu0 %v7430_v44  ;;  %6031 = vmatpush3.msra.mxu1 %v6554_v26  ;;  %v2603_v44 = vld [vmem:[%s8403_s8 + $0x78] sm:$0xff] }
 0x6a6   :  { %6037 = vmatprep.subr.mxu0 %v6577_v53  ;;  %6032 = vmatprep.mubr.msk.f32.mxu1 %vm6578_vm2, %v6577_v53 }
 0x6a7   :  { %6038 = vmatpush3.msra.mxu0 %v7440_v45  ;;  %6067 = vmatprep.mubr.msk.f32.mxu0 %vm6578_vm2, %v6577_v53  ;;  %v2601_v45 = vld [vmem:[%s8403_s8 + $0x68] sm:$0xff] }
 0x6a8   :  { %6039 = vmatprep.subr.mxu0 %v6577_v53  ;;  %6070 = vmatprep.subr.mxu1 %v6577_v53 }
 0x6a9   :  { %6040 = vmatpush3.msra.mxu0 %v7450_v41  ;;  %v2599_v41 = vld [vmem:[%s8403_s8 + $0x58] sm:$0xff] }
 0x6aa   :  { %6041 = vmatprep.subr.mxu0 %v6577_v53 }
 0x6ab   :  { %6042 = vmatpush3.msra.mxu0 %v7460_v3  ;;  %v2597_v3 = vld [vmem:[%s8403_s8 + $0x48] sm:$0xff] }
 0x6ac   :  { %6043 = vmatprep.subr.mxu0 %v6577_v53 }
 0x6ad   :  { %6044 = vmatpush3.msra.mxu0 %v7470_v6  ;;  %v2595_v6 = vld [vmem:[%s8403_s8 + $0x38] sm:$0xff] }
 0x6ae   :  { %6045 = vmatprep.subr.mxu0 %v6577_v53 }
 0x6af   :  { %6046 = vmatpush3.msra.mxu0 %v7480_v18  ;;  %v2593_v18 = vld [vmem:[%s8403_s8 + $0x28] sm:$0xff] }
 0x6b0   :  { %6047 = vmatprep.subr.mxu0 %v6577_v53 }
 0x6b1   :  { %6048 = vmatpush3.msra.mxu0 %v7490_v8  ;;  %v2591_v8 = vld [vmem:[%s8403_s8 + $0x18] sm:$0xff] }
 0x6b2   :  { %6049 = vmatprep.subr.mxu0 %v6577_v53 }
 0x6b3   :  { %6050 = vmatpush3.msra.mxu0 %v7500_v10  ;;  %v2589_v10 = vld [vmem:[%s8403_s8 + $0x8] sm:$0xff] }
 0x6b4   :  { %6051 = vmatprep.subr.mxu0 %v6577_v53 }
 0x6b5   :  { %6052 = vmatpush3.msra.mxu0 %v6547_v12 }
 0x6b6   :  { %6053 = vmatprep.subr.mxu0 %v6577_v53 }
 0x6b7   :  { %6054 = vmatpush3.msra.mxu0 %v6548_v14 }
 0x6b8   :  { %6055 = vmatprep.subr.mxu0 %v6577_v53 }
 0x6b9   :  { %6056 = vmatpush3.msra.mxu0 %v6549_v16 }
 0x6ba   :  { %6057 = vmatprep.subr.mxu0 %v6577_v53 }
 0x6bb   :  { %6058 = vmatpush3.msra.mxu0 %v6550_v20 }
 0x6bc   :  { %6059 = vmatprep.subr.mxu0 %v6577_v53 }
 0x6bd   :  { %6060 = vmatpush3.msra.mxu0 %v6551_v22 }
 0x6be   :  { %6061 = vmatprep.subr.mxu0 %v6577_v53 }
 0x6bf   :  { %6062 = vmatpush3.msra.mxu0 %v6552_v24 }
 0x6c0   :  { %6063 = vmatprep.subr.mxu0 %v6577_v53 }
 0x6c1   :  { %6064 = vmatpush3.msra.mxu0 %v6553_v25 }
 0x6c2   :  { %6065 = vmatprep.subr.mxu0 %v6577_v53 }
 0x6c3   :  { %6066 = vmatpush3.msra.mxu0 %v6554_v26 }
 0x6c4   :  { %6119 = vmatprep.subr.mxu0 %v6577_v53 }
 0x744   :  { %v5929_v28 = vpop.f32.mrf.mxu0  ;;  %v5964_v36 = vpop.f32.mrf.mxu1 }
 0x745   :  { %v2142_v35 = vadd.f32 %v5929_v28, %v1973_v31 }
 0x746   :  { %v2132_v32 = vpop.f32.mrf.mxu0  ;;  %v2226_v43 = vpop.f32.mrf.mxu1 }
 0x747   :  { %v2141_v37 = vadd.f32 %v2132_v32, %v1972_v34  ;;  %v2236_v39 = vadd.f32 %v5964_v36, %v2142_v35 }
 0x749   :  { %v2235_v40 = vadd.f32 %v2226_v43, %v2141_v37  ;;  %v2514_v43 = vld [vmem:[%s8402_s7] sm:$0x3] }
 0x764   :  { %v5999_v38 = vpop.f32.mrf.mxu0 }
 0x765   :  { %v7586_v46 = vadd.f32 %v5999_v38, %v2236_v39  ;;  %v4831_v38 = vld [vmem:[%s8402_s7 + $0x2] sm:$0x3] }
 0x766   :  { %v2320_v47 = vpop.f32.mrf.mxu0 }
 0x767   :  { %v7588_v48 = vadd.f32 %v2320_v47, %v2235_v40  ;;  %v2339_v4 = vmul.f32 %v7586_v46, %v7586_v46  ;;  %v4848_v40 = vld [vmem:[%s8403_s8 + $0xf8] sm:$0xff]  ;;  %v4846_v47 = vld [vmem:[%s8403_s8 + $0xe8] sm:$0xff] }
 0x769   :  { %v2331_v49 = vadd.f32 %v7586_v46, %v7588_v48  ;;  %v2338_v50 = vmul.f32 %v7588_v48, %v7588_v48 }
 0x76b   :  { %v2332_v51 = vrot.slane %v2331_v49, 4  ;;  %v2340_v52 = vadd.f32 %v2339_v4, %v2338_v50  ;;  %v4844_v4 = vld [vmem:[%s8403_s8 + $0xd8] sm:$0xff]  ;;  %v4842_v50 = vld [vmem:[%s8403_s8 + $0xc8] sm:$0xff] }
 0x76d   :  { %v2333_v54 = vadd.f32 %v2332_v51, %v2331_v49  ;;  %v2341_v55 = vrot.slane %v2340_v52, 4  ;;  %v4843_v49 = vld [vmem:[%s8403_s8 + $0xd0] sm:$0xff]  ;;  %v4841_v51 = vld [vmem:[%s8403_s8 + $0xc0] sm:$0xff] }
 0x76f   :  { %v2334_v56 = vrot.slane %v2333_v54, 2  ;;  %v2342_v57 = vadd.f32 %v2341_v55, %v2340_v52  ;;  %v4840_v52 = vld [vmem:[%s8403_s8 + $0xb8] sm:$0xff]  ;;  %v4838_v55 = vld [vmem:[%s8403_s8 + $0xa8] sm:$0xff] }
 0x771   :  { %v2335_v58 = vadd.f32 %v2334_v56, %v2333_v54  ;;  %v2343_v60 = vrot.slane %v2342_v57, 2  ;;  %v4839_v54 = vld [vmem:[%s8403_s8 + $0xb0] sm:$0xff]  ;;  %v4837_v56 = vld [vmem:[%s8403_s8 + $0xa0] sm:$0xff] }
 0x773   :  { %v2336_v61 = vrot.slane %v2335_v58, 1  ;;  %v2344_v62 = vadd.f32 %v2343_v60, %v2342_v57  ;;  %v4836_v57 = vld [vmem:[%s8403_s8 + $0x98] sm:$0xff]  ;;  %v4834_v60 = vld [vmem:[%s8403_s8 + $0x88] sm:$0xff] }
 0x775   :  { %v2337_v2 = vadd.f32 %v2336_v61, %v2335_v58  ;;  %v2345_v63 = vrot.slane %v2344_v62, 1  ;;  %v4835_v58 = vld [vmem:[%s8403_s8 + $0x90] sm:$0xff]  ;;  %v4833_v61 = vld [vmem:[%s8403_s8 + $0x80] sm:$0xff] }
 0x777   :  { %6033 = vmatmul.mubr.f32.vlgmr.msra.gmra.mxu1 %v2337_v2  ;;  %v2346_v59 = vadd.f32 %v2345_v63, %v2344_v62  ;;  %v4867_v63 = vld [vmem:[%s8402_s7 + $0x6] sm:$0x3] }
 0x778   :  { %6074 = vmatprep.mubr.msk.f32.mxu1 %vm6578_vm2, %v6577_v53 }
 0x779   :  { %6068 = vmatmul.mubr.f32.vlgmr.msra.gmra.mxu0 %v2346_v59 }
 0x77a   :  { %6151 = vmatprep.mubr.msk.f32.mxu0 %vm6578_vm2, %v6577_v53  ;;  %6120 = vmatpush3.msra.mxu0 %v2603_v44  ;;  %v4884_v44 = vld [vmem:[%s8403_s8 + $0x1f8] sm:$0xff] }
 0x77b   :  { %6121 = vmatprep.subr.mxu0 %v6577_v53 }
 0x77c   :  { %6122 = vmatpush3.msra.mxu0 %v2602_v0 }
 0x77d   :  { %6123 = vmatprep.subr.mxu0 %v6577_v53 }
 0x77e   :  { %6124 = vmatpush3.msra.mxu0 %v2601_v45  ;;  %v4849_v45 = vld [vmem:[%s8402_s7 + $0x4] sm:$0x3] }
 0x77f   :  { %6125 = vmatprep.subr.mxu0 %v6577_v53 }
 0x780   :  { %6126 = vmatpush3.msra.mxu0 %v2600_v1  ;;  %v4883_v1 = vld [vmem:[%s8403_s8 + $0x1f0] sm:$0xff] }
 0x781   :  { %6127 = vmatprep.subr.mxu0 %v6577_v53 }
 0x782   :  { %6128 = vmatpush3.msra.mxu0 %v2599_v41  ;;  %v4866_v41 = vld [vmem:[%s8403_s8 + $0x178] sm:$0xff] }
 0x783   :  { %6129 = vmatprep.subr.mxu0 %v6577_v53 }
 0x784   :  { %6130 = vmatpush3.msra.mxu0 %v2598_v42  ;;  %v4882_v42 = vld [vmem:[%s8403_s8 + $0x1e8] sm:$0xff] }
 0x785   :  { %6131 = vmatprep.subr.mxu0 %v6577_v53 }
 0x786   :  { %6132 = vmatpush3.msra.mxu0 %v2597_v3  ;;  %v4865_v3 = vld [vmem:[%s8403_s8 + $0x170] sm:$0xff] }
 0x787   :  { %6133 = vmatprep.subr.mxu0 %v6577_v53 }
 0x788   :  { %6134 = vmatpush3.msra.mxu0 %v2596_v5  ;;  %v4881_v5 = vld [vmem:[%s8403_s8 + $0x1e0] sm:$0xff] }
 0x789   :  { %6135 = vmatprep.subr.mxu0 %v6577_v53 }
 0x78a   :  { %6136 = vmatpush3.msra.mxu0 %v2595_v6  ;;  %v4864_v6 = vld [vmem:[%s8403_s8 + $0x168] sm:$0xff] }
 0x78b   :  { %6137 = vmatprep.subr.mxu0 %v6577_v53 }
 0x78c   :  { %6138 = vmatpush3.msra.mxu0 %v2594_v17  ;;  %v4880_v17 = vld [vmem:[%s8403_s8 + $0x1d8] sm:$0xff] }
 0x78d   :  { %6139 = vmatprep.subr.mxu0 %v6577_v53 }
 0x78e   :  { %6140 = vmatpush3.msra.mxu0 %v2593_v18  ;;  %v4863_v18 = vld [vmem:[%s8403_s8 + $0x160] sm:$0xff] }
 0x78f   :  { %6141 = vmatprep.subr.mxu0 %v6577_v53 }
 0x790   :  { %6142 = vmatpush3.msra.mxu0 %v2592_v7  ;;  %v4879_v7 = vld [vmem:[%s8403_s8 + $0x1d0] sm:$0xff] }
 0x791   :  { %6143 = vmatprep.subr.mxu0 %v6577_v53 }
 0x792   :  { %6144 = vmatpush3.msra.mxu0 %v2591_v8  ;;  %v4862_v8 = vld [vmem:[%s8403_s8 + $0x158] sm:$0xff] }
 0x793   :  { %6145 = vmatprep.subr.mxu0 %v6577_v53 }
 0x794   :  { %6146 = vmatpush3.msra.mxu0 %v2590_v9  ;;  %v4878_v9 = vld [vmem:[%s8403_s8 + $0x1c8] sm:$0xff] }
 0x795   :  { %6147 = vmatprep.subr.mxu0 %v6577_v53 }
 0x796   :  { %6148 = vmatpush3.msra.mxu0 %v2589_v10  ;;  %v4861_v10 = vld [vmem:[%s8403_s8 + $0x150] sm:$0xff] }
 0x797   :  { %6149 = vmatprep.subr.mxu0 %v6577_v53 }
 0x798   :  { %6150 = vmatpush3.msra.mxu0 %v2588_v11  ;;  %v4877_v11 = vld [vmem:[%s8403_s8 + $0x1c0] sm:$0xff] }
 0x799   :  { %6196 = vmatprep.subr.mxu0 %v6577_v53 }
 0x837   :  { %v2413_v12 = vpop.f32.mrf.mxu1 }
 0x838   :  { %v2417_v13 = vmul.f32 0.0078125, %v2413_v12  ;;  %v4860_v12 = vld [vmem:[%s8403_s8 + $0x148] sm:$0xff] }
 0x839   :  { %v6034_v14 = vpop.f32.mrf.mxu1  ;;  %v2484_v15 = vpop.f32.mrf.mxu0 }
 0x83a   :  { %v2489_v16 = vmul.f32 %v2417_v13, %v2417_v13  ;;  %v2488_v19 = vmul.f32 0.0078125, %v2484_v15  ;;  %v4859_v14 = vld [vmem:[%s8403_s8 + $0x140] sm:$0xff]  ;;  %v4875_v15 = vld [vmem:[%s8403_s8 + $0x1b0] sm:$0xff] }
 0x83b   :  { %v6069_v20 = vpop.f32.mrf.mxu0 }
 0x83c   :  { %v2490_v21 = vsub.f32 %v2488_v19, %v2489_v16  ;;  %v4858_v16 = vld [vmem:[%s8403_s8 + $0x138] sm:$0xff]  ;;  %v4874_v19 = vld [vmem:[%s8403_s8 + $0x1a8] sm:$0xff]  ;;  %v4857_v20 = vld [vmem:[%s8403_s8 + $0x130] sm:$0xff] }
 0x83e   :  { %v2492_v22 = vadd.f32 1e-05, %v2490_v21  ;;  %v4873_v21 = vld [vmem:[%s8403_s8 + $0x1a0] sm:$0xff] }
 0x840   :  { %6499 = vrsqrt.f32 %v2492_v22  ;;  %v4856_v22 = vld [vmem:[%s8403_s8 + $0x128] sm:$0xff] }
 0x84d   :  { %v6500_v24 = vpop.eup %6499 }
 0x84e   :  { %v2494_v25 = vmul.f32 %v6500_v24, %v2491_v23  ;;  %v4855_v24 = vld [vmem:[%s8403_s8 + $0x120] sm:$0xff] }
 0x850   :  { %v2495_v26 = vmul.f32 %v2494_v25, %v2417_v13  ;;  %v2503_v28 = vrot.slane %v2494_v25, %v7020_v29  ;;  %v4876_v13 = vld [vmem:[%s8403_s8 + $0x1b8] sm:$0xff]  ;;  %v4871_v25 = vld [vmem:[%s8403_s8 + $0x190] sm:$0xff] }
 0x852   :  { %v2497_v27 = vrot.slane %v2495_v26, 7  ;;  %v2504_v31 = vmul.f32 %v2503_v28, %v7588_v48  ;;  %v2505_v32 = vmul.f32 %v2503_v28, %v7586_v46  ;;  %v4847_v46 = vld [vmem:[%s8403_s8 + $0xf0] sm:$0xff]  ;;  %v4845_v48 = vld [vmem:[%s8403_s8 + $0xe0] sm:$0xff]  ;;  %v4854_v26 = vld [vmem:[%s8403_s8 + $0x118] sm:$0xff] }
 0x853   :  { %v4853_v28 = vld [vmem:[%s8403_s8 + $0x110] sm:$0xff] }
 0x854   :  { %v2499_v30 = vsub.f32 %v2491_v23, %v2497_v27  ;;  %v4872_v23 = vld [vmem:[%s8403_s8 + $0x198] sm:$0xff]  ;;  %v4870_v27 = vld [vmem:[%s8403_s8 + $0x188] sm:$0xff] }
 0x856   :  { %v2509_v34 = vrot.slane %v2499_v30, %v7023_v33  ;;  %v4869_v30 = vld [vmem:[%s8403_s8 + $0x180] sm:$0xff] }
 0x858   :  { %v2510_v35 = vadd.f32 %v2509_v34, %v2504_v31  ;;  %v2511_v36 = vadd.f32 %v2509_v34, %v2505_v32  ;;  %v4852_v31 = vld [vmem:[%s8403_s8 + $0x108] sm:$0xff]  ;;  %v4851_v32 = vld [vmem:[%s8403_s8 + $0x100] sm:$0xff] }
 0x85a   :  { %v7671_v37 = vmax.f32 %v2511_v36, 0.0  ;;  %v7673_v39 = vmax.f32 %v2510_v35, 0.0 }
 0x85c   :  { %6071 = vmatpush3.msra.mxu1 %v7671_v37 }
 0x85d   :  { %6072 = vmatprep.subr.mxu1 %v6577_v53 }
 0x85e   :  { %6073 = vmatpush3.msra.mxu1 %v7673_v39 }
 0x85f   :  { %6075 = vmatmul.mubr.msk.f32.vlgmr.msra.gmra.mxu1 %vm80_vm0, %v2514_v43  ;;  %6077 = vmatprep.subr.mxu1 %v6577_v53 }
 0x860   :  { %6078 = vmatpush3.msra.mxu1 %v7671_v37  ;;  %6081 = vmatprep.mubr.msk.f32.mxu1 %vm6578_vm2, %v6577_v53 }
 0x861   :  { %6079 = vmatprep.subr.mxu1 %v6577_v53 }
 0x862   :  { %6080 = vmatpush3.msra.mxu1 %v7673_v39 }
 0x863   :  { %6082 = vmatmul.mubr.msk.f32.vlgmr.msra.gmra.mxu1 %vm80_vm0, %v4831_v38  ;;  %6084 = vmatprep.subr.mxu1 %v6577_v53 }
 0x864   :  { %6085 = vmatpush3.msra.mxu1 %v4848_v40  ;;  %6116 = vmatprep.mubr.msk.f32.mxu1 %vm6578_vm2, %v6577_v53 }
 0x865   :  { %6086 = vmatprep.subr.mxu1 %v6577_v53 }
 0x866   :  { %6087 = vmatpush3.msra.mxu1 %v4847_v46  ;;  %v4903_v46 = vld [vmem:[%s8402_s7 + $0xa] sm:$0x3] }
 0x867   :  { %6088 = vmatprep.subr.mxu1 %v6577_v53 }
 0x868   :  { %6089 = vmatpush3.msra.mxu1 %v4846_v47 }
 0x869   :  { %6090 = vmatprep.subr.mxu1 %v6577_v53 }
 0x86a   :  { %6091 = vmatpush3.msra.mxu1 %v4845_v48 }
 0x86b   :  { %6092 = vmatprep.subr.mxu1 %v6577_v53 }
 0x86c   :  { %6093 = vmatpush3.msra.mxu1 %v4844_v4  ;;  %v4920_v4 = vld [vmem:[%s8403_s8 + $0x2f8] sm:$0xff] }
 0x86d   :  { %6094 = vmatprep.subr.mxu1 %v6577_v53 }
 0x86e   :  { %6095 = vmatpush3.msra.mxu1 %v4843_v49 }
 0x86f   :  { %6096 = vmatprep.subr.mxu1 %v6577_v53 }
 0x870   :  { %6097 = vmatpush3.msra.mxu1 %v4842_v50  ;;  %v4885_v50 = vld [vmem:[%s8402_s7 + $0x8] sm:$0x3] }
 0x871   :  { %6098 = vmatprep.subr.mxu1 %v6577_v53 }
 0x872   :  { %6099 = vmatpush3.msra.mxu1 %v4841_v51  ;;  %v4919_v51 = vld [vmem:[%s8403_s8 + $0x2f0] sm:$0xff] }
 0x873   :  { %6100 = vmatprep.subr.mxu1 %v6577_v53 }
 0x874   :  { %6101 = vmatpush3.msra.mxu1 %v4840_v52  ;;  %v4902_v52 = vld [vmem:[%s8403_s8 + $0x278] sm:$0xff] }
 0x875   :  { %6102 = vmatprep.subr.mxu1 %v6577_v53 }
 0x876   :  { %6103 = vmatpush3.msra.mxu1 %v4839_v54  ;;  %v4918_v54 = vld [vmem:[%s8403_s8 + $0x2e8] sm:$0xff] }
 0x877   :  { %6104 = vmatprep.subr.mxu1 %v6577_v53 }
 0x878   :  { %6105 = vmatpush3.msra.mxu1 %v4838_v55  ;;  %v4901_v55 = vld [vmem:[%s8403_s8 + $0x270] sm:$0xff] }
 0x879   :  { %6106 = vmatprep.subr.mxu1 %v6577_v53 }
 0x87a   :  { %6107 = vmatpush3.msra.mxu1 %v4837_v56  ;;  %v4917_v56 = vld [vmem:[%s8403_s8 + $0x2e0] sm:$0xff] }
 0x87b   :  { %6108 = vmatprep.subr.mxu1 %v6577_v53 }
 0x87c   :  { %6109 = vmatpush3.msra.mxu1 %v4836_v57  ;;  %v4900_v57 = vld [vmem:[%s8403_s8 + $0x268] sm:$0xff] }
 0x87d   :  { %6110 = vmatprep.subr.mxu1 %v6577_v53 }
 0x87e   :  { %6111 = vmatpush3.msra.mxu1 %v4835_v58  ;;  %v4916_v58 = vld [vmem:[%s8403_s8 + $0x2d8] sm:$0xff] }
 0x87f   :  { %6112 = vmatprep.subr.mxu1 %v6577_v53 }
 0x880   :  { %6113 = vmatpush3.msra.mxu1 %v4834_v60  ;;  %v4899_v60 = vld [vmem:[%s8403_s8 + $0x260] sm:$0xff] }
 0x881   :  { %6114 = vmatprep.subr.mxu1 %v6577_v53 }
 0x882   :  { %6115 = vmatpush3.msra.mxu1 %v4833_v61  ;;  %v4915_v61 = vld [vmem:[%s8403_s8 + $0x2d0] sm:$0xff] }
 0x883   :  { %6154 = vmatprep.subr.mxu1 %v6577_v53 }
 0x91f   :  { %v2584_v62 = vpop.f32.mrf.mxu1 }
 0x920   :  { %6152 = vmatmul.mubr.f32.vlgmr.msra.gmra.mxu0 %v2584_v62  ;;  %v4898_v62 = vld [vmem:[%s8403_s8 + $0x258] sm:$0xff] }
 0x921   :  { %6197 = vmatpush3.msra.mxu0 %v7671_v37  ;;  %v6076_v2 = vpop.f32.mrf.mxu1  ;;  %6200 = vmatprep.mubr.msk.f32.mxu0 %vm6578_vm2, %v6577_v53 }
 0x922   :  { %6198 = vmatprep.subr.mxu0 %v6577_v53  ;;  %v4914_v2 = vld [vmem:[%s8403_s8 + $0x2c8] sm:$0xff] }
 0x923   :  { %6199 = vmatpush3.msra.mxu0 %v7673_v39  ;;  %v2675_v59 = vpop.f32.mrf.mxu1 }
 0x924   :  { %6117 = vmatmul.mubr.f32.vlgmr.msra.gmra.mxu1 %v2675_v59  ;;  %6201 = vmatmul.mubr.msk.f32.vlgmr.msra.gmra.mxu0 %vm80_vm0, %v4867_v63  ;;  %v4897_v63 = vld [vmem:[%s8403_s8 + $0x250] sm:$0xff]  ;;  %v4913_v59 = vld [vmem:[%s8403_s8 + $0x2c0] sm:$0xff] }
 0x925   :  { %6155 = vmatpush3.msra.mxu1 %v7671_v37  ;;  %v6083_v0 = vpop.f32.mrf.mxu1  ;;  %6158 = vmatprep.mubr.msk.f32.mxu1 %vm6578_vm2, %v6577_v53 }
 0x926   :  { %6156 = vmatprep.subr.mxu1 %v6577_v53  ;;  %6203 = vmatprep.subr.mxu0 %v6577_v53  ;;  %v4912_v0 = vld [vmem:[%s8403_s8 + $0x2b8] sm:$0xff] }
 0x927   :  { %6157 = vmatpush3.msra.mxu1 %v7673_v39  ;;  %6204 = vmatpush3.msra.mxu0 %v4884_v44  ;;  %v4896_v44 = vld [vmem:[%s8403_s8 + $0x248] sm:$0xff] }
 0x928   :  { %6159 = vmatmul.mubr.msk.f32.vlgmr.msra.gmra.mxu1 %vm80_vm0, %v4849_v45  ;;  %6205 = vmatprep.subr.mxu0 %v6577_v53  ;;  %v4895_v45 = vld [vmem:[%s8403_s8 + $0x240] sm:$0xff] }
 0x929   :  { %6206 = vmatpush3.msra.mxu0 %v4883_v1  ;;  %6161 = vmatprep.subr.mxu1 %v6577_v53  ;;  %v4911_v1 = vld [vmem:[%s8403_s8 + $0x2b0] sm:$0xff] }
 0x92a   :  { %6207 = vmatprep.subr.mxu0 %v6577_v53  ;;  %6162 = vmatpush3.msra.mxu1 %v4866_v41  ;;  %v4894_v41 = vld [vmem:[%s8403_s8 + $0x238] sm:$0xff] }
 0x92b   :  { %6208 = vmatpush3.msra.mxu0 %v4882_v42  ;;  %6163 = vmatprep.subr.mxu1 %v6577_v53  ;;  %v4910_v42 = vld [vmem:[%s8403_s8 + $0x2a8] sm:$0xff] }
 0x92c   :  { %6209 = vmatprep.subr.mxu0 %v6577_v53  ;;  %6164 = vmatpush3.msra.mxu1 %v4865_v3  ;;  %v4893_v3 = vld [vmem:[%s8403_s8 + $0x230] sm:$0xff] }
 0x92d   :  { %6210 = vmatpush3.msra.mxu0 %v4881_v5  ;;  %6165 = vmatprep.subr.mxu1 %v6577_v53  ;;  %v4909_v5 = vld [vmem:[%s8403_s8 + $0x2a0] sm:$0xff] }
 0x92e   :  { %6211 = vmatprep.subr.mxu0 %v6577_v53  ;;  %6166 = vmatpush3.msra.mxu1 %v4864_v6  ;;  %v4892_v6 = vld [vmem:[%s8403_s8 + $0x228] sm:$0xff] }
 0x92f   :  { %6212 = vmatpush3.msra.mxu0 %v4880_v17  ;;  %6167 = vmatprep.subr.mxu1 %v6577_v53  ;;  %v4908_v17 = vld [vmem:[%s8403_s8 + $0x298] sm:$0xff] }
 0x930   :  { %6213 = vmatprep.subr.mxu0 %v6577_v53  ;;  %6168 = vmatpush3.msra.mxu1 %v4863_v18  ;;  %v4891_v18 = vld [vmem:[%s8403_s8 + $0x220] sm:$0xff] }
 0x931   :  { %6214 = vmatpush3.msra.mxu0 %v4879_v7  ;;  %6169 = vmatprep.subr.mxu1 %v6577_v53  ;;  %v4907_v7 = vld [vmem:[%s8403_s8 + $0x290] sm:$0xff] }
 0x932   :  { %6215 = vmatprep.subr.mxu0 %v6577_v53  ;;  %6170 = vmatpush3.msra.mxu1 %v4862_v8  ;;  %v4890_v8 = vld [vmem:[%s8403_s8 + $0x218] sm:$0xff] }
 0x933   :  { %6216 = vmatpush3.msra.mxu0 %v4878_v9  ;;  %6171 = vmatprep.subr.mxu1 %v6577_v53  ;;  %v4906_v9 = vld [vmem:[%s8403_s8 + $0x288] sm:$0xff] }
 0x934   :  { %6217 = vmatprep.subr.mxu0 %v6577_v53  ;;  %6172 = vmatpush3.msra.mxu1 %v4861_v10  ;;  %v4889_v10 = vld [vmem:[%s8403_s8 + $0x210] sm:$0xff] }
 0x935   :  { %6218 = vmatpush3.msra.mxu0 %v4877_v11  ;;  %6173 = vmatprep.subr.mxu1 %v6577_v53  ;;  %v4905_v11 = vld [vmem:[%s8403_s8 + $0x280] sm:$0xff] }
 0x936   :  { %6219 = vmatprep.subr.mxu0 %v6577_v53  ;;  %6174 = vmatpush3.msra.mxu1 %v4860_v12  ;;  %v4888_v12 = vld [vmem:[%s8403_s8 + $0x208] sm:$0xff] }
 0x937   :  { %6220 = vmatpush3.msra.mxu0 %v4876_v13  ;;  %6175 = vmatprep.subr.mxu1 %v6577_v53  ;;  %v4887_v13 = vld [vmem:[%s8403_s8 + $0x200] sm:$0xff] }
 0x938   :  { %6221 = vmatprep.subr.mxu0 %v6577_v53  ;;  %6176 = vmatpush3.msra.mxu1 %v4859_v14 }
 0x939   :  { %6222 = vmatpush3.msra.mxu0 %v4875_v15  ;;  %6177 = vmatprep.subr.mxu1 %v6577_v53 }
 0x93a   :  { %6223 = vmatprep.subr.mxu0 %v6577_v53  ;;  %6178 = vmatpush3.msra.mxu1 %v4858_v16 }
 0x93b   :  { %6224 = vmatpush3.msra.mxu0 %v4874_v19  ;;  %6179 = vmatprep.subr.mxu1 %v6577_v53 }
 0x93c   :  { %6225 = vmatprep.subr.mxu0 %v6577_v53  ;;  %6180 = vmatpush3.msra.mxu1 %v4857_v20 }
 0x93d   :  { %6226 = vmatpush3.msra.mxu0 %v4873_v21  ;;  %6181 = vmatprep.subr.mxu1 %v6577_v53 }
 0x93e   :  { %6227 = vmatprep.subr.mxu0 %v6577_v53  ;;  %6182 = vmatpush3.msra.mxu1 %v4856_v22 }
 0x93f   :  { %6228 = vmatpush3.msra.mxu0 %v4872_v23  ;;  %6183 = vmatprep.subr.mxu1 %v6577_v53  ;;  %v4939_v23 = vld [vmem:[%s8402_s7 + $0xe] sm:$0x3] }
 0x940   :  { %6229 = vmatprep.subr.mxu0 %v6577_v53  ;;  %6184 = vmatpush3.msra.mxu1 %v4855_v24 }
 0x941   :  { %6230 = vmatpush3.msra.mxu0 %v4871_v25  ;;  %6185 = vmatprep.subr.mxu1 %v6577_v53 }
 0x942   :  { %6231 = vmatprep.subr.mxu0 %v6577_v53  ;;  %6235 = vmatprep.mubr.msk.f32.mxu0 %vm6578_vm2, %v6577_v53 }
 0x943   :  { %6193 = vmatprep.mubr.msk.f32.mxu1 %vm6578_vm2, %v6577_v53  ;;  %6186 = vmatpush3.msra.mxu1 %v4854_v26  ;;  %v4956_v26 = vld [vmem:[%s8403_s8 + $0x3f8] sm:$0xff] }
 0x944   :  { %6232 = vmatpush3.msra.mxu0 %v4870_v27  ;;  %6187 = vmatprep.subr.mxu1 %v6577_v53 }
 0x945   :  { %6233 = vmatprep.subr.mxu0 %v6577_v53  ;;  %6188 = vmatpush3.msra.mxu1 %v4853_v28  ;;  %v4921_v28 = vld [vmem:[%s8402_s7 + $0xc] sm:$0x3] }
 0x946   :  { %6234 = vmatpush3.msra.mxu0 %v4869_v30  ;;  %6189 = vmatprep.subr.mxu1 %v6577_v53  ;;  %v4938_v30 = vld [vmem:[%s8403_s8 + $0x378] sm:$0xff] }
 0x947   :  { %6280 = vmatprep.subr.mxu0 %v6577_v53  ;;  %6190 = vmatpush3.msra.mxu1 %v4852_v31  ;;  %v4937_v31 = vld [vmem:[%s8403_s8 + $0x370] sm:$0xff] }
 0x948   :  { %6191 = vmatprep.subr.mxu1 %v6577_v53 }
 0x949   :  { %6192 = vmatpush3.msra.mxu1 %v4851_v32  ;;  %v4936_v32 = vld [vmem:[%s8403_s8 + $0x368] sm:$0xff] }
 0x94a   :  { %6238 = vmatprep.subr.mxu1 %v6577_v53 }
 0x9e0   :  { %v2832_v34 = vpop.f32.mrf.mxu0 }
 0x9e2   :  { %v6153_v35 = vpop.f32.mrf.mxu0 }
 0x9e3   :  { %v4935_v35 = vld [vmem:[%s8403_s8 + $0x360] sm:$0xff] }
 0x9e4   :  { %v2762_v36 = vpop.f32.mrf.mxu1  ;;  %v3070_v43 = vpop.f32.mrf.mxu0 }
 0x9e5   :  { %v7911_v38 = vadd.f32 %v2832_v34, %v2762_v36  ;;  %6236 = vmatmul.mubr.f32.vlgmr.msra.gmra.mxu0 %v3070_v43  ;;  %v4953_v34 = vld [vmem:[%s8403_s8 + $0x3e0] sm:$0xff]  ;;  %v4952_v36 = vld [vmem:[%s8403_s8 + $0x3d8] sm:$0xff] }
 0x9e6   :  { %6281 = vmatpush3.msra.mxu0 %v7671_v37  ;;  %v6118_v40 = vpop.f32.mrf.mxu1  ;;  %6284 = vmatprep.mubr.msk.f32.mxu0 %vm6578_vm2, %v6577_v53  ;;  %v6202_v47 = vpop.f32.mrf.mxu0  ;;  %v4934_v43 = vld [vmem:[%s8403_s8 + $0x358] sm:$0xff] }
 0x9e7   :  { %6282 = vmatprep.subr.mxu0 %v6577_v53  ;;  %v4933_v40 = vld [vmem:[%s8403_s8 + $0x350] sm:$0xff]  ;;  %v4932_v47 = vld [vmem:[%s8403_s8 + $0x348] sm:$0xff] }
 0x9e8   :  { %6283 = vmatpush3.msra.mxu0 %v7673_v39  ;;  %v2907_v48 = vpop.f32.mrf.mxu1 }
 0x9e9   :  { %6194 = vmatmul.mubr.f32.vlgmr.msra.gmra.mxu1 %v2907_v48  ;;  %6285 = vmatmul.mubr.msk.f32.vlgmr.msra.gmra.mxu0 %vm80_vm0, %v4903_v46  ;;  %v4950_v46 = vld [vmem:[%s8403_s8 + $0x3c8] sm:$0xff]  ;;  %v4949_v48 = vld [vmem:[%s8403_s8 + $0x3c0] sm:$0xff] }
 0x9ea   :  { %6239 = vmatpush3.msra.mxu1 %v7671_v37  ;;  %v6160_v49 = vpop.f32.mrf.mxu1  ;;  %6242 = vmatprep.mubr.msk.f32.mxu1 %vm6578_vm2, %v6577_v53 }
 0x9eb   :  { %6240 = vmatprep.subr.mxu1 %v6577_v53  ;;  %6287 = vmatprep.subr.mxu0 %v6577_v53  ;;  %v4948_v49 = vld [vmem:[%s8403_s8 + $0x3b8] sm:$0xff] }
 0x9ec   :  { %6241 = vmatpush3.msra.mxu1 %v7673_v39  ;;  %6288 = vmatpush3.msra.mxu0 %v4920_v4  ;;  %v4931_v4 = vld [vmem:[%s8403_s8 + $0x340] sm:$0xff] }
 0x9ed   :  { %6243 = vmatmul.mubr.msk.f32.vlgmr.msra.gmra.mxu1 %vm80_vm0, %v4885_v50  ;;  %6289 = vmatprep.subr.mxu0 %v6577_v53  ;;  %v4930_v50 = vld [vmem:[%s8403_s8 + $0x338] sm:$0xff] }
 0x9ee   :  { %6290 = vmatpush3.msra.mxu0 %v4919_v51  ;;  %6245 = vmatprep.subr.mxu1 %v6577_v53  ;;  %v4947_v51 = vld [vmem:[%s8403_s8 + $0x3b0] sm:$0xff] }
 0x9ef   :  { %6291 = vmatprep.subr.mxu0 %v6577_v53  ;;  %6246 = vmatpush3.msra.mxu1 %v4902_v52  ;;  %v4929_v52 = vld [vmem:[%s8403_s8 + $0x330] sm:$0xff] }
 0x9f0   :  { %6292 = vmatpush3.msra.mxu0 %v4918_v54  ;;  %6247 = vmatprep.subr.mxu1 %v6577_v53  ;;  %v4946_v54 = vld [vmem:[%s8403_s8 + $0x3a8] sm:$0xff] }
 0x9f1   :  { %6293 = vmatprep.subr.mxu0 %v6577_v53  ;;  %6248 = vmatpush3.msra.mxu1 %v4901_v55  ;;  %v4928_v55 = vld [vmem:[%s8403_s8 + $0x328] sm:$0xff] }
 0x9f2   :  { %6294 = vmatpush3.msra.mxu0 %v4917_v56  ;;  %6249 = vmatprep.subr.mxu1 %v6577_v53  ;;  %v4945_v56 = vld [vmem:[%s8403_s8 + $0x3a0] sm:$0xff] }
 0x9f3   :  { %6295 = vmatprep.subr.mxu0 %v6577_v53  ;;  %6250 = vmatpush3.msra.mxu1 %v4900_v57  ;;  %v4927_v57 = vld [vmem:[%s8403_s8 + $0x320] sm:$0xff] }
 0x9f4   :  { %6296 = vmatpush3.msra.mxu0 %v4916_v58  ;;  %6251 = vmatprep.subr.mxu1 %v6577_v53  ;;  %v4944_v58 = vld [vmem:[%s8403_s8 + $0x398] sm:$0xff] }
 0x9f5   :  { %6297 = vmatprep.subr.mxu0 %v6577_v53  ;;  %6252 = vmatpush3.msra.mxu1 %v4899_v60  ;;  %v4926_v60 = vld [vmem:[%s8403_s8 + $0x318] sm:$0xff] }
 0x9f6   :  { %6298 = vmatpush3.msra.mxu0 %v4915_v61  ;;  %6253 = vmatprep.subr.mxu1 %v6577_v53  ;;  %v4925_v61 = vld [vmem:[%s8403_s8 + $0x310] sm:$0xff] }
 0x9f7   :  { %6299 = vmatprep.subr.mxu0 %v6577_v53  ;;  %6254 = vmatpush3.msra.mxu1 %v4898_v62  ;;  %v4943_v62 = vld [vmem:[%s8403_s8 + $0x390] sm:$0xff] }
 0x9f8   :  { %6300 = vmatpush3.msra.mxu0 %v4914_v2  ;;  %6255 = vmatprep.subr.mxu1 %v6577_v53  ;;  %v4924_v2 = vld [vmem:[%s8403_s8 + $0x308] sm:$0xff] }
 0x9f9   :  { %6301 = vmatprep.subr.mxu0 %v6577_v53  ;;  %6256 = vmatpush3.msra.mxu1 %v4897_v63  ;;  %v4942_v63 = vld [vmem:[%s8403_s8 + $0x388] sm:$0xff] }
 0x9fa   :  { %6302 = vmatpush3.msra.mxu0 %v4913_v59  ;;  %6257 = vmatprep.subr.mxu1 %v6577_v53  ;;  %v4923_v59 = vld [vmem:[%s8403_s8 + $0x300] sm:$0xff] }
 0x9fb   :  { %6303 = vmatprep.subr.mxu0 %v6577_v53  ;;  %6258 = vmatpush3.msra.mxu1 %v4896_v44  ;;  %v4941_v44 = vld [vmem:[%s8403_s8 + $0x380] sm:$0xff] }
 0x9fc   :  { %6304 = vmatpush3.msra.mxu0 %v4912_v0  ;;  %6259 = vmatprep.subr.mxu1 %v6577_v53 }
 0x9fd   :  { %6305 = vmatprep.subr.mxu0 %v6577_v53  ;;  %6260 = vmatpush3.msra.mxu1 %v4895_v45 }
 0x9fe   :  { %6306 = vmatpush3.msra.mxu0 %v4911_v1  ;;  %6261 = vmatprep.subr.mxu1 %v6577_v53 }
 0x9ff   :  { %6307 = vmatprep.subr.mxu0 %v6577_v53  ;;  %6262 = vmatpush3.msra.mxu1 %v4894_v41 }
 0xa00   :  { %6308 = vmatpush3.msra.mxu0 %v4910_v42  ;;  %6263 = vmatprep.subr.mxu1 %v6577_v53 }
 0xa01   :  { %6309 = vmatprep.subr.mxu0 %v6577_v53  ;;  %6264 = vmatpush3.msra.mxu1 %v4893_v3 }
 0xa02   :  { %6310 = vmatpush3.msra.mxu0 %v4909_v5  ;;  %6265 = vmatprep.subr.mxu1 %v6577_v53 }
 0xa03   :  { %6311 = vmatprep.subr.mxu0 %v6577_v53  ;;  %6266 = vmatpush3.msra.mxu1 %v4892_v6 }
 0xa04   :  { %6312 = vmatpush3.msra.mxu0 %v4908_v17  ;;  %6267 = vmatprep.subr.mxu1 %v6577_v53 }
 0xa05   :  { %6313 = vmatprep.subr.mxu0 %v6577_v53  ;;  %6268 = vmatpush3.msra.mxu1 %v4891_v18 }
 0xa06   :  { %6314 = vmatpush3.msra.mxu0 %v4907_v7  ;;  %6269 = vmatprep.subr.mxu1 %v6577_v53 }
 0xa07   :  { %6315 = vmatprep.subr.mxu0 %v6577_v53  ;;  %6319 = vmatprep.mubr.msk.f32.mxu0 %vm6578_vm2, %v6577_v53 }
 0xa08   :  { %6277 = vmatprep.mubr.msk.f32.mxu1 %vm6578_vm2, %v6577_v53  ;;  %6270 = vmatpush3.msra.mxu1 %v4890_v8 }
 0xa09   :  { %6316 = vmatpush3.msra.mxu0 %v4906_v9  ;;  %6271 = vmatprep.subr.mxu1 %v6577_v53 }
 0xa0a   :  { %6317 = vmatprep.subr.mxu0 %v6577_v53  ;;  %6272 = vmatpush3.msra.mxu1 %v4889_v10 }
 0xa0b   :  { %6318 = vmatpush3.msra.mxu0 %v4905_v11  ;;  %6273 = vmatprep.subr.mxu1 %v6577_v53 }
 0xa0c   :  { %6364 = vmatprep.subr.mxu0 %v6577_v53  ;;  %6274 = vmatpush3.msra.mxu1 %v4888_v12 }
 0xa0d   :  { %6275 = vmatprep.subr.mxu1 %v6577_v53 }
 0xa0e   :  { %6276 = vmatpush3.msra.mxu1 %v4887_v13 }
 0xa0f   :  { %6322 = vmatprep.subr.mxu1 %v6577_v53 }
 0xaa5   :  { %v3157_v14 = vpop.f32.mrf.mxu0 }
 0xaa7   :  { %v6237_v15 = vpop.f32.mrf.mxu0 }
 0xaa9   :  { %v2994_v16 = vpop.f32.mrf.mxu1  ;;  %v3396_v19 = vpop.f32.mrf.mxu0 }
 0xaaa   :  { %v2998_v20 = vadd.f32 %v2994_v16, %v7911_v38  ;;  %6320 = vmatmul.mubr.f32.vlgmr.msra.gmra.mxu0 %v3396_v19  ;;  %v4951_v38 = vld [vmem:[%s8403_s8 + $0x3d0] sm:$0xff] }
 0xaab   :  { %6365 = vmatpush3.msra.mxu0 %v7671_v37  ;;  %v6195_v21 = vpop.f32.mrf.mxu1  ;;  %v6286_v22 = vpop.f32.mrf.mxu0  ;;  %6368 = vmatprep.mubr.msk.f32.mxu0 %vm6578_vm2, %v6577_v53 }
 0xaac   :  { %6366 = vmatprep.subr.mxu0 %v6577_v53  ;;  %v8073_v24 = vadd.f32 %v3157_v14, %v2998_v20 }
 0xaad   :  { %6367 = vmatpush3.msra.mxu0 %v7673_v39  ;;  %v3233_v25 = vpop.f32.mrf.mxu1 }
 0xaae   :  { %6278 = vmatmul.mubr.f32.vlgmr.msra.gmra.mxu1 %v3233_v25  ;;  %6369 = vmatmul.mubr.msk.f32.vlgmr.msra.gmra.mxu0 %vm80_vm0, %v4939_v23 }
 0xaaf   :  { %6323 = vmatpush3.msra.mxu1 %v7671_v37  ;;  %v6244_v27 = vpop.f32.mrf.mxu1  ;;  %6326 = vmatprep.mubr.msk.f32.mxu1 %vm6578_vm2, %v6577_v53  ;;  %v4955_v37 = vld [vmem:[%s8403_s8 + $0x3f0] sm:$0xff] }
 0xab0   :  { %6324 = vmatprep.subr.mxu1 %v6577_v53  ;;  %6371 = vmatprep.subr.mxu0 %v6577_v53 }
 0xab1   :  { %6325 = vmatpush3.msra.mxu1 %v7673_v39  ;;  %6372 = vmatpush3.msra.mxu0 %v4956_v26  ;;  %v4954_v39 = vld [vmem:[%s8403_s8 + $0x3e8] sm:$0xff] }
 0xab2   :  { %6327 = vmatmul.mubr.msk.f32.vlgmr.msra.gmra.mxu1 %vm80_vm0, %v4921_v28  ;;  %6329 = vmatprep.subr.mxu1 %v6577_v53 }
 0xab3   :  { %6330 = vmatpush3.msra.mxu1 %v4938_v30  ;;  %6373 = vmatprep.subr.mxu0 %v6577_v53 }
 0xab4   :  { %6331 = vmatprep.subr.mxu1 %v6577_v53  ;;  %6374 = vmatpush3.msra.mxu0 %v4955_v37 }
 0xab5   :  { %6332 = vmatpush3.msra.mxu1 %v4937_v31  ;;  %6375 = vmatprep.subr.mxu0 %v6577_v53 }
 0xab6   :  { %6333 = vmatprep.subr.mxu1 %v6577_v53  ;;  %6376 = vmatpush3.msra.mxu0 %v4954_v39 }
 0xab7   :  { %6334 = vmatpush3.msra.mxu1 %v4936_v32  ;;  %6377 = vmatprep.subr.mxu0 %v6577_v53 }
 0xab8   :  { %6335 = vmatprep.subr.mxu1 %v6577_v53  ;;  %6378 = vmatpush3.msra.mxu0 %v4953_v34 }
 0xab9   :  { %6336 = vmatpush3.msra.mxu1 %v4935_v35  ;;  %6379 = vmatprep.subr.mxu0 %v6577_v53  ;;  %v3834_v35 = vld [vmem:[%s8404_s9] sm:$0x3] }
 0xaba   :  { %6337 = vmatprep.subr.mxu1 %v6577_v53  ;;  %6380 = vmatpush3.msra.mxu0 %v4952_v36 }
 0xabb   :  { %6338 = vmatpush3.msra.mxu1 %v4934_v43  ;;  %6381 = vmatprep.subr.mxu0 %v6577_v53 }
 0xabc   :  { %6339 = vmatprep.subr.mxu1 %v6577_v53  ;;  %6382 = vmatpush3.msra.mxu0 %v4951_v38 }
 0xabd   :  { %6340 = vmatpush3.msra.mxu1 %v4933_v40  ;;  %6383 = vmatprep.subr.mxu0 %v6577_v53 }
 0xabe   :  { %6341 = vmatprep.subr.mxu1 %v6577_v53  ;;  %6384 = vmatpush3.msra.mxu0 %v4950_v46 }
 0xabf   :  { %6342 = vmatpush3.msra.mxu1 %v4932_v47  ;;  %6385 = vmatprep.subr.mxu0 %v6577_v53 }
 0xac0   :  { %6343 = vmatprep.subr.mxu1 %v6577_v53  ;;  %6386 = vmatpush3.msra.mxu0 %v4949_v48 }
 0xac1   :  { %6344 = vmatpush3.msra.mxu1 %v4931_v4  ;;  %6387 = vmatprep.subr.mxu0 %v6577_v53 }
 0xac2   :  { %6345 = vmatprep.subr.mxu1 %v6577_v53  ;;  %6388 = vmatpush3.msra.mxu0 %v4948_v49 }
 0xac3   :  { %6346 = vmatpush3.msra.mxu1 %v4930_v50  ;;  %6389 = vmatprep.subr.mxu0 %v6577_v53 }
 0xac4   :  { %6347 = vmatprep.subr.mxu1 %v6577_v53  ;;  %6390 = vmatpush3.msra.mxu0 %v4947_v51  ;;  %v3854_v51 = vld [vmem:[%s8405_s10] sm:$0xff] }
 0xac5   :  { %6348 = vmatpush3.msra.mxu1 %v4929_v52  ;;  %6391 = vmatprep.subr.mxu0 %v6577_v53  ;;  %v3942_v52 = vld [vmem:[%s8407_s12 + $0x38] sm:$0xff] }
 0xac6   :  { %6349 = vmatprep.subr.mxu1 %v6577_v53  ;;  %6392 = vmatpush3.msra.mxu0 %v4946_v54  ;;  %v3939_v54 = vld [vmem:[%s8407_s12 + $0x20] sm:$0xff] }
 0xac7   :  { %6350 = vmatpush3.msra.mxu1 %v4928_v55  ;;  %6393 = vmatprep.subr.mxu0 %v6577_v53  ;;  %v3938_v55 = vld [vmem:[%s8407_s12 + $0x18] sm:$0xff] }
 0xac8   :  { %6351 = vmatprep.subr.mxu1 %v6577_v53  ;;  %6394 = vmatpush3.msra.mxu0 %v4945_v56  ;;  %v3937_v56 = vld [vmem:[%s8407_s12 + $0x10] sm:$0xff] }
 0xac9   :  { %6352 = vmatpush3.msra.mxu1 %v4927_v57  ;;  %6395 = vmatprep.subr.mxu0 %v6577_v53  ;;  %v3936_v57 = vld [vmem:[%s8407_s12 + $0x8] sm:$0xff] }
 0xaca   :  { %6353 = vmatprep.subr.mxu1 %v6577_v53  ;;  %6396 = vmatpush3.msra.mxu0 %v4944_v58  ;;  %v3935_v58 = vld [vmem:[%s8407_s12] sm:$0xff] }
 0xacb   :  { %6354 = vmatpush3.msra.mxu1 %v4926_v60  ;;  %6397 = vmatprep.subr.mxu0 %v6577_v53  ;;  %v8270_v60 = vld [vmem:[%s8410_s15 + $0x18] sm:$0xff] }
 0xacc   :  { %6355 = vmatprep.subr.mxu1 %v6577_v53  ;;  %6361 = vmatprep.mubr.msk.f32.mxu1 %vm6578_vm2, %v6577_v53 }
 0xacd   :  { %6403 = vmatprep.mubr.msk.f32.mxu0 %vm6578_vm2, %v6577_v53  ;;  %6356 = vmatpush3.msra.mxu1 %v4925_v61  ;;  %v8277_v61 = vld [vmem:[%s8410_s15 + $0x10] sm:$0xff] }
 0xace   :  { %6398 = vmatpush3.msra.mxu0 %v4943_v62  ;;  %6357 = vmatprep.subr.mxu1 %v6577_v53  ;;  %v3933_v62 = vld [vmem:[%s8406_s11] sm:$0xff] }
 0xacf   :  { %6399 = vmatprep.subr.mxu0 %v6577_v53  ;;  %6358 = vmatpush3.msra.mxu1 %v4924_v2 }
 0xad0   :  { %6400 = vmatpush3.msra.mxu0 %v4942_v63  ;;  %6359 = vmatprep.subr.mxu1 %v6577_v53 }
 0xad1   :  { %6401 = vmatprep.subr.mxu0 %v6577_v53  ;;  %6360 = vmatpush3.msra.mxu1 %v4923_v59  ;;  %v4018_v59 = vld [vmem:[%s8408_s13 + $0x8] sm:$0xff] }
 0xad2   :  { %6402 = vmatpush3.msra.mxu0 %v4941_v44  ;;  %6406 = vmatprep.subr.mxu1 %v6577_v53 }
 0xad3   :  { %6437 = vmatprep.subr.mxu0 %v6577_v53 }
 0xb6a   :  { %v3483_v0 = vpop.f32.mrf.mxu0 }
 0xb6c   :  { %v6321_v45 = vpop.f32.mrf.mxu0 }
 0xb6d   :  { %v4017_v45 = vld [vmem:[%s8408_s13] sm:$0xff] }
 0xb6e   :  { %v3320_v1 = vpop.f32.mrf.mxu1  ;;  %v3722_v41 = vpop.f32.mrf.mxu0 }
 0xb6f   :  { %v3324_v42 = vadd.f32 %v3320_v1, %v8073_v24  ;;  %6404 = vmatmul.mubr.f32.vlgmr.msra.gmra.mxu0 %v3722_v41  ;;  %v8304_v1 = vld [vmem:[%s8410_s15] sm:$0xff] }
 0xb70   :  { %v6279_v3 = vpop.f32.mrf.mxu1  ;;  %v6370_v5 = vpop.f32.mrf.mxu0  ;;  %6445 = vmatprep.mubr.msk.f32.mxu0 %vm6578_vm2, %v6577_v53  ;;  %6438 = vmatpush3.msra.mxu0 %v8270_v60 }
 0xb71   :  { %v3487_v6 = vadd.f32 %v3483_v0, %v3324_v42  ;;  %6439 = vmatprep.subr.mxu0 %v6577_v53  ;;  %v8294_v0 = vld [vmem:[%s8410_s15 + $0x8] sm:$0xff] }
 0xb72   :  { %v3559_v17 = vpop.f32.mrf.mxu1  ;;  %6440 = vmatpush3.msra.mxu0 %v8277_v61 }
 0xb73   :  { %6362 = vmatmul.mubr.f32.vlgmr.msra.gmra.mxu1 %v3559_v17  ;;  %6441 = vmatprep.subr.mxu0 %v6577_v53 }
 0xb74   :  { %v6328_v18 = vpop.f32.mrf.mxu1  ;;  %6408 = vmatprep.mubr.msk.f32.mxu1 %vm6578_vm2, %v6577_v53  ;;  %6442 = vmatpush3.msra.mxu0 %v8294_v0 }
 0xb75   :  { %6443 = vmatprep.subr.mxu0 %v6577_v53 }
 0xb76   :  { %6444 = vmatpush3.msra.mxu0 %v8304_v1 }
 0xb77   :  { %6446 = vmatmul.mubr.f32.vlgmr.msra.gmra.mxu0 %v6577_v53  ;;  %6459 = vmatprep.subr.mxu0 %v6577_v53 }
 0xb78   :  { %6467 = vmatprep.mubr.msk.f32.mxu0 %vm6578_vm2, %v6577_v53  ;;  %6460 = vmatpush3.msra.mxu0 %v8270_v60 }
 0xb79   :  { %6461 = vmatprep.subr.mxu0 %v6577_v53 }
 0xb7a   :  { %6462 = vmatpush3.msra.mxu0 %v8277_v61 }
 0xb7b   :  { %6463 = vmatprep.subr.mxu0 %v6577_v53 }
 0xb7c   :  { %6464 = vmatpush3.msra.mxu0 %v8294_v0 }
 0xb7d   :  { %6465 = vmatprep.subr.mxu0 %v6577_v53 }
 0xb7e   :  { %6466 = vmatpush3.msra.mxu0 %v8304_v1 }
 0xb7f   :  { %6481 = vmatprep.subr.mxu0 %v6577_v53 }
 0xc2f   :  { %v3809_v7 = vpop.f32.mrf.mxu0 }
 0xc31   :  { %v6405_v8 = vpop.f32.mrf.mxu0 }
 0xc33   :  { %v3646_v9 = vpop.f32.mrf.mxu1 }
 0xc34   :  { %v3650_v10 = vadd.f32 %v3646_v9, %v3487_v6  ;;  %v4960_v6 = vld [vmem:[%s8409_s14] ss:$0 sm:$0xff]  ;;  %s6580_s14 = smov 32  }
 0xc35   :  { %v6363_v11 = vpop.f32.mrf.mxu1 }
 0xc36   :  { %v3813_v12 = vadd.f32 %v3809_v7, %v3650_v10 }
 0xc37   :  { %v4172_v3 = vpop.f32.mrf.mxu0 }
 0xc38   :  { %v3815_v13 = vsel %vm3814_vm3, %v3813_v12, 0.0  ;;  %v3823_v14 = vmul.f32 %v3813_v12, %v3813_v12 }
 0xc39   :  { %v3816_v15 = vrot.slane %v3815_v13, 4  ;;  %v6447_v5 = vpop.f32.mrf.mxu0 }
 0xc3a   :  { %v3824_v16 = vsel %vm3814_vm3, %v3823_v14, 0.0 }
 0xc3b   :  { %v3817_v19 = vadd.f32 %v3816_v15, %v3815_v13  ;;  %v3825_v20 = vrot.slane %v3824_v16, 4 }
 0xc3d   :  { %v3818_v21 = vrot.slane %v3817_v19, 2  ;;  %v3826_v22 = vadd.f32 %v3825_v20, %v3824_v16 }
 0xc3f   :  { %v3819_v23 = vadd.f32 %v3818_v21, %v3817_v19  ;;  %v3827_v24 = vrot.slane %v3826_v22, 2 }
 0xc41   :  { %v3820_v25 = vrot.slane %v3819_v23, 1  ;;  %v3828_v26 = vadd.f32 %v3827_v24, %v3826_v22 }
 0xc43   :  { %v3821_v27 = vadd.f32 %v3820_v25, %v3819_v23  ;;  %v3829_v28 = vrot.slane %v3828_v26, 1 }
 0xc45   :  { %v3822_v30 = vmul.f32 0.5, %v3821_v27  ;;  %v3830_v37 = vadd.f32 %v3829_v28, %v3828_v26 }
 0xc47   :  { %v3831_v31 = vmul.f32 0.5, %v3830_v37  ;;  %v3832_v39 = vmul.f32 %v3822_v30, %v3822_v30 }
 0xc49   :  { %v3833_v32 = vsub.f32 %v3831_v31, %v3832_v39 }
 0xc4b   :  { %v3835_v34 = vadd.f32 1e-05, %v3833_v32 }
 0xc4d   :  { %6501 = vrsqrt.f32 %v3835_v34 }
 0xc5a   :  { %v6502_v36 = vpop.eup %6501 }
 0xc5b   :  { %v3837_v43 = vmul.f32 %v6502_v36, %v3834_v35 }
 0xc5d   :  { %v3838_v38 = vmul.f32 %v3837_v43, %v3822_v30  ;;  %v3846_v46 = vrot.slane %v3837_v43, %v7020_v29  ;;  %v3941_v29 = vld [vmem:[%s8407_s12 + $0x30] sm:$0xff] }
 0xc5f   :  { %v3840_v40 = vrot.slane %v3838_v38, 7  ;;  %v3847_v48 = vmul.f32 %v3846_v46, %v3813_v12 }
 0xc61   :  { %v3842_v47 = vsub.f32 %v3834_v35, %v3840_v40 }
 0xc63   :  { %v3851_v4 = vrot.slane %v3842_v47, %v7023_v33  ;;  %v3940_v33 = vld [vmem:[%s8407_s12 + $0x28] sm:$0xff] }
 0xc65   :  { %v3852_v49 = vadd.f32 %v3851_v4, %v3847_v48 }
 0xc67   :  { %v3853_v50 = vmax.f32 %v3852_v49, 0.0 }
 0xc69   :  { %6407 = vmatpush3.msk.msra.mxu1 %vm3859_vm4, %v3853_v50 }
 0xc6a   :  { %6409 = vmatmul.mubr.msk.f32.vlgmr.msra.gmra.mxu1 %vm3855_vm5, %v3854_v51  ;;  %6411 = vmatprep.subr.mxu1 %v6577_v53 }
 0xc6b   :  { %6412 = vmatpush3.msra.mxu1 %v3942_v52  ;;  %6427 = vmatprep.mubr.msk.f32.mxu1 %vm6578_vm2, %v6577_v53 }
 0xc6c   :  { %6413 = vmatprep.subr.mxu1 %v6577_v53 }
 0xc6d   :  { %6414 = vmatpush3.msra.mxu1 %v3941_v29 }
 0xc6e   :  { %6415 = vmatprep.subr.mxu1 %v6577_v53 }
 0xc6f   :  { %6416 = vmatpush3.msra.mxu1 %v3940_v33 }
 0xc70   :  { %6417 = vmatprep.subr.mxu1 %v6577_v53 }
 0xc71   :  { %6418 = vmatpush3.msra.mxu1 %v3939_v54 }
 0xc72   :  { %6419 = vmatprep.subr.mxu1 %v6577_v53 }
 0xc73   :  { %6420 = vmatpush3.msra.mxu1 %v3938_v55 }
 0xc74   :  { %6421 = vmatprep.subr.mxu1 %v6577_v53 }
 0xc75   :  { %6422 = vmatpush3.msra.mxu1 %v3937_v56 }
 0xc76   :  { %6423 = vmatprep.subr.mxu1 %v6577_v53 }
 0xc77   :  { %6424 = vmatpush3.msra.mxu1 %v3936_v57 }
 0xc78   :  { %6425 = vmatprep.subr.mxu1 %v6577_v53 }
 0xc79   :  { %6426 = vmatpush3.msra.mxu1 %v3935_v58 }
 0xc7a   :  { %6430 = vmatprep.subr.mxu1 %v6577_v53 }
 0xd2a   :  { %v3929_v2 = vpop.f32.mrf.mxu1 }
 0xd2b   :  { %v3934_v63 = vmul.f32 %v3933_v62, %v3929_v2 }
 0xd2c   :  { %v6410_v44 = vpop.f32.mrf.mxu1 }
 0xd2d   :  { %6428 = vmatmul.mubr.msk.f32.vlgmr.msra.gmra.mxu1 %vm3943_vm6, %v3934_v63 }
 0xd2e   :  { %6431 = vmatpush3.msra.mxu1 %v4018_v59  ;;  %6434 = vmatprep.mubr.msk.f32.mxu1 %vm6578_vm2, %v6577_v53 }
 0xd2f   :  { %6432 = vmatprep.subr.mxu1 %v6577_v53 }
 0xd30   :  { %6433 = vmatpush3.msra.mxu1 %v4017_v45 }
 0xd31   :  { %6448 = vmatprep.subr.mxu1 %v6577_v53 }
 0xded   :  { %v4013_v41 = vpop.f32.mrf.mxu1 }
 0xdee   :  { %6435 = vmatmul.mubr.msk.f32.vlgmr.msra.gmra.mxu1 %vm80_vm0, %v4013_v41 }
 0xdef   :  { %v6429_v42 = vpop.f32.mrf.mxu1  ;;  %6449 = vmatpush3.msra.mxu1 %v8270_v60  ;;  %6456 = vmatprep.mubr.msk.f32.mxu1 %vm6578_vm2, %v6577_v53 }
 0xdf0   :  { %6450 = vmatprep.subr.mxu1 %v6577_v53 }
 0xdf1   :  { %6451 = vmatpush3.msra.mxu1 %v8277_v61 }
 0xdf2   :  { %6452 = vmatprep.subr.mxu1 %v6577_v53 }
 0xdf3   :  { %6453 = vmatpush3.msra.mxu1 %v8294_v0 }
 0xdf4   :  { %6454 = vmatprep.subr.mxu1 %v6577_v53 }
 0xdf5   :  { %6455 = vmatpush3.msra.mxu1 %v8304_v1 }
 0xdf6   :  { %6470 = vmatprep.subr.mxu1 %v6577_v53 }
 0xeae   :  { %v4095_v17 = vpop.f32.mrf.mxu1 }
 0xeaf   :  { %v8334_v18 = vadd.f32 %v4960_v6, %v4095_v17 }
 0xeb0   :  { %v6436_v7 = vpop.f32.mrf.mxu1 }
 0xeb1   :  { %v4176_v8 = vadd.f32 %v4172_v3, %v8334_v18 }
 0xeb3   :  { %6503 = vtanh.f32 %v4176_v8  ;;  %v4177_v10 = vsub.f32 0.0, %v4176_v8 }
 0xeb5   :  { %v4178_v11 = vmul.f32 1.442695, %v4177_v10 }
 0xeb7   :  { %6505 = vpow2.f32 %v4178_v11 }
 0xec0   :  { %v6504_v9 = vpop.eup %6503 }
 0xec1   :  { %4186 = vrot.lane.b32.xlu0 %v6504_v9, %s6579_s22 }
 0xec4   :  { %v6506_v12 = vpop.eup %6505 }
 0xec5   :  { %v4180_v13 = vadd.f32 1.0, %v6506_v12 }
 0xec7   :  { %6507 = vrcp.f32 %v4180_v13 }
 0xed4   :  { %v6508_v14 = vpop.eup %6507 }
 0xed5   :  { %v4184_v19 = vmul.f32 0.0, %v6508_v14 }
 0xf33   :  { %v4187_v15 = vpop.permute.xlu0 %4186 }
 0xf34   :  { %v4189_v16 = vmul.f32 %v6508_v14, %v4187_v15 }
 0xf36   :  { %4191 = vrot.lane.b32.xlu0 %v4189_v16, %s6580_s14 }
 0xfa8   :  { %v4192_v20 = vpop.permute.xlu0 %4191 }
 0xfa9   :  { %v4194_v21 = vadd.f32 %v4192_v20, %v4184_v19 }
 0xfab   :  { %6509 = vtanh.f32 %v4194_v21  ;;  %v4288_v38 = vrot.slane %v4194_v21, 6 }
 0xfb8   :  { %v6510_v22 = vpop.eup %6509 }
 0xfb9   :  { %4197 = vrot.lane.b32.xlu1 %v6510_v22, %s6579_s22  ;;  %v4523_v22 = vld [vmem:[%s8411_s16 + $0x10] sm:$0xff] }
0x102b   :  { %v4198_v23 = vpop.permute.xlu1 %4197 }
0x102c   :  { %v4200_v24 = vmul.f32 %v6508_v14, %v4198_v23  ;;  %v4522_v23 = vld [vmem:[%s8411_s16 + $0x8] sm:$0xff] }
0x102e   :  { %4202 = vrot.lane.b32.xlu1 %v4200_v24, %s6580_s14  ;;  %v4521_v24 = vld [vmem:[%s8411_s16] sm:$0xff] }
0x10a0   :  { %v4203_v25 = vpop.permute.xlu1 %4202 }
0x10a1   :  { %6457 = vmatmul.mubr.msk.f32.vlgmr.msra.gmra.mxu1 %vm171_vm1, %v4203_v25 }
0x10a2   :  { %6471 = vmatpush3.msra.mxu1 %v8270_v60  ;;  %6478 = vmatprep.mubr.msk.f32.mxu1 %vm6578_vm2, %v6577_v53 }
0x10a3   :  { %6472 = vmatprep.subr.mxu1 %v6577_v53 }
0x10a4   :  { %6473 = vmatpush3.msra.mxu1 %v8277_v61 }
0x10a5   :  { %6474 = vmatprep.subr.mxu1 %v6577_v53 }
0x10a6   :  { %6475 = vmatpush3.msra.mxu1 %v8294_v0 }
0x10a7   :  { %6476 = vmatprep.subr.mxu1 %v6577_v53 }
0x10a8   :  { %6477 = vmatpush3.msra.mxu1 %v8304_v1 }
0x1161   :  { %v4272_v26 = vpop.f32.mrf.mxu1 }
0x1162   :  { %v4277_v27 = vrot.slane %v4272_v26, 6 }
0x1163   :  { %v6458_v28 = vpop.f32.mrf.mxu1 }
0x1164   :  { %v4279_v30 = vadd.f32 %v4277_v27, %v8334_v18 }
0x1166   :  { %6511 = vtanh.f32 %v4279_v30  ;;  %v4280_v31 = vsub.f32 0.0, %v4279_v30 }
0x1168   :  { %v4281_v39 = vmul.f32 1.442695, %v4280_v31 }
0x116a   :  { %6513 = vpow2.f32 %v4281_v39 }
0x1173   :  { %v6512_v37 = vpop.eup %6511 }
0x1174   :  { %4292 = vrot.lane.b32.xlu0 %v6512_v37, %s6579_s22  ;;  %v4965_v37 = vld [vmem:[%s8412_s17] ss:$0 sm:$0xff] }
0x1177   :  { %v6514_v32 = vpop.eup %6513 }
0x1178   :  { %v4283_v34 = vadd.f32 1.0, %v6514_v32 }
0x117a   :  { %6515 = vrcp.f32 %v4283_v34 }
0x1187   :  { %v6516_v35 = vpop.eup %6515 }
0x1188   :  { %v4290_v40 = vmul.f32 %v6516_v35, %v4288_v38 }
0x11e6   :  { %v4293_v36 = vpop.permute.xlu0 %4292 }
0x11e7   :  { %v4295_v43 = vmul.f32 %v6516_v35, %v4293_v36 }
0x11e9   :  { %4297 = vrot.lane.b32.xlu1 %v4295_v43, %s6580_s14 }
0x125b   :  { %v4298_v46 = vpop.permute.xlu1 %4297 }
0x125c   :  { %v4300_v47 = vadd.f32 %v4298_v46, %v4290_v40 }
0x125e   :  { %6517 = vtanh.f32 %v4300_v47  ;;  %v4395_v63 = vrot.slane %v4300_v47, 6 }
0x126b   :  { %v6518_v48 = vpop.eup %6517 }
0x126c   :  { %4303 = vrot.lane.b32.xlu0 %v6518_v48, %s6579_s22 }
0x12de   :  { %v4304_v4 = vpop.permute.xlu0 %4303 }
0x12df   :  { %v4306_v49 = vmul.f32 %v6516_v35, %v4304_v4 }
0x12e1   :  { %v4308_v50 = vrot.slane %v4306_v49, 2 }
0x12e3   :  { %4309 = vrot.lane.b32.xlu1 %v4308_v50, %s6580_s14 }
0x1355   :  { %v4310_v51 = vpop.permute.xlu1 %4309 }
0x1356   :  { %6468 = vmatmul.mubr.msk.f32.vlgmr.msra.gmra.mxu0 %vm171_vm1, %v4310_v51 }
0x1357   :  { %6489 = vmatprep.mubr.msk.f32.mxu0 %vm6578_vm2, %v6577_v53 }
0x1416   :  { %v4379_v52 = vpop.f32.mrf.mxu0 }
0x1417   :  { %v4384_v29 = vrot.slane %v4379_v52, 4 }
0x1418   :  { %v6469_v33 = vpop.f32.mrf.mxu0 }
0x1419   :  { %v4386_v54 = vadd.f32 %v4384_v29, %v8334_v18 }
0x141b   :  { %6519 = vtanh.f32 %v4386_v54  ;;  %v4387_v56 = vsub.f32 0.0, %v4386_v54 }
0x141d   :  { %v4388_v57 = vmul.f32 1.442695, %v4387_v56 }
0x141f   :  { %6521 = vpow2.f32 %v4388_v57 }
0x1428   :  { %v6520_v55 = vpop.eup %6519 }
0x1429   :  { %4399 = vrot.lane.b32.xlu0 %v6520_v55, %s6579_s22 }
0x142c   :  { %v6522_v58 = vpop.eup %6521 }
0x142d   :  { %v4390_v60 = vadd.f32 1.0, %v6522_v58 }
0x142f   :  { %6523 = vrcp.f32 %v4390_v60 }
0x143c   :  { %v6524_v61 = vpop.eup %6523 }
0x143d   :  { %v4397_v59 = vmul.f32 %v6524_v61, %v4395_v63 }
0x149b   :  { %v4400_v62 = vpop.permute.xlu0 %4399 }
0x149c   :  { %v4402_v2 = vmul.f32 %v6524_v61, %v4400_v62 }
0x149e   :  { %4404 = vrot.lane.b32.xlu1 %v4402_v2, %s6580_s14 }
0x1510   :  { %v4405_v44 = vpop.permute.xlu1 %4404 }
0x1511   :  { %v4407_v0 = vadd.f32 %v4405_v44, %v4397_v59 }
0x1513   :  { %6525 = vtanh.f32 %v4407_v0  ;;  %v4502_v16 = vrot.slane %v4407_v0, 6 }
0x1520   :  { %v6526_v45 = vpop.eup %6525 }
0x1521   :  { %4410 = vrot.lane.b32.xlu0 %v6526_v45, %s6579_s22 }
0x1593   :  { %v4411_v1 = vpop.permute.xlu0 %4410 }
0x1594   :  { %v4413_v41 = vmul.f32 %v6524_v61, %v4411_v1 }
0x1596   :  { %v4415_v42 = vrot.slane %v4413_v41, 4 }
0x1598   :  { %4416 = vrot.lane.b32.xlu1 %v4415_v42, %s6580_s14 }
0x160a   :  { %v4417_v3 = vpop.permute.xlu1 %4416 }
0x160b   :  { %6479 = vmatmul.mubr.msk.f32.vlgmr.msra.gmra.mxu1 %vm171_vm1, %v4417_v3 }
0x16cb   :  { %v4486_v5 = vpop.f32.mrf.mxu1 }
0x16cc   :  { %v4491_v6 = vrot.slane %v4486_v5, 2 }
0x16cd   :  { %v6480_v17 = vpop.f32.mrf.mxu1 }
0x16ce   :  { %v4493_v7 = vadd.f32 %v4491_v6, %v8334_v18  ;;  %v4524_v18 = vld [vmem:[%s8411_s16 + $0x18] sm:$0xff]  ;;  %s6581_s16 = smov [#allocation2]  }
0x16cf   :  { %6482 = vmatpush3.msra.mxu0 %v4524_v18  ;;  %s4628_s17 = sshll.u32 %s6581_s16, 4  ;;  %s4629_s17 = int_to_ptr.vmem [resolvable:$true] %s4628_s17 }
0x16d0   :  { %6527 = vtanh.f32 %v4493_v7  ;;  %v4494_v9 = vsub.f32 0.0, %v4493_v7  ;;  %6483 = vmatprep.subr.mxu0 %v6577_v53  ;;  %s6555_s2 = scalar_lea.vmem %s4629_s17, 32  ;;  %p6560_p1 = scmp.lt.s32.totalorder %s4629_s17, %s4629_s17 }
0x16d1   :  { %6484 = vmatpush3.msra.mxu0 %v4523_v22  ;;  %p6556_p0 = scmp.ne.s32.totalorder %s4629_s17, %s6555_s2  ;;  %p6561_p2 = scmp.lt.s32.totalorder %s6555_s2, %s6555_s2 }
0x16d2   :  { %v4495_v10 = vmul.f32 1.442695, %v4494_v9  ;;  %6485 = vmatprep.subr.mxu0 %v6577_v53 }
0x16d3   :  { %6486 = vmatpush3.msra.mxu0 %v4522_v23  ;;  %p6562_p3 = por %p6561_p2, %p6560_p1 }
0x16d4   :  { %6529 = vpow2.f32 %v4495_v10  ;;  %6487 = vmatprep.subr.mxu0 %v6577_v53 }
0x16d5   :  { %6488 = vmatpush3.msra.mxu0 %v4521_v24  ;;  %p6563_p4 = pnand %p6562_p3, %p6556_p0 }
0x16dd   :  { %v6528_v8 = vpop.eup %6527 }
0x16de   :  { %4506 = vrot.lane.b32.xlu0 %v6528_v8, %s6579_s22 }
0x16e1   :  { %v6530_v11 = vpop.eup %6529 }
0x16e2   :  { %v4497_v12 = vadd.f32 1.0, %v6530_v11 }
0x16e4   :  { %6531 = vrcp.f32 %v4497_v12 }
0x16f1   :  { %v6532_v13 = vpop.eup %6531 }
0x16f2   :  { %v4504_v19 = vmul.f32 %v6532_v13, %v4502_v16 }
0x1750   :  { %v4507_v14 = vpop.permute.xlu0 %4506 }
0x1751   :  { %v4509_v15 = vmul.f32 %v6532_v13, %v4507_v14 }
0x1753   :  { %4511 = vrot.lane.b32.xlu1 %v4509_v15, %s6580_s14 }
0x17c5   :  { %v4512_v20 = vpop.permute.xlu1 %4511 }
0x17c6   :  { %v4514_v21 = vadd.f32 %v4512_v20, %v4504_v19 }
0x17c8   :  { %6533 = vtanh.f32 %v4514_v21 }
0x17d5   :  { %v6534_v25 = vpop.eup %6533 }
0x17d6   :  { %4517 = vrot.lane.b32.xlu0 %v6534_v25, %s6579_s22 }
0x1848   :  { %v4518_v26 = vpop.permute.xlu0 %4517 }
0x1849   :  { %v4520_v27 = vmul.f32 %v6532_v13, %v4518_v26 }
0x184b   :  { %v4533_v28 = vrot.slane %v4520_v27, 6 }
0x184d   :  { %4534 = vrot.lane.b32.xlu1 %v4533_v28, %s6580_s14 }
0x18bf   :  { %v4535_v30 = vpop.permute.xlu1 %4534 }
0x18c0   :  { %6490 = vmatmul.mubr.msk.f32.vlgmr.msra.gmra.mxu0 %vm171_vm1, %v4535_v30 }
0x1980   :  { %v4604_v31 = vpop.f32.mrf.mxu0 }
0x1981   :  { %v4605_v39 = vadd.f32 %v4965_v37, %v4604_v31 }
0x1982   :  { %v6491_v53 = vpop.f32.mrf.mxu0 }
0x1983   :  { %v4609_v32 = vsel %vm4608_vm7, %v4605_v39, -inf }
0x1984   :  { %4610 = vmax.xlane.f32.xlu0 %v4609_v32 }
0x1a0d   :  { %v4611_v34 = vpop.xlane.xlu0 %4610 }
0x1a0e   :  { %v4612_v35 = vsub.f32 %v4605_v39, %v4611_v34 }
0x1a10   :  { %v4613_v36 = vmul.f32 1.442695, %v4612_v35 }
0x1a12   :  { %6535 = vpow2.f32 %v4613_v36 }
0x1a1f   :  { %v6536_v43 = vpop.eup %6535 }
0x1a20   :  { %v4615_v38 = vsel %vm4608_vm7, %v6536_v43, 0.0 }
0x1a21   :  { %4616 = vadd.xlane.f32.xlu1 %v4615_v38 }
0x1aaa   :  { %v4617_v40 = vpop.xlane.xlu1 %4616 }
0x1aab   :  { %6537 = vlog2.f32 %v4617_v40 }
0x1ab8   :  { %v6538_v46 = vpop.eup %6537 }
0x1ab9   :  { %v4619_v47 = vmul.f32 0.6931472, %v6538_v46 }
0x1abb   :  { %v4620_v48 = vsub.f32 %v4612_v35, %v4619_v47 }
0x1abd   :  { %4621 = vst.msk [vmem:[#allocation2] sm:$0x3] %vm4608_vm7, %v4620_v48 }
0x1abe   :  { %6566 = shalt.err (!%p6563_p4)
}
0x1abf   :  { %4631 = dma.vmem_to_hbm [thread:$0]  %s4629_s17, 32, %s8413_s18, [#allocation3]  }
0x1ac0   :  { %6575 = dma.done.wait [#allocation3], 32  }
0x1ac1   :  { %6576 = vsyncadd [#allocation3], 4294967264 }
0x1ac2   :  { %4635 = vsyncpa [#allocation3], 1 }

</bundles_post_ra>
